<compile_context>
chip_gen: v7x
topology: tpu7x:2x2x1
jax: 0.10.0
libtpu: 0.0.40
codegen_flags: <defaults>
</compile_context>

<pallas_src>
import functools

import jax
import jax.numpy as jnp
from jax.experimental import pallas as pl
from jax.experimental.pallas import tpu as pltpu


# ----------------------------- Pallas kernel --------------------------------
def _fcnn_kernel(x_ref,
                 w1, b1, w2, b2, w3, b3, w4, b4, w5, b5, w6t, b6,
                 o_ref,
                 *, compute_dtype):
    """Whole MLP forward for one batch tile, entirely in VMEM.

    x_ref : (TB, D)       input tile (compute_dtype)
    wK    : (inK, outK)   layer-K weight (compute_dtype), K = 1..5
    bK    : (1, outK)     layer-K bias (f32)
    w6t   : (1, 16)       last-layer weight stored (out, in) so the result is
                          produced directly in lane-major (1, TB) orientation
    b6    : (1, 1)        last-layer bias (f32)
    o_ref : (1, 1, TB)    output tile, lane-dense over the batch
    """
    def linear_relu(h, w_ref, b_ref):
        # h is already compute_dtype; accumulate in f32 on the MXU, do bias+ReLU in
        # f32 on the VPU, then carry the activation forward in compute_dtype so the
        # inter-layer footprint stays narrow (bf16 in the default path).
        y = jnp.dot(h, w_ref[...], preferred_element_type=jnp.float32)
        return jnp.maximum(y + b_ref[...], 0.0).astype(compute_dtype)

    h = x_ref[...]                                   # (TB, D), compute_dtype
    h = linear_relu(h, w1, b1)
    h = linear_relu(h, w2, b2)
    h = linear_relu(h, w3, b3)
    h = linear_relu(h, w4, b4)
    h = linear_relu(h, w5, b5)                       # (TB, 16), compute_dtype

    # Final Linear(16, 1), no activation -- computed as (1,16) x (TB,16)^T so the
    # result is (1, TB): lane-dense store, no masked (TB,1) partial stores.
    y_t = jax.lax.dot_general(
        w6t[...], h,
        dimension_numbers=(((1,), (1,)), ((), ())),
        preferred_element_type=jnp.float32) + b6[...]          # (1, TB), f32
    o_ref[...] = y_t.reshape(o_ref.shape).astype(o_ref.dtype)


# ------------------------------ Wrapper --------------------------------------
def _round_up(x, m):
    return ((x + m - 1) // m) * m


def fcnn_forward(x, params, *, batch_tile=1024, compute_dtype=jnp.bfloat16):
    """FCNN forward via a single pallas_call.

    x      : (B, input_dim) float32
    params : list of 6 (W[in,out] f32, b[1,out] f32) tuples. NOTE: W is the
             transpose of PyTorch's nn.Linear weight layout, so the math is
             y = x @ W + b. The last layer must have out_features == 1.
    batch_tile : rows per grid step. Main tuning knob; sweep 512..4096.
                 Clamped to round_up(B, 128) for small batches.
    """
    B, D = x.shape
    n_layers = len(params)
    assert params[-1][0].shape[1] == 1, "last layer must be Linear(16, 1)"

    # ---- Tile-size derivation (lane-aligned, small-batch clamped) ----
    b_pad_min = _round_up(B, 128)                 # minimum lane-aligned padding
    batch_tile = max(128, min(int(batch_tile), b_pad_min))
    batch_tile = _round_up(batch_tile, 128)
    # v7x has 2 TensorCores: keep >= 2 grid steps whenever the padded batch allows
    # it so the "parallel" batch axis can be split across both cores. Harmless on
    # single-TC v5e/v6e (one extra ~0.35 us grid step).
    if b_pad_min >= 256 and b_pad_min // batch_tile < 2:
        batch_tile = _round_up(b_pad_min // 2, 128)

    num_tiles = pl.cdiv(B, batch_tile)
    b_pad = num_tiles * batch_tile
    if b_pad != B:
        x = jnp.pad(x, ((0, b_pad - B), (0, 0)))
    x = x.astype(compute_dtype)

    flat_args = []
    in_specs = [pl.BlockSpec((batch_tile, D), lambda i: (i, 0))]
    for li, (w, b) in enumerate(params):
        if li == n_layers - 1:
            w = w.T                      # (1, 16): (out, in) layout for the tail
        flat_args += [w.astype(compute_dtype), b.astype(jnp.float32)]
        # Full arrays resident in VMEM; same block every grid step.
        in_specs.append(pl.BlockSpec(flat_args[-2].shape, lambda i: (0, 0)))
        in_specs.append(pl.BlockSpec(flat_args[-1].shape, lambda i: (0, 0)))

    # Advisory cost estimate so XLA schedules the call sensibly in larger graphs.
    widths = [D] + [w.shape[1] for (w, _) in params]
    macs_per_row = sum(widths[i] * widths[i + 1] for i in range(len(widths) - 1))
    itemsize = jnp.dtype(compute_dtype).itemsize
    cost = pl.CostEstimate(
        flops=2 * b_pad * macs_per_row,
        transcendentals=0,
        bytes_accessed=int(b_pad * D * itemsize
                           + sum(w.size * itemsize + b.size * 4 for (w, b) in params)
                           + b_pad * 4))

    out = pl.pallas_call(
        functools.partial(_fcnn_kernel, compute_dtype=compute_dtype),
        out_shape=jax.ShapeDtypeStruct((num_tiles, 1, batch_tile), jnp.float32),
        grid_spec=pltpu.PrefetchScalarGridSpec(
            num_scalar_prefetch=0,
            grid=(num_tiles,),
            in_specs=in_specs,
            out_specs=pl.BlockSpec((1, 1, batch_tile), lambda i: (i, 0, 0)),
        ),
        compiler_params=pltpu.CompilerParams(
            # Batch tiles are independent -> shard across v7x's 2 TCs.
            # TODO(synk): if an xprof trace shows no cross-core split on v7x, switch
            # to pltpu.CORE_PARALLEL here.
            dimension_semantics=("parallel",),
            # 32 MiB covers batch_tile up to ~4096 rows (peak live ~ (TB,512) f32
            # intermediate + double-buffered (TB,D) input + ~2 MiB params) and keeps
            # headroom under v7x's 64 MiB physical VMEM; v5e's 16 MiB default would
            # be too small at TB>=1024.
            vmem_limit_bytes=32 * 1024 * 1024,
        ),
        cost_estimate=cost,
    )(x, *flat_args)

    # (num_tiles, 1, batch_tile) -> (B, 1), dropping batch padding.
    return out.reshape(b_pad, 1)[:B]


# ------------------------- Deterministic param init --------------------------
def init_fcnn_params(key, input_dim):
    """PyTorch-default-style U(-1/sqrt(fan_in), 1/sqrt(fan_in)) init, W as (in, out)."""
    widths = [input_dim, 512, 512, 256, 64, 16, 1]
    params = []
    for li in range(len(widths) - 1):
        fan_in, fan_out = widths[li], widths[li + 1]
        key, kw, kb = jax.random.split(key, 3)
        bound = 1.0 / float(fan_in) ** 0.5
        w = jax.random.uniform(kw, (fan_in, fan_out), jnp.float32, -bound, bound)
        b = jax.random.uniform(kb, (1, fan_out), jnp.float32, -bound, bound)
        params.append((w, b))
    return params


# ---------------------------- Pure-JAX reference ------------------------------
def fcnn_reference(x, params):
    h = x
    for i, (w, b) in enumerate(params):
        h = h @ w + b
        if i < len(params) - 1:
            h = jnp.maximum(h, 0.0)
    return h


if __name__ == "__main__":
    key = jax.random.PRNGKey(0)
    input_dim = 32
    batch = 16          # small demo batch; wrapper clamps the tile to 128 rows

    kp, kx = jax.random.split(key)
    params = init_fcnn_params(kp, input_dim)
    x = jax.random.normal(kx, (batch, input_dim), jnp.float32)

    ref = fcnn_reference(x, params)

    # f32 path: tight check against the pure-JAX reference.
    out_f32 = jax.block_until_ready(
        fcnn_forward(x, params, compute_dtype=jnp.float32))
    assert out_f32.shape == (batch, 1), out_f32.shape
    assert jnp.allclose(out_f32, ref, atol=1e-3, rtol=1e-3), "f32 mismatch vs reference"

    # Default bf16 path (f32 accumulation): looser tolerance.
    # NOTE: x is cast to bf16 at the wrapper boundary in this path (input
    # quantization on top of bf16-weight matmul error); use compute_dtype=jnp.float32
    # for fp32-faithful inputs.
    out = jax.block_until_ready(fcnn_forward(x, params))
    assert out.shape == (batch, 1), out.shape
    assert jnp.allclose(out, ref, atol=2e-2, rtol=2e-2), "bf16 mismatch vs reference"

    # Exercise a multi-tile batch (2 grid steps at the clamped tile size).
    kx2 = jax.random.PRNGKey(7)
    x_big = jax.random.normal(kx2, (300, input_dim), jnp.float32)
    out_big = jax.block_until_ready(fcnn_forward(x_big, params))
    ref_big = fcnn_reference(x_big, params)
    assert out_big.shape == (300, 1), out_big.shape
    assert jnp.allclose(out_big, ref_big, atol=2e-2, rtol=2e-2), "multi-tile mismatch"

    print("KERNEL_OK")
</pallas_src>

<mosaic_0001>
module attributes {stable_mosaic.version = 11 : i64} {
  func.func @_fcnn_kernel(%arg0: i32, %arg1: memref<128x32xf32, #tpu.memory_space<vmem>>, %arg2: memref<32x512xf32, #tpu.memory_space<vmem>>, %arg3: memref<1x512xf32, #tpu.memory_space<vmem>>, %arg4: memref<512x512xf32, #tpu.memory_space<vmem>>, %arg5: memref<1x512xf32, #tpu.memory_space<vmem>>, %arg6: memref<512x256xf32, #tpu.memory_space<vmem>>, %arg7: memref<1x256xf32, #tpu.memory_space<vmem>>, %arg8: memref<256x64xf32, #tpu.memory_space<vmem>>, %arg9: memref<1x64xf32, #tpu.memory_space<vmem>>, %arg10: memref<64x16xf32, #tpu.memory_space<vmem>>, %arg11: memref<1x16xf32, #tpu.memory_space<vmem>>, %arg12: memref<1x16xf32, #tpu.memory_space<vmem>>, %arg13: memref<1x1xf32, #tpu.memory_space<vmem>>, %arg14: memref<1x1x128xf32, #tpu.memory_space<vmem>>) attributes {dimension_semantics = [#tpu.dimension_semantics<parallel>], iteration_bounds = array<i64: 1>, scalar_prefetch = 0 : i64, scratch_operands = 0 : i64, tpu.core_type = #tpu.core_type<tc>, window_params = [{transform_indices = @transform_0, window_bounds = array<i64: 128, 32>}, {pipeline_mode = #tpu.pipeline_mode<synchronous>, transform_indices = @transform_1, window_bounds = array<i64: 32, 512>}, {pipeline_mode = #tpu.pipeline_mode<synchronous>, transform_indices = @transform_2, window_bounds = array<i64: 1, 512>}, {pipeline_mode = #tpu.pipeline_mode<synchronous>, transform_indices = @transform_3, window_bounds = array<i64: 512, 512>}, {pipeline_mode = #tpu.pipeline_mode<synchronous>, transform_indices = @transform_4, window_bounds = array<i64: 1, 512>}, {pipeline_mode = #tpu.pipeline_mode<synchronous>, transform_indices = @transform_5, window_bounds = array<i64: 512, 256>}, {pipeline_mode = #tpu.pipeline_mode<synchronous>, transform_indices = @transform_6, window_bounds = array<i64: 1, 256>}, {pipeline_mode = #tpu.pipeline_mode<synchronous>, transform_indices = @transform_7, window_bounds = array<i64: 256, 64>}, {pipeline_mode = #tpu.pipeline_mode<synchronous>, transform_indices = @transform_8, window_bounds = array<i64: 1, 64>}, {pipeline_mode = #tpu.pipeline_mode<synchronous>, transform_indices = @transform_9, window_bounds = array<i64: 64, 16>}, {pipeline_mode = #tpu.pipeline_mode<synchronous>, transform_indices = @transform_10, window_bounds = array<i64: 1, 16>}, {pipeline_mode = #tpu.pipeline_mode<synchronous>, transform_indices = @transform_11, window_bounds = array<i64: 1, 16>}, {pipeline_mode = #tpu.pipeline_mode<synchronous>, transform_indices = @transform_12, window_bounds = array<i64: 1, 1>}, {transform_indices = @transform_13, window_bounds = array<i64: 1, 1, 128>}]} {
    %c0 = arith.constant 0 : index
    %c0_0 = arith.constant 0 : index
    %0 = vector.load %arg1[%c0, %c0_0] : memref<128x32xf32, #tpu.memory_space<vmem>>, vector<128x32xf32>
    %c0_1 = arith.constant 0 : index
    %c0_2 = arith.constant 0 : index
    %1 = vector.load %arg2[%c0_1, %c0_2] : memref<32x512xf32, #tpu.memory_space<vmem>>, vector<32x512xf32>
    %cst = arith.constant dense<0.000000e+00> : vector<128x512xf32>
    %2 = tpu.matmul %0, %1, %cst {dimension_numbers = #tpu.dot_dimension_numbers<[1], [0], [0], [1], [0, 0, 1, 1], [], []>} : vector<128x32xf32>, vector<32x512xf32>, vector<128x512xf32> -> vector<128x512xf32>
    %c0_3 = arith.constant 0 : index
    %c0_4 = arith.constant 0 : index
    %3 = vector.load %arg3[%c0_3, %c0_4] : memref<1x512xf32, #tpu.memory_space<vmem>>, vector<1x512xf32>
    %4 = vector.broadcast %3 : vector<1x512xf32> to vector<128x512xf32>
    %5 = arith.addf %2, %4 : vector<128x512xf32>
    %cst_5 = arith.constant 0.000000e+00 : f32
    %6 = vector.broadcast %cst_5 : f32 to vector<128x512xf32>
    %7 = arith.maximumf %5, %6 : vector<128x512xf32>
    %c0_6 = arith.constant 0 : index
    %c0_7 = arith.constant 0 : index
    %8 = vector.load %arg4[%c0_6, %c0_7] : memref<512x512xf32, #tpu.memory_space<vmem>>, vector<512x512xf32>
    %cst_8 = arith.constant dense<0.000000e+00> : vector<128x512xf32>
    %9 = tpu.matmul %7, %8, %cst_8 {dimension_numbers = #tpu.dot_dimension_numbers<[1], [0], [0], [1], [0, 0, 1, 1], [], []>} : vector<128x512xf32>, vector<512x512xf32>, vector<128x512xf32> -> vector<128x512xf32>
    %c0_9 = arith.constant 0 : index
    %c0_10 = arith.constant 0 : index
    %10 = vector.load %arg5[%c0_9, %c0_10] : memref<1x512xf32, #tpu.memory_space<vmem>>, vector<1x512xf32>
    %11 = vector.broadcast %10 : vector<1x512xf32> to vector<128x512xf32>
    %12 = arith.addf %9, %11 : vector<128x512xf32>
    %cst_11 = arith.constant 0.000000e+00 : f32
    %13 = vector.broadcast %cst_11 : f32 to vector<128x512xf32>
    %14 = arith.maximumf %12, %13 : vector<128x512xf32>
    %c0_12 = arith.constant 0 : index
    %c0_13 = arith.constant 0 : index
    %15 = vector.load %arg6[%c0_12, %c0_13] : memref<512x256xf32, #tpu.memory_space<vmem>>, vector<512x256xf32>
    %cst_14 = arith.constant dense<0.000000e+00> : vector<128x256xf32>
    %16 = tpu.matmul %14, %15, %cst_14 {dimension_numbers = #tpu.dot_dimension_numbers<[1], [0], [0], [1], [0, 0, 1, 1], [], []>} : vector<128x512xf32>, vector<512x256xf32>, vector<128x256xf32> -> vector<128x256xf32>
    %c0_15 = arith.constant 0 : index
    %c0_16 = arith.constant 0 : index
    %17 = vector.load %arg7[%c0_15, %c0_16] : memref<1x256xf32, #tpu.memory_space<vmem>>, vector<1x256xf32>
    %18 = vector.broadcast %17 : vector<1x256xf32> to vector<128x256xf32>
    %19 = arith.addf %16, %18 : vector<128x256xf32>
    %cst_17 = arith.constant 0.000000e+00 : f32
    %20 = vector.broadcast %cst_17 : f32 to vector<128x256xf32>
    %21 = arith.maximumf %19, %20 : vector<128x256xf32>
    %c0_18 = arith.constant 0 : index
    %c0_19 = arith.constant 0 : index
    %22 = vector.load %arg8[%c0_18, %c0_19] : memref<256x64xf32, #tpu.memory_space<vmem>>, vector<256x64xf32>
    %cst_20 = arith.constant dense<0.000000e+00> : vector<128x64xf32>
    %23 = tpu.matmul %21, %22, %cst_20 {dimension_numbers = #tpu.dot_dimension_numbers<[1], [0], [0], [1], [0, 0, 1, 1], [], []>} : vector<128x256xf32>, vector<256x64xf32>, vector<128x64xf32> -> vector<128x64xf32>
    %c0_21 = arith.constant 0 : index
    %c0_22 = arith.constant 0 : index
    %24 = vector.load %arg9[%c0_21, %c0_22] : memref<1x64xf32, #tpu.memory_space<vmem>>, vector<1x64xf32>
    %25 = vector.broadcast %24 : vector<1x64xf32> to vector<128x64xf32>
    %26 = arith.addf %23, %25 : vector<128x64xf32>
    %cst_23 = arith.constant 0.000000e+00 : f32
    %27 = vector.broadcast %cst_23 : f32 to vector<128x64xf32>
    %28 = arith.maximumf %26, %27 : vector<128x64xf32>
    %c0_24 = arith.constant 0 : index
    %c0_25 = arith.constant 0 : index
    %29 = vector.load %arg10[%c0_24, %c0_25] : memref<64x16xf32, #tpu.memory_space<vmem>>, vector<64x16xf32>
    %cst_26 = arith.constant dense<0.000000e+00> : vector<128x16xf32>
    %30 = tpu.matmul %28, %29, %cst_26 {dimension_numbers = #tpu.dot_dimension_numbers<[1], [0], [0], [1], [0, 0, 1, 1], [], []>} : vector<128x64xf32>, vector<64x16xf32>, vector<128x16xf32> -> vector<128x16xf32>
    %c0_27 = arith.constant 0 : index
    %c0_28 = arith.constant 0 : index
    %31 = vector.load %arg11[%c0_27, %c0_28] : memref<1x16xf32, #tpu.memory_space<vmem>>, vector<1x16xf32>
    %32 = vector.broadcast %31 : vector<1x16xf32> to vector<128x16xf32>
    %33 = arith.addf %30, %32 : vector<128x16xf32>
    %cst_29 = arith.constant 0.000000e+00 : f32
    %34 = vector.broadcast %cst_29 : f32 to vector<128x16xf32>
    %35 = arith.maximumf %33, %34 : vector<128x16xf32>
    %c0_30 = arith.constant 0 : index
    %c0_31 = arith.constant 0 : index
    %36 = vector.load %arg12[%c0_30, %c0_31] : memref<1x16xf32, #tpu.memory_space<vmem>>, vector<1x16xf32>
    %cst_32 = arith.constant dense<0.000000e+00> : vector<1x128xf32>
    %37 = tpu.matmul %36, %35, %cst_32 {dimension_numbers = #tpu.dot_dimension_numbers<[1], [1], [0], [0], [0, 0, 1, 0], [], []>} : vector<1x16xf32>, vector<128x16xf32>, vector<1x128xf32> -> vector<1x128xf32>
    %c0_33 = arith.constant 0 : index
    %c0_34 = arith.constant 0 : index
    %38 = vector.load %arg13[%c0_33, %c0_34] : memref<1x1xf32, #tpu.memory_space<vmem>>, vector<1x1xf32>
    %39 = vector.broadcast %38 : vector<1x1xf32> to vector<1x128xf32>
    %40 = arith.addf %37, %39 : vector<1x128xf32>
    %41 = vector.shape_cast %40 : vector<1x128xf32> to vector<1x1x128xf32>
    %c0_35 = arith.constant 0 : index
    %c0_36 = arith.constant 0 : index
    %c0_37 = arith.constant 0 : index
    %42 = vector.load %arg14[%c0_35, %c0_36, %c0_37] : memref<1x1x128xf32, #tpu.memory_space<vmem>>, vector<1x1x128xf32>
    tpu.vector_store %arg14[%c0_35, %c0_36, %c0_37], %41 {strides = array<i32>} : memref<1x1x128xf32, #tpu.memory_space<vmem>>, vector<1x1x128xf32>,
    return
  }
  func.func @transform_0(%arg0: i32) -> (i32, i32) {
    %c0_i32 = arith.constant 0 : i32
    %c0_i32_0 = arith.constant 0 : i32
    return %arg0, %c0_i32 : i32, i32
  }
  func.func @transform_1(%arg0: i32) -> (i32, i32) {
    %c0_i32 = arith.constant 0 : i32
    %c0_i32_0 = arith.constant 0 : i32
    %c0_i32_1 = arith.constant 0 : i32
    return %c0_i32, %c0_i32_0 : i32, i32
  }
  func.func @transform_2(%arg0: i32) -> (i32, i32) {
    %c0_i32 = arith.constant 0 : i32
    %c0_i32_0 = arith.constant 0 : i32
    %c0_i32_1 = arith.constant 0 : i32
    return %c0_i32, %c0_i32_0 : i32, i32
  }
  func.func @transform_3(%arg0: i32) -> (i32, i32) {
    %c0_i32 = arith.constant 0 : i32
    %c0_i32_0 = arith.constant 0 : i32
    %c0_i32_1 = arith.constant 0 : i32
    return %c0_i32, %c0_i32_0 : i32, i32
  }
  func.func @transform_4(%arg0: i32) -> (i32, i32) {
    %c0_i32 = arith.constant 0 : i32
    %c0_i32_0 = arith.constant 0 : i32
    %c0_i32_1 = arith.constant 0 : i32
    return %c0_i32, %c0_i32_0 : i32, i32
  }
  func.func @transform_5(%arg0: i32) -> (i32, i32) {
    %c0_i32 = arith.constant 0 : i32
    %c0_i32_0 = arith.constant 0 : i32
    %c0_i32_1 = arith.constant 0 : i32
    return %c0_i32, %c0_i32_0 : i32, i32
  }
  func.func @transform_6(%arg0: i32) -> (i32, i32) {
    %c0_i32 = arith.constant 0 : i32
    %c0_i32_0 = arith.constant 0 : i32
    %c0_i32_1 = arith.constant 0 : i32
    return %c0_i32, %c0_i32_0 : i32, i32
  }
  func.func @transform_7(%arg0: i32) -> (i32, i32) {
    %c0_i32 = arith.constant 0 : i32
    %c0_i32_0 = arith.constant 0 : i32
    %c0_i32_1 = arith.constant 0 : i32
    return %c0_i32, %c0_i32_0 : i32, i32
  }
  func.func @transform_8(%arg0: i32) -> (i32, i32) {
    %c0_i32 = arith.constant 0 : i32
    %c0_i32_0 = arith.constant 0 : i32
    %c0_i32_1 = arith.constant 0 : i32
    return %c0_i32, %c0_i32_0 : i32, i32
  }
  func.func @transform_9(%arg0: i32) -> (i32, i32) {
    %c0_i32 = arith.constant 0 : i32
    %c0_i32_0 = arith.constant 0 : i32
    %c0_i32_1 = arith.constant 0 : i32
    return %c0_i32, %c0_i32_0 : i32, i32
  }
  func.func @transform_10(%arg0: i32) -> (i32, i32) {
    %c0_i32 = arith.constant 0 : i32
    %c0_i32_0 = arith.constant 0 : i32
    %c0_i32_1 = arith.constant 0 : i32
    return %c0_i32, %c0_i32_0 : i32, i32
  }
  func.func @transform_11(%arg0: i32) -> (i32, i32) {
    %c0_i32 = arith.constant 0 : i32
    %c0_i32_0 = arith.constant 0 : i32
    %c0_i32_1 = arith.constant 0 : i32
    return %c0_i32, %c0_i32_0 : i32, i32
  }
  func.func @transform_12(%arg0: i32) -> (i32, i32) {
    %c0_i32 = arith.constant 0 : i32
    %c0_i32_0 = arith.constant 0 : i32
    %c0_i32_1 = arith.constant 0 : i32
    return %c0_i32, %c0_i32_0 : i32, i32
  }
  func.func @transform_13(%arg0: i32) -> (i32, i32, i32) {
    %c0_i32 = arith.constant 0 : i32
    %c0_i32_0 = arith.constant 0 : i32
    %c0_i32_1 = arith.constant 0 : i32
    return %arg0, %c0_i32, %c0_i32_0 : i32, i32, i32
  }
}

</mosaic_0001>

<bundles_post_ra>
// kernel: tpu_custom_call.1
= control target key start
LH: loop header
LB: loop body
LE: loop exit
PB: predicated region body
PF: predicated region fallthrough
CT: control target
= control target key end

     0   :  { %s4556_s0 = inlined_call_operand.vmem [shape: f32[128,32], index: 0, kind: input, shape index: {}]   ;;  %s4557_s1 = inlined_call_operand.vmem [shape: f32[32,512], index: 1, kind: input, shape index: {}]   ;;  %s4558_s2 = inlined_call_operand.vmem [shape: f32[1,512], index: 2, kind: input, shape index: {}]   ;;  %s4559_s3 = inlined_call_operand.hbm [shape: f32[512,512], index: 3, kind: input, shape index: {}]   ;;  %s4560_s4 = inlined_call_operand.vmem [shape: f32[1,512], index: 4, kind: input, shape index: {}]   ;;  %s4561_s5 = inlined_call_operand.hbm [shape: f32[512,256], index: 5, kind: input, shape index: {}]   ;;  %s4562_s6 = inlined_call_operand.vmem [shape: f32[1,256], index: 6, kind: input, shape index: {}]   ;;  %s4563_s7 = inlined_call_operand.vmem [shape: f32[256,64], index: 7, kind: input, shape index: {}]   ;;  %s4564_s8 = inlined_call_operand.vmem [shape: f32[1,64], index: 8, kind: input, shape index: {}]   ;;  %s4565_s9 = inlined_call_operand.vmem [shape: f32[64,16], index: 9, kind: input, shape index: {}]   ;;  %s4566_s10 = inlined_call_operand.vmem [shape: f32[1,16], index: 10, kind: input, shape index: {}]   ;;  %s4567_s11 = inlined_call_operand.vmem [shape: f32[1,16], index: 11, kind: input, shape index: {}]   ;;  %s4568_s12 = inlined_call_operand.<no memory space> [shape: f32[1,1], index: 12, kind: input, shape index: {}]   ;;  %s4569_s13 = inlined_call_operand.hbm [shape: f32[1,1,128], index: 13, kind: output, shape index: {}]  }
   0x1   :  { %v18_v0 = vstv %s4568_s12 }
   0x2   :  { %19 = vst [vmem:[#allocation2] sm:$0x1] %v18_v0 }
   0x3   :  { %20 = vsyncpa [#allocation4], 0 }
   0x4   :  { %21 = vsyncpa [#allocation7], 0 }
   0x5   :  { %22 = vsyncpa [#allocation5], 0  ;;  %s3638_s27 = smov [#allocation3]   ;;  %s3566_s14 = scalar_lea.hbm %s4559_s3, 32768 }
   0x6   :  { %s34_s28 = sshll.u32 %s3638_s27, 4  ;;  %p3567_p0 = scmp.ne.s32.totalorder %s4559_s3, %s3566_s14  ;;  %s35_s28 = int_to_ptr.vmem [resolvable:$true] %s34_s28 }
   0x7   :  { %p3570_p1 = scmp.lt.u32.totalorder %s3566_s14, %s4559_s3 }
   0x9   :  { %p3572_p2 = pnand %p3570_p1, %p3567_p0 }
   0xb   :  { %3575 = shalt.err (!%p3572_p2)
}
   0xc   :  { %s3576_s12 = scalar_lea.vmem %s35_s28, 32768  ;;  %p3581_p4 = scmp.lt.s32.totalorder %s35_s28, %s35_s28 }
   0xd   :  { %p3577_p3 = scmp.ne.s32.totalorder %s35_s28, %s3576_s12  ;;  %p3582_p5 = scmp.lt.s32.totalorder %s3576_s12, %s3576_s12 }
   0xf   :  { %p3583_p6 = por %p3582_p5, %p3581_p4 }
  0x11   :  { %p3584_p7 = pnand %p3583_p6, %p3577_p3 }
  0x13   :  { %3587 = shalt.err (!%p3584_p7)
}
  0x14   :  { %s3639_s19 = smov 512   ;;  %s3640_s20 = smov 32  }
  0x15   :  { %40 = dma.hbm_to_vmem [thread:$0]  %s4559_s3, 32768, %s35_s28, [#allocation4], %s3639_s19, %s3639_s19, %s3640_s20  }
  0x16   :  { %s3641_s23 = smov [#allocation6]   ;;  %s3588_s27 = scalar_lea.hbm %s4561_s5, 16384 }
  0x17   :  { %s48_s24 = sshll.u32 %s3641_s23, 4  ;;  %p3589_p8 = scmp.ne.s32.totalorder %s4561_s5, %s3588_s27  ;;  %s49_s24 = int_to_ptr.vmem [resolvable:$true] %s48_s24 }
  0x18   :  { %p3592_p9 = scmp.lt.u32.totalorder %s3588_s27, %s4561_s5 }
  0x1a   :  { %p3594_p10 = pnand %p3592_p9, %p3589_p8 }
  0x1c   :  { %3597 = shalt.err (!%p3594_p10)
}
  0x1d   :  { %s3598_s16 = scalar_lea.vmem %s49_s24, 16384  ;;  %p3603_p12 = scmp.lt.s32.totalorder %s49_s24, %s49_s24 }
  0x1e   :  { %p3599_p11 = scmp.ne.s32.totalorder %s49_s24, %s3598_s16  ;;  %p3604_p13 = scmp.lt.s32.totalorder %s3598_s16, %s3598_s16 }
  0x20   :  { %p3605_p0 = por %p3604_p13, %p3603_p12 }
  0x22   :  { %p3606_p1 = pnand %p3605_p0, %p3599_p11 }
  0x24   :  { %3609 = shalt.err (!%p3606_p1)
}
  0x25   :  { %s3642_s3 = smov 256   ;;  %s3643_s28 = smov 16  }
  0x26   :  { %54 = dma.hbm_to_vmem [thread:$0]  %s4561_s5, 16384, %s49_s24, [#allocation7], %s3642_s3, %s3642_s3, %s3643_s28  }
  0x27   :  { %3632 = dma.done.wait [#allocation4], 32768  }
  0x28   :  { %3633 = vsyncadd [#allocation4], 4294934528 }
  0x29   :  { %3634 = dma.done.wait [#allocation7], 16384  }
  0x2a   :  { %3635 = vsyncadd [#allocation7], 4294950912  ;;  %v3644_v1 = vmov 0.0   ;;  %v92_v2 = vld [vmem:[%s4557_s1 + $0x8] sm:$0xff]  ;;  %v91_v4 = vld [vmem:[%s4557_s1] sm:$0xff]  ;;  %vm129_vm0 = vcmask 261120  }
  0x2b   :  { %242 = vmatprep.mubr.f32.mxu0 %v3644_v1  ;;  %403 = vmatprep.mubr.f32.mxu1 %v3644_v1  ;;  %v96_v3 = vld [vmem:[%s4557_s1 + $0x28] sm:$0xff]  ;;  %v95_v6 = vld [vmem:[%s4557_s1 + $0x20] sm:$0xff]  ;;  %v94_v14 = vld [vmem:[%s4557_s1 + $0x18] sm:$0xff]  ;;  %vm2259_vm1 = vcmask 523264   ;;  %vm3646_vm2 = vmmov 0   ;;  %vm2480_vm3 = vcmask 130048  }
  0x2c   :  { %v2882_v5 = vpack.c.bf16 %v96_v3, %v92_v2  ;;  %v100_v7 = vld [vmem:[%s4557_s1 + $0x48] sm:$0xff]  ;;  %v2884_v9 = vpack.c.bf16 %v95_v6, %v91_v4  ;;  %v99_v11 = vld [vmem:[%s4557_s1 + $0x40] sm:$0xff]  ;;  %v98_v15 = vld [vmem:[%s4557_s1 + $0x38] sm:$0xff]  ;;  %s3648_s15 = smov [#allocation8]  }
  0x2d   :  { %v104_v8 = vld [vmem:[%s4557_s1 + $0x68] sm:$0xff]  ;;  %v103_v12 = vld [vmem:[%s4557_s1 + $0x60] sm:$0xff]  ;;  %v2890_v17 = vpack.c.bf16 %v98_v15, %v94_v14  ;;  %v93_v18 = vld [vmem:[%s4557_s1 + $0x10] sm:$0xff]  ;;  %s2609_s16 = sshll.u32 %s3648_s15, 4  ;;  %s2610_s16 = int_to_ptr.vmem [resolvable:$true] %s2609_s16 }
  0x2e   :  { %v2886_v10 = vpack.c.bf16 %v104_v8, %v100_v7  ;;  %2883 = vmatprep.subr.bf16.mxu0 %v2882_v5  ;;  %v2888_v13 = vpack.c.bf16 %v103_v12, %v99_v11  ;;  %v75_v16 = vld [vmem:[%s4556_s0] sm:$0xff]  ;;  %v97_v19 = vld [vmem:[%s4557_s1 + $0x30] sm:$0xff]  ;;  %v102_v21 = vld [vmem:[%s4557_s1 + $0x58] sm:$0xff]  ;;  %s3614_s3 = scalar_lea.vmem %s2610_s16, 32  ;;  %p3615_p3 = scmp.lt.s32.totalorder %s2610_s16, %s2610_s16 }
  0x2f   :  { %2885 = vmatpush1.bf16.msra.mxu0 %v2884_v9  ;;  %v2892_v20 = vpack.c.bf16 %v97_v19, %v93_v18  ;;  %v106_v22 = vld [vmem:[%s4557_s1 + $0x78] sm:$0xff]  ;;  %v3796_v23 = vld [vmem:[%s4556_s0 + $0x8] sm:$0xff]  ;;  %2891 = vmatprep.subr.bf16.mxu1 %v2890_v17  ;;  %v101_v25 = vld [vmem:[%s4557_s1 + $0x50] sm:$0xff] }
  0x30   :  { %2887 = vmatprep.subr.bf16.mxu0 %v2886_v10  ;;  %v2894_v24 = vpack.c.bf16 %v106_v22, %v102_v21  ;;  %v105_v26 = vld [vmem:[%s4557_s1 + $0x70] sm:$0xff]  ;;  %v567_v30 = vld [vmem:[#allocation3 + $0x18] sm:$0xff]  ;;  %v564_v34 = vld [vmem:[#allocation3] sm:$0xff]  ;;  %s3610_s1 = scalar_lea.vmem %s2610_s16, 16 }
  0x31   :  { %v565_v27 = vld [vmem:[#allocation3 + $0x8] sm:$0xff]  ;;  %2893 = vmatpush1.bf16.msra.mxu1 %v2892_v20  ;;  %v2896_v28 = vpack.c.bf16 %v105_v26, %v101_v25  ;;  %v571_v31 = vld [vmem:[#allocation3 + $0x38] sm:$0xff]  ;;  %v568_v35 = vld [vmem:[#allocation3 + $0x20] sm:$0xff]  ;;  %p3611_p2 = scmp.ne.s32.totalorder %s2610_s16, %s3610_s1  ;;  %p3616_p4 = scmp.lt.s32.totalorder %s3614_s3, %s3610_s1 }
  0x32   :  { %v569_v29 = vld [vmem:[#allocation3 + $0x28] sm:$0xff]  ;;  %2895 = vmatprep.subr.bf16.mxu1 %v2894_v24  ;;  %v3026_v33 = vpack.c.bf16 %v571_v31, %v567_v30  ;;  %v566_v36 = vld [vmem:[#allocation3 + $0x10] sm:$0xff]  ;;  %v2900_v37 = vpack.c.bf16 %v568_v35, %v564_v34  ;;  %v575_v42 = vld [vmem:[#allocation3 + $0x58] sm:$0xff] }
  0x33   :  { %2889 = vmatpush1.bf16.msra.mxu0 %v2888_v13  ;;  %v2898_v32 = vpack.c.bf16 %v569_v29, %v565_v27  ;;  %v570_v38 = vld [vmem:[#allocation3 + $0x30] sm:$0xff]  ;;  %v573_v39 = vld [vmem:[#allocation3 + $0x48] sm:$0xff]  ;;  %v579_v43 = vld [vmem:[#allocation3 + $0x78] sm:$0xff]  ;;  %p3617_p5 = por %p3616_p4, %p3615_p3 }
  0x34   :  { %v577_v40 = vld [vmem:[#allocation3 + $0x68] sm:$0xff]  ;;  %v572_v44 = vld [vmem:[#allocation3 + $0x40] sm:$0xff]  ;;  %v3028_v47 = vpack.c.bf16 %v570_v38, %v566_v36  ;;  %v3030_v50 = vpack.c.bf16 %v579_v43, %v575_v42  ;;  %v574_v52 = vld [vmem:[#allocation3 + $0x50] sm:$0xff] }
  0x35   :  { %2899 = vmatprep.subr.bf16.mxu0 %v2898_v32  ;;  %v2902_v41 = vpack.c.bf16 %v577_v40, %v573_v39  ;;  %2897 = vmatpush1.bf16.msra.mxu1 %v2896_v28  ;;  %v576_v45 = vld [vmem:[#allocation3 + $0x60] sm:$0xff]  ;;  %v77_v46 = vld [vmem:[%s4556_s0 + $0x10] sm:$0xff]  ;;  %v583_v54 = vld [vmem:[#allocation3 + $0x98] sm:$0xff]  ;;  %p3618_p6 = pnand %p3617_p5, %p3611_p2 }
  0x36   :  { %2619 = vmatmul.mubr.msk.f32.vlgmr.msra.gmra.mrb[0].mxu0 %vm129_vm0, %v75_v16  ;;  %3027 = vmatprep.subr.bf16.mxu1 %v3026_v33  ;;  %v581_v48 = vld [vmem:[#allocation3 + $0x88] sm:$0xff]  ;;  %v2904_v51 = vpack.c.bf16 %v576_v45, %v572_v44  ;;  %v578_v53 = vld [vmem:[#allocation3 + $0x70] sm:$0xff]  ;;  %v587_v56 = vld [vmem:[#allocation3 + $0xb8] sm:$0xff] }
  0x37   :  { %248 = vmatprep.mubr.f32.mxu0 %v3644_v1  ;;  %v585_v49 = vld [vmem:[#allocation3 + $0xa8] sm:$0xff]  ;;  %2901 = vmatpush1.bf16.msra.mxu0 %v2900_v37  ;;  %v580_v57 = vld [vmem:[#allocation3 + $0x80] sm:$0xff]  ;;  %v78_v61 = vld [vmem:[%s4556_s0 + $0x18] sm:$0xff]  ;;  %v3032_v62 = vpack.c.bf16 %v578_v53, %v574_v52  ;;  %v3034_v63 = vpack.c.bf16 %v587_v56, %v583_v54 }
  0x38   :  { %2635 = vmatmul.mubr.msk.f32.vlgmr.msra.gmra.mrb[0].mxu1 %vm129_vm0, %v75_v16  ;;  %2903 = vmatprep.subr.bf16.mxu0 %v2902_v41  ;;  %v2906_v55 = vpack.c.bf16 %v585_v49, %v581_v48  ;;  %v584_v58 = vld [vmem:[#allocation3 + $0xa0] sm:$0xff]  ;;  %v589_v59 = vld [vmem:[#allocation3 + $0xc8] sm:$0xff]  ;;  %v582_v2 = vld [vmem:[#allocation3 + $0x90] sm:$0xff] }
  0x39   :  { %409 = vmatprep.mubr.f32.mxu1 %v3644_v1  ;;  %v593_v60 = vld [vmem:[#allocation3 + $0xe8] sm:$0xff]  ;;  %3029 = vmatpush1.bf16.msra.mxu1 %v3028_v47  ;;  %v2908_v0 = vpack.c.bf16 %v584_v58, %v580_v57  ;;  %v586_v3 = vld [vmem:[#allocation3 + $0xb0] sm:$0xff]  ;;  %v591_v4 = vld [vmem:[#allocation3 + $0xd8] sm:$0xff] }
  0x3a   :  { %2620 = vmatmul.mubr.msk.f32.gmra.mrb[2].mxu0 %vm129_vm0, %v3796_v23  ;;  %3031 = vmatprep.subr.bf16.mxu1 %v3030_v50  ;;  %v2910_v5 = vpack.c.bf16 %v593_v60, %v589_v59  ;;  %v595_v6 = vld [vmem:[#allocation3 + $0xf8] sm:$0xff]  ;;  %v588_v7 = vld [vmem:[#allocation3 + $0xc0] sm:$0xff]  ;;  %v597_v9 = vld [vmem:[#allocation3 + $0x108] sm:$0xff]  ;;  %v3036_v12 = vpack.c.bf16 %v586_v3, %v582_v2 }
  0x3b   :  { %254 = vmatprep.mubr.f32.mxu0 %v3644_v1  ;;  %2905 = vmatpush1.bf16.msra.mxu0 %v2904_v51  ;;  %v592_v8 = vld [vmem:[#allocation3 + $0xe0] sm:$0xff]  ;;  %v601_v10 = vld [vmem:[#allocation3 + $0x128] sm:$0xff]  ;;  %v3038_v13 = vpack.c.bf16 %v595_v6, %v591_v4  ;;  %v590_v15 = vld [vmem:[#allocation3 + $0xd0] sm:$0xff] }
  0x3c   :  { %2636 = vmatmul.mubr.msk.f32.gmra.mrb[2].mxu1 %vm129_vm0, %v3796_v23  ;;  %2907 = vmatprep.subr.bf16.mxu0 %v2906_v55  ;;  %v79_v11 = vld [vmem:[%s4556_s0 + $0x20] sm:$0xff]  ;;  %v2912_v14 = vpack.c.bf16 %v592_v8, %v588_v7  ;;  %v594_v16 = vld [vmem:[#allocation3 + $0xf0] sm:$0xff]  ;;  %v2914_v18 = vpack.c.bf16 %v601_v10, %v597_v9  ;;  %v605_v22 = vld [vmem:[#allocation3 + $0x148] sm:$0xff] }
  0x3d   :  { %415 = vmatprep.mubr.f32.mxu1 %v3644_v1  ;;  %3033 = vmatpush1.bf16.msra.mxu1 %v3032_v62  ;;  %v599_v17 = vld [vmem:[#allocation3 + $0x118] sm:$0xff]  ;;  %v596_v20 = vld [vmem:[#allocation3 + $0x100] sm:$0xff]  ;;  %v609_v23 = vld [vmem:[#allocation3 + $0x168] sm:$0xff]  ;;  %v3040_v25 = vpack.c.bf16 %v594_v16, %v590_v15 }
  0x3e   :  { %2621 = vmatmul.mubr.msk.f32.gmra.mrb[4].mxu0 %vm129_vm0, %v77_v46  ;;  %3035 = vmatprep.subr.bf16.mxu1 %v3034_v63  ;;  %v603_v19 = vld [vmem:[#allocation3 + $0x138] sm:$0xff]  ;;  %v600_v21 = vld [vmem:[#allocation3 + $0x120] sm:$0xff]  ;;  %v598_v28 = vld [vmem:[#allocation3 + $0x110] sm:$0xff]  ;;  %v2918_v31 = vpack.c.bf16 %v609_v23, %v605_v22 }
  0x3f   :  { %260 = vmatprep.mubr.f32.mxu0 %v3644_v1  ;;  %2909 = vmatpush1.bf16.msra.mxu0 %v2908_v0  ;;  %v80_v24 = vld [vmem:[%s4556_s0 + $0x28] sm:$0xff]  ;;  %v3042_v26 = vpack.c.bf16 %v603_v19, %v599_v17  ;;  %v2916_v27 = vpack.c.bf16 %v600_v21, %v596_v20  ;;  %v602_v29 = vld [vmem:[#allocation3 + $0x130] sm:$0xff]  ;;  %v607_v30 = vld [vmem:[#allocation3 + $0x158] sm:$0xff] }
  0x40   :  { %2637 = vmatmul.mubr.msk.f32.gmra.mrb[4].mxu1 %vm129_vm0, %v77_v46  ;;  %2911 = vmatprep.subr.bf16.mxu0 %v2910_v5  ;;  %v611_v32 = vld [vmem:[#allocation3 + $0x178] sm:$0xff]  ;;  %v604_v33 = vld [vmem:[#allocation3 + $0x140] sm:$0xff]  ;;  %v613_v35 = vld [vmem:[#allocation3 + $0x188] sm:$0xff]  ;;  %v3044_v38 = vpack.c.bf16 %v602_v29, %v598_v28 }
  0x41   :  { %421 = vmatprep.mubr.f32.mxu1 %v3644_v1  ;;  %3037 = vmatpush1.bf16.msra.mxu1 %v3036_v12  ;;  %v608_v34 = vld [vmem:[#allocation3 + $0x160] sm:$0xff]  ;;  %v617_v36 = vld [vmem:[#allocation3 + $0x1a8] sm:$0xff]  ;;  %v3046_v39 = vpack.c.bf16 %v611_v32, %v607_v30  ;;  %v606_v41 = vld [vmem:[#allocation3 + $0x150] sm:$0xff] }
  0x42   :  { %2622 = vmatmul.mubr.msk.f32.gmra.mrb[6].mxu0 %vm129_vm0, %v78_v61  ;;  %3039 = vmatprep.subr.bf16.mxu1 %v3038_v13  ;;  %v81_v37 = vld [vmem:[%s4556_s0 + $0x30] sm:$0xff]  ;;  %v2920_v40 = vpack.c.bf16 %v608_v34, %v604_v33  ;;  %v615_v43 = vld [vmem:[#allocation3 + $0x198] sm:$0xff]  ;;  %v2922_v44 = vpack.c.bf16 %v617_v36, %v613_v35  ;;  %v612_v46 = vld [vmem:[#allocation3 + $0x180] sm:$0xff] }
  0x43   :  { %266 = vmatprep.mubr.f32.mxu0 %v3644_v1  ;;  %2913 = vmatpush1.bf16.msra.mxu0 %v2912_v14  ;;  %v610_v42 = vld [vmem:[#allocation3 + $0x170] sm:$0xff]  ;;  %v619_v45 = vld [vmem:[#allocation3 + $0x1b8] sm:$0xff]  ;;  %v616_v47 = vld [vmem:[#allocation3 + $0x1a0] sm:$0xff] }
  0x44   :  { %2638 = vmatmul.mubr.msk.f32.gmra.mrb[6].mxu1 %vm129_vm0, %v78_v61  ;;  %2915 = vmatprep.subr.bf16.mxu0 %v2914_v18  ;;  %v621_v48 = vld [vmem:[#allocation3 + $0x1c8] sm:$0xff]  ;;  %v82_v50 = vld [vmem:[%s4556_s0 + $0x38] sm:$0xff]  ;;  %v3048_v51 = vpack.c.bf16 %v610_v42, %v606_v41  ;;  %v3050_v52 = vpack.c.bf16 %v619_v45, %v615_v43  ;;  %v2924_v53 = vpack.c.bf16 %v616_v47, %v612_v46  ;;  %v620_v59 = vld [vmem:[#allocation3 + $0x1c0] sm:$0xff] }
  0x45   :  { %427 = vmatprep.mubr.f32.mxu1 %v3644_v1  ;;  %3041 = vmatpush1.bf16.msra.mxu1 %v3040_v25  ;;  %v625_v49 = vld [vmem:[#allocation3 + $0x1e8] sm:$0xff]  ;;  %v614_v54 = vld [vmem:[#allocation3 + $0x190] sm:$0xff]  ;;  %v623_v56 = vld [vmem:[#allocation3 + $0x1d8] sm:$0xff] }
  0x46   :  { %2623 = vmatmul.mubr.msk.f32.gmra.mrb[8].mxu0 %vm129_vm0, %v79_v11  ;;  %3043 = vmatprep.subr.bf16.mxu1 %v3042_v26  ;;  %v618_v55 = vld [vmem:[#allocation3 + $0x1b0] sm:$0xff]  ;;  %v2926_v57 = vpack.c.bf16 %v625_v49, %v621_v48  ;;  %v627_v58 = vld [vmem:[#allocation3 + $0x1f8] sm:$0xff]  ;;  %v624_v60 = vld [vmem:[#allocation3 + $0x1e0] sm:$0xff] }
  0x47   :  { %272 = vmatprep.mubr.f32.mxu0 %v3644_v1  ;;  %2917 = vmatpush1.bf16.msra.mxu0 %v2916_v27  ;;  %v629_v61 = vld [vmem:[#allocation3 + $0x208] sm:$0xff]  ;;  %v83_v63 = vld [vmem:[%s4556_s0 + $0x40] sm:$0xff]  ;;  %v3052_v0 = vpack.c.bf16 %v618_v55, %v614_v54  ;;  %v3054_v2 = vpack.c.bf16 %v627_v58, %v623_v56  ;;  %v2928_v3 = vpack.c.bf16 %v624_v60, %v620_v59  ;;  %v622_v4 = vld [vmem:[#allocation3 + $0x1d0] sm:$0xff] }
  0x48   :  { %2639 = vmatmul.mubr.msk.f32.gmra.mrb[8].mxu1 %vm129_vm0, %v79_v11  ;;  %2919 = vmatprep.subr.bf16.mxu0 %v2918_v31  ;;  %v633_v62 = vld [vmem:[#allocation3 + $0x228] sm:$0xff]  ;;  %v626_v5 = vld [vmem:[#allocation3 + $0x1f0] sm:$0xff]  ;;  %v631_v6 = vld [vmem:[#allocation3 + $0x218] sm:$0xff] }
  0x49   :  { %433 = vmatprep.mubr.f32.mxu1 %v3644_v1  ;;  %3045 = vmatpush1.bf16.msra.mxu1 %v3044_v38  ;;  %v2930_v7 = vpack.c.bf16 %v633_v62, %v629_v61  ;;  %v635_v8 = vld [vmem:[#allocation3 + $0x238] sm:$0xff]  ;;  %v628_v9 = vld [vmem:[#allocation3 + $0x200] sm:$0xff]  ;;  %v637_v11 = vld [vmem:[#allocation3 + $0x248] sm:$0xff]  ;;  %v3056_v14 = vpack.c.bf16 %v626_v5, %v622_v4 }
  0x4a   :  { %2624 = vmatmul.mubr.msk.f32.gmra.mrb[10].mxu0 %vm129_vm0, %v80_v24  ;;  %3047 = vmatprep.subr.bf16.mxu1 %v3046_v39  ;;  %v632_v10 = vld [vmem:[#allocation3 + $0x220] sm:$0xff]  ;;  %v641_v12 = vld [vmem:[#allocation3 + $0x268] sm:$0xff]  ;;  %v3058_v15 = vpack.c.bf16 %v635_v8, %v631_v6  ;;  %v630_v17 = vld [vmem:[#allocation3 + $0x210] sm:$0xff] }
  0x4b   :  { %278 = vmatprep.mubr.f32.mxu0 %v3644_v1  ;;  %2921 = vmatpush1.bf16.msra.mxu0 %v2920_v40  ;;  %v84_v13 = vld [vmem:[%s4556_s0 + $0x48] sm:$0xff]  ;;  %v2932_v16 = vpack.c.bf16 %v632_v10, %v628_v9  ;;  %v634_v18 = vld [vmem:[#allocation3 + $0x230] sm:$0xff]  ;;  %v639_v19 = vld [vmem:[#allocation3 + $0x258] sm:$0xff]  ;;  %v2934_v20 = vpack.c.bf16 %v641_v12, %v637_v11 }
  0x4c   :  { %2640 = vmatmul.mubr.msk.f32.gmra.mrb[10].mxu1 %vm129_vm0, %v80_v24  ;;  %2923 = vmatprep.subr.bf16.mxu0 %v2922_v44  ;;  %v643_v21 = vld [vmem:[#allocation3 + $0x278] sm:$0xff]  ;;  %v636_v22 = vld [vmem:[#allocation3 + $0x240] sm:$0xff]  ;;  %v645_v24 = vld [vmem:[#allocation3 + $0x288] sm:$0xff]  ;;  %v3060_v27 = vpack.c.bf16 %v634_v18, %v630_v17 }
  0x4d   :  { %439 = vmatprep.mubr.f32.mxu1 %v3644_v1  ;;  %3049 = vmatpush1.bf16.msra.mxu1 %v3048_v51  ;;  %v640_v23 = vld [vmem:[#allocation3 + $0x260] sm:$0xff]  ;;  %v649_v25 = vld [vmem:[#allocation3 + $0x2a8] sm:$0xff]  ;;  %v3062_v28 = vpack.c.bf16 %v643_v21, %v639_v19  ;;  %v638_v30 = vld [vmem:[#allocation3 + $0x250] sm:$0xff] }
  0x4e   :  { %2625 = vmatmul.mubr.msk.f32.gmra.mrb[12].mxu0 %vm129_vm0, %v81_v37  ;;  %3051 = vmatprep.subr.bf16.mxu1 %v3050_v52  ;;  %v85_v26 = vld [vmem:[%s4556_s0 + $0x50] sm:$0xff]  ;;  %v2936_v29 = vpack.c.bf16 %v640_v23, %v636_v22  ;;  %v647_v32 = vld [vmem:[#allocation3 + $0x298] sm:$0xff]  ;;  %v2938_v33 = vpack.c.bf16 %v649_v25, %v645_v24  ;;  %v644_v35 = vld [vmem:[#allocation3 + $0x280] sm:$0xff] }
  0x4f   :  { %284 = vmatprep.mubr.f32.mxu0 %v3644_v1  ;;  %2925 = vmatpush1.bf16.msra.mxu0 %v2924_v53  ;;  %v642_v31 = vld [vmem:[#allocation3 + $0x270] sm:$0xff]  ;;  %v651_v34 = vld [vmem:[#allocation3 + $0x2b8] sm:$0xff]  ;;  %v648_v36 = vld [vmem:[#allocation3 + $0x2a0] sm:$0xff] }
  0x50   :  { %2641 = vmatmul.mubr.msk.f32.gmra.mrb[12].mxu1 %vm129_vm0, %v81_v37  ;;  %2927 = vmatprep.subr.bf16.mxu0 %v2926_v57  ;;  %v653_v37 = vld [vmem:[#allocation3 + $0x2c8] sm:$0xff]  ;;  %v86_v39 = vld [vmem:[%s4556_s0 + $0x58] sm:$0xff]  ;;  %v3064_v40 = vpack.c.bf16 %v642_v31, %v638_v30  ;;  %v3066_v41 = vpack.c.bf16 %v651_v34, %v647_v32  ;;  %v2940_v42 = vpack.c.bf16 %v648_v36, %v644_v35  ;;  %v652_v48 = vld [vmem:[#allocation3 + $0x2c0] sm:$0xff] }
  0x51   :  { %445 = vmatprep.mubr.f32.mxu1 %v3644_v1  ;;  %3053 = vmatpush1.bf16.msra.mxu1 %v3052_v0  ;;  %v657_v38 = vld [vmem:[#allocation3 + $0x2e8] sm:$0xff]  ;;  %v646_v43 = vld [vmem:[#allocation3 + $0x290] sm:$0xff]  ;;  %v655_v45 = vld [vmem:[#allocation3 + $0x2d8] sm:$0xff] }
  0x52   :  { %2626 = vmatmul.mubr.msk.f32.gmra.mrb[14].mxu0 %vm129_vm0, %v82_v50  ;;  %3055 = vmatprep.subr.bf16.mxu1 %v3054_v2  ;;  %v650_v44 = vld [vmem:[#allocation3 + $0x2b0] sm:$0xff]  ;;  %v2942_v46 = vpack.c.bf16 %v657_v38, %v653_v37  ;;  %v659_v47 = vld [vmem:[#allocation3 + $0x2f8] sm:$0xff]  ;;  %v656_v49 = vld [vmem:[#allocation3 + $0x2e0] sm:$0xff] }
  0x53   :  { %290 = vmatprep.mubr.f32.mxu0 %v3644_v1  ;;  %2929 = vmatpush1.bf16.msra.mxu0 %v2928_v3  ;;  %v665_v51 = vld [vmem:[#allocation3 + $0x328] sm:$0xff]  ;;  %v87_v52 = vld [vmem:[%s4556_s0 + $0x60] sm:$0xff]  ;;  %v3068_v53 = vpack.c.bf16 %v650_v44, %v646_v43  ;;  %v3070_v54 = vpack.c.bf16 %v659_v47, %v655_v45  ;;  %v2944_v55 = vpack.c.bf16 %v656_v49, %v652_v48  ;;  %v654_v56 = vld [vmem:[#allocation3 + $0x2d0] sm:$0xff] }
  0x54   :  { %2642 = vmatmul.mubr.msk.f32.gmra.mrb[14].mxu1 %vm129_vm0, %v82_v50  ;;  %2931 = vmatprep.subr.bf16.mxu0 %v2930_v7  ;;  %v661_v50 = vld [vmem:[#allocation3 + $0x308] sm:$0xff]  ;;  %v658_v57 = vld [vmem:[#allocation3 + $0x2f0] sm:$0xff]  ;;  %v663_v58 = vld [vmem:[#allocation3 + $0x318] sm:$0xff] }
  0x55   :  { %451 = vmatprep.mubr.f32.mxu1 %v3644_v1  ;;  %3057 = vmatpush1.bf16.msra.mxu1 %v3056_v14  ;;  %v2946_v59 = vpack.c.bf16 %v665_v51, %v661_v50  ;;  %v667_v60 = vld [vmem:[#allocation3 + $0x338] sm:$0xff]  ;;  %v660_v61 = vld [vmem:[#allocation3 + $0x300] sm:$0xff]  ;;  %v673_v0 = vld [vmem:[#allocation3 + $0x368] sm:$0xff]  ;;  %v3072_v3 = vpack.c.bf16 %v658_v57, %v654_v56  ;;  %v109_v51 = vlaneseq }
  0x56   :  { %2627 = vmatmul.mubr.msk.f32.gmra.mrb[16].mxu0 %vm129_vm0, %v83_v63  ;;  %3059 = vmatprep.subr.bf16.mxu1 %v3058_v15  ;;  %v664_v62 = vld [vmem:[#allocation3 + $0x320] sm:$0xff]  ;;  %v3074_v4 = vpack.c.bf16 %v667_v60, %v663_v58  ;;  %v662_v6 = vld [vmem:[#allocation3 + $0x310] sm:$0xff]  ;;  %v671_v8 = vld [vmem:[#allocation3 + $0x358] sm:$0xff] }
  0x57   :  { %296 = vmatprep.mubr.f32.mxu0 %v3644_v1  ;;  %2933 = vmatpush1.bf16.msra.mxu0 %v2932_v16  ;;  %v88_v2 = vld [vmem:[%s4556_s0 + $0x68] sm:$0xff]  ;;  %v2948_v5 = vpack.c.bf16 %v664_v62, %v660_v61  ;;  %v666_v7 = vld [vmem:[#allocation3 + $0x330] sm:$0xff]  ;;  %v675_v10 = vld [vmem:[#allocation3 + $0x378] sm:$0xff] }
  0x58   :  { %2643 = vmatmul.mubr.msk.f32.gmra.mrb[16].mxu1 %vm129_vm0, %v83_v63  ;;  %2935 = vmatprep.subr.bf16.mxu0 %v2934_v20  ;;  %v669_v63 = vld [vmem:[#allocation3 + $0x348] sm:$0xff]  ;;  %v668_v11 = vld [vmem:[#allocation3 + $0x340] sm:$0xff]  ;;  %v3076_v16 = vpack.c.bf16 %v666_v7, %v662_v6  ;;  %v3078_v17 = vpack.c.bf16 %v675_v10, %v671_v8  ;;  %v670_v19 = vld [vmem:[#allocation3 + $0x350] sm:$0xff] }
  0x59   :  { %457 = vmatprep.mubr.f32.mxu1 %v3644_v1  ;;  %3061 = vmatpush1.bf16.msra.mxu1 %v3060_v27  ;;  %v2950_v9 = vpack.c.bf16 %v673_v0, %v669_v63  ;;  %v672_v12 = vld [vmem:[#allocation3 + $0x360] sm:$0xff]  ;;  %v681_v14 = vld [vmem:[#allocation3 + $0x3a8] sm:$0xff]  ;;  %v674_v20 = vld [vmem:[#allocation3 + $0x370] sm:$0xff] }
  0x5a   :  { %2628 = vmatmul.mubr.msk.f32.gmra.mrb[18].mxu0 %vm129_vm0, %v84_v13  ;;  %3063 = vmatprep.subr.bf16.mxu1 %v3062_v28  ;;  %v89_v15 = vld [vmem:[%s4556_s0 + $0x70] sm:$0xff]  ;;  %v2952_v18 = vpack.c.bf16 %v672_v12, %v668_v11  ;;  %v679_v22 = vld [vmem:[#allocation3 + $0x398] sm:$0xff]  ;;  %v3080_v25 = vpack.c.bf16 %v674_v20, %v670_v19  ;;  %v676_v27 = vld [vmem:[#allocation3 + $0x380] sm:$0xff] }
  0x5b   :  { %302 = vmatprep.mubr.f32.mxu0 %v3644_v1  ;;  %2937 = vmatpush1.bf16.msra.mxu0 %v2936_v29  ;;  %v683_v23 = vld [vmem:[#allocation3 + $0x3b8] sm:$0xff]  ;;  %v680_v28 = vld [vmem:[#allocation3 + $0x3a0] sm:$0xff]  ;;  %v678_v29 = vld [vmem:[#allocation3 + $0x390] sm:$0xff] }
  0x5c   :  { %2644 = vmatmul.mubr.msk.f32.gmra.mrb[18].mxu1 %vm129_vm0, %v84_v13  ;;  %2939 = vmatprep.subr.bf16.mxu0 %v2938_v33  ;;  %v677_v13 = vld [vmem:[#allocation3 + $0x388] sm:$0xff]  ;;  %v90_v24 = vld [vmem:[%s4556_s0 + $0x78] sm:$0xff]  ;;  %v2956_v30 = vpack.c.bf16 %v680_v28, %v676_v27  ;;  %v684_v38 = vld [vmem:[#allocation3 + $0x3c0] sm:$0xff] }
  0x5d   :  { %463 = vmatprep.mubr.f32.mxu1 %v3644_v1  ;;  %3065 = vmatpush1.bf16.msra.mxu1 %v3064_v40  ;;  %v2954_v21 = vpack.c.bf16 %v681_v14, %v677_v13  ;;  %v682_v31 = vld [vmem:[#allocation3 + $0x3b0] sm:$0xff]  ;;  %v685_v33 = vld [vmem:[#allocation3 + $0x3c8] sm:$0xff]  ;;  %v687_v35 = vld [vmem:[#allocation3 + $0x3d8] sm:$0xff] }
  0x5e   :  { %2629 = vmatmul.mubr.msk.f32.gmra.mrb[20].mxu0 %vm129_vm0, %v85_v26  ;;  %3067 = vmatprep.subr.bf16.mxu1 %v3066_v41  ;;  %v3084_v32 = vpack.c.bf16 %v682_v31, %v678_v29  ;;  %v689_v34 = vld [vmem:[#allocation3 + $0x3e8] sm:$0xff]  ;;  %v691_v37 = vld [vmem:[#allocation3 + $0x3f8] sm:$0xff]  ;;  %v690_v43 = vld [vmem:[#allocation3 + $0x3f0] sm:$0xff] }
  0x5f   :  { %308 = vmatprep.mubr.f32.mxu0 %v3644_v1  ;;  %2941 = vmatpush1.bf16.msra.mxu0 %v2940_v42  ;;  %v2958_v36 = vpack.c.bf16 %v689_v34, %v685_v33  ;;  %v3086_v40 = vpack.c.bf16 %v691_v37, %v687_v35  ;;  %v686_v42 = vld [vmem:[#allocation3 + $0x3d0] sm:$0xff]  ;;  %v693_v45 = vld [vmem:[#allocation3 + $0x408] sm:$0xff]  ;;  %v695_v47 = vld [vmem:[#allocation3 + $0x418] sm:$0xff] }
  0x60   :  { %2645 = vmatmul.mubr.msk.f32.gmra.mrb[20].mxu1 %vm129_vm0, %v85_v26  ;;  %2943 = vmatprep.subr.bf16.mxu0 %v2942_v46  ;;  %v3082_v26 = vpack.c.bf16 %v683_v23, %v679_v22  ;;  %v3088_v44 = vpack.c.bf16 %v690_v43, %v686_v42  ;;  %v697_v46 = vld [vmem:[#allocation3 + $0x428] sm:$0xff]  ;;  %v699_v49 = vld [vmem:[#allocation3 + $0x438] sm:$0xff]  ;;  %v696_v60 = vld [vmem:[#allocation3 + $0x420] sm:$0xff] }
  0x61   :  { %469 = vmatprep.mubr.f32.mxu1 %v3644_v1  ;;  %3069 = vmatpush1.bf16.msra.mxu1 %v3068_v53  ;;  %v2962_v48 = vpack.c.bf16 %v697_v46, %v693_v45  ;;  %v3090_v50 = vpack.c.bf16 %v699_v49, %v695_v47  ;;  %v694_v63 = vld [vmem:[#allocation3 + $0x410] sm:$0xff]  ;;  %v707_v6 = vld [vmem:[#allocation3 + $0x478] sm:$0xff]  ;;  %v700_v11 = vld [vmem:[#allocation3 + $0x440] sm:$0xff] }
  0x62   :  { %2630 = vmatmul.mubr.msk.f32.gmra.mrb[22].mxu0 %vm129_vm0, %v86_v39  ;;  %3071 = vmatprep.subr.bf16.mxu1 %v3070_v54  ;;  %v3918_v54 = vld [vmem:[%s4558_s2] sm:$0xf]  ;;  %v698_v0 = vld [vmem:[#allocation3 + $0x430] sm:$0xff]  ;;  %v709_v20 = vld [vmem:[#allocation3 + $0x488] sm:$0xff] }
  0x63   :  { %314 = vmatprep.mubr.f32.mxu0 %v3644_v1  ;;  %2945 = vmatpush1.bf16.msra.mxu0 %v2944_v55  ;;  %v3092_v10 = vpack.c.bf16 %v698_v0, %v694_v63  ;;  %v704_v12 = vld [vmem:[#allocation3 + $0x460] sm:$0xff]  ;;  %v706_v19 = vld [vmem:[#allocation3 + $0x470] sm:$0xff]  ;;  %v713_v22 = vld [vmem:[#allocation3 + $0x4a8] sm:$0xff] }
  0x64   :  { %2646 = vmatmul.mubr.msk.f32.gmra.mrb[22].mxu1 %vm129_vm0, %v86_v39  ;;  %2947 = vmatprep.subr.bf16.mxu0 %v2946_v59  ;;  %v688_v39 = vld [vmem:[#allocation3 + $0x3e0] sm:$0xff]  ;;  %v711_v23 = vld [vmem:[#allocation3 + $0x498] sm:$0xff]  ;;  %v2968_v28 = vpack.c.bf16 %v704_v12, %v700_v11  ;;  %v721_v42 = vld [vmem:[#allocation3 + $0x4e8] sm:$0xff] }
  0x65   :  { %475 = vmatprep.mubr.f32.mxu1 %v3644_v1  ;;  %3073 = vmatpush1.bf16.msra.mxu1 %v3072_v3  ;;  %v2960_v41 = vpack.c.bf16 %v688_v39, %v684_v38  ;;  %v692_v59 = vld [vmem:[#allocation3 + $0x400] sm:$0xff]  ;;  %v710_v38 = vld [vmem:[#allocation3 + $0x490] sm:$0xff]  ;;  %v719_v43 = vld [vmem:[#allocation3 + $0x4d8] sm:$0xff] }
  0x66   :  { %2631 = vmatmul.mubr.msk.f32.gmra.mrb[24].mxu0 %vm129_vm0, %v87_v52  ;;  %3075 = vmatprep.subr.bf16.mxu1 %v3074_v4  ;;  %v705_v4 = vld [vmem:[#allocation3 + $0x468] sm:$0xff]  ;;  %v712_v31 = vld [vmem:[#allocation3 + $0x4a0] sm:$0xff]  ;;  %v714_v39 = vld [vmem:[#allocation3 + $0x4b0] sm:$0xff] }
  0x67   :  { %320 = vmatprep.mubr.f32.mxu0 %v3644_v1  ;;  %2949 = vmatpush1.bf16.msra.mxu0 %v2948_v5  ;;  %v703_v5 = vld [vmem:[#allocation3 + $0x458] sm:$0xff]  ;;  %v3100_v49 = vpack.c.bf16 %v714_v39, %v710_v38  ;;  %v718_v0 = vld [vmem:[#allocation3 + $0x4d0] sm:$0xff]  ;;  %vm4498_vm4 = vmpackc.low %vm2480_vm3, %vm2480_vm3 }
  0x68   :  { %2647 = vmatmul.mubr.msk.f32.gmra.mrb[24].mxu1 %vm129_vm0, %v87_v52  ;;  %2951 = vmatprep.subr.bf16.mxu0 %v2950_v9  ;;  %v3910_v52 = vshrl.u32 %v109_v51, 7  ;;  %v2964_v9 = vpack.c.bf16 %v696_v60, %v692_v59  ;;  %v720_v51 = vld [vmem:[#allocation3 + $0x4e0] sm:$0xff] }
  0x69   :  { %481 = vmatprep.mubr.f32.mxu1 %v3644_v1  ;;  %3077 = vmatpush1.bf16.msra.mxu1 %v3076_v16 }
  0x6a   :  { %2632 = vmatmul.mubr.msk.f32.gmra.mrb[26].mxu0 %vm129_vm0, %v88_v2  ;;  %3079 = vmatprep.subr.bf16.mxu1 %v3078_v17  ;;  %v3913_v53 = vsub.s32 0, %v3910_v52  ;;  %v3921_v55 = vsub.s32 1, %v3910_v52  ;;  %v3094_v17 = vpack.c.bf16 %v707_v6, %v703_v5  ;;  %v729_v5 = vld [vmem:[#allocation3 + $0x528] sm:$0xff]  ;;  %v727_v6 = vld [vmem:[#allocation3 + $0x518] sm:$0xff] }
  0x6b   :  { %326 = vmatprep.mubr.f32.mxu0 %v3644_v1  ;;  %2953 = vmatpush1.bf16.msra.mxu0 %v2952_v18  ;;  %v702_v18 = vld [vmem:[#allocation3 + $0x450] sm:$0xff] }
  0x6c   :  { %2648 = vmatmul.mubr.msk.f32.gmra.mrb[26].mxu1 %vm129_vm0, %v88_v2  ;;  %2955 = vmatprep.subr.bf16.mxu0 %v2954_v21  ;;  %v3925_v56 = vrot.slane %v3918_v54, %v3913_v53  ;;  %v3929_v57 = vrot.slane %v3918_v54, %v3921_v55  ;;  %v701_v2 = vld [vmem:[#allocation3 + $0x448] sm:$0xff]  ;;  %v3096_v29 = vpack.c.bf16 %v706_v19, %v702_v18 }
  0x6d   :  { %487 = vmatprep.mubr.f32.mxu1 %v3644_v1  ;;  %3081 = vmatpush1.bf16.msra.mxu1 %v3080_v25  ;;  %v2966_v16 = vpack.c.bf16 %v705_v4, %v701_v2  ;;  %v722_v2 = vld [vmem:[#allocation3 + $0x4f0] sm:$0xff] }
  0x6e   :  { %2633 = vmatmul.mubr.msk.f32.gmra.mrb[28].mxu0 %vm129_vm0, %v89_v15  ;;  %3083 = vmatprep.subr.bf16.mxu1 %v3082_v26  ;;  %v3104_v12 = vpack.c.bf16 %v722_v2, %v718_v0  ;;  %v744_v0 = vld [vmem:[#allocation3 + $0x5a0] sm:$0xff] }
  0x6f   :  { %332 = vmatprep.mubr.f32.mxu0 %v3644_v1  ;;  %2957 = vmatpush1.bf16.msra.mxu0 %v2956_v30  ;;  %v708_v30 = vld [vmem:[#allocation3 + $0x480] sm:$0xff] }
  0x70   :  { %2649 = vmatmul.mubr.msk.f32.gmra.mrb[28].mxu1 %vm129_vm0, %v89_v15  ;;  %2959 = vmatprep.subr.bf16.mxu0 %v2958_v36  ;;  %v2970_v36 = vpack.c.bf16 %v713_v22, %v709_v20  ;;  %v730_v22 = vld [vmem:[#allocation3 + $0x530] sm:$0xff] }
  0x71   :  { %493 = vmatprep.mubr.f32.mxu1 %v3644_v1  ;;  %3085 = vmatpush1.bf16.msra.mxu1 %v3084_v32 }
  0x72   :  { %2634 = vmatmul.mubr.msk.f32.gmra.mrb[30].mxu0 %vm129_vm0, %v90_v24  ;;  %3087 = vmatprep.subr.bf16.mxu1 %v3086_v40  ;;  %v717_v40 = vld [vmem:[#allocation3 + $0x4c8] sm:$0xff] }
  0x73   :  { %2961 = vmatpush1.bf16.msra.mxu0 %v2960_v41 }
  0x74   :  { %2650 = vmatmul.mubr.msk.f32.gmra.mrb[30].mxu1 %vm129_vm0, %v90_v24  ;;  %2963 = vmatprep.subr.bf16.mxu0 %v2962_v48  ;;  %v715_v24 = vld [vmem:[#allocation3 + $0x4b8] sm:$0xff]  ;;  %v2972_v48 = vpack.c.bf16 %v712_v31, %v708_v30 }
  0x75   :  { %3089 = vmatpush1.bf16.msra.mxu1 %v3088_v44  ;;  %v3098_v37 = vpack.c.bf16 %v715_v24, %v711_v23  ;;  %v723_v44 = vld [vmem:[#allocation3 + $0x4f8] sm:$0xff]  ;;  %v733_v23 = vld [vmem:[#allocation3 + $0x548] sm:$0xff] }
  0x76   :  { %3091 = vmatprep.subr.bf16.mxu1 %v3090_v50  ;;  %v716_v50 = vld [vmem:[#allocation3 + $0x4c0] sm:$0xff]  ;;  %v3102_v63 = vpack.c.bf16 %v723_v44, %v719_v43  ;;  %v734_v43 = vld [vmem:[#allocation3 + $0x550] sm:$0xff] }
  0x77   :  { %v2976_v11 = vpack.c.bf16 %v720_v51, %v716_v50  ;;  %v738_v44 = vld [vmem:[#allocation3 + $0x570] sm:$0xff]  ;;  %v747_v50 = vld [vmem:[#allocation3 + $0x5b8] sm:$0xff] }
 0x109   :  { %v244_v58 = vpop.f32.mrb[0].mxu0 }
 0x10a   :  { %v245_v61 = vadd.f32 %v244_v58, %v3925_v56  ;;  %v246_v62 = vpop.f32.mrb[1].mxu0 }
 0x10b   :  { %v247_v3 = vadd.f32 %v246_v62, %v3929_v57  ;;  %v3935_v25 = vpop.f32.mrb[0].mxu1  ;;  %v2974_v62 = vpack.c.bf16 %v721_v42, %v717_v40 }
 0x10c   :  { %v500_v13 = vmax.f32 %v245_v61, 0.0  ;;  %v3937_v32 = vpop.f32.mrb[1].mxu1 }
 0x10d   :  { %v501_v7 = vmax.f32 %v247_v3, 0.0  ;;  %v250_v8 = vpop.f32.mrb[2].mxu0  ;;  %v725_v3 = vld [vmem:[#allocation3 + $0x508] sm:$0xff] }
 0x10e   :  { %v251_v14 = vadd.f32 %v250_v8, %v3925_v56  ;;  %v252_v15 = vpop.f32.mrb[3].mxu0  ;;  %v2978_v19 = vpack.c.bf16 %v729_v5, %v725_v3 }
 0x10f   :  { %v253_v21 = vadd.f32 %v252_v15, %v3929_v57  ;;  %906 = vmatprep.mubr.f32.mxu0 %v501_v7  ;;  %1228 = vmatprep.mubr.f32.mxu1 %v501_v7  ;;  %v3941_v45 = vpop.f32.mrb[2].mxu1  ;;  %v731_v7 = vld [vmem:[#allocation3 + $0x538] sm:$0xff] }
 0x110   :  { %907 = vmatmul.mubr.f32.vlgmr.msra.gmra.mrb[32].mxu0 %v500_v13  ;;  %1229 = vmatmul.mubr.f32.vlgmr.msra.gmra.mrb[32].mxu1 %v500_v13  ;;  %v504_v33 = vmax.f32 %v251_v14, 0.0  ;;  %v3943_v58 = vpop.f32.mrb[3].mxu1  ;;  %v724_v13 = vld [vmem:[#allocation3 + $0x500] sm:$0xff]  ;;  %v3106_v20 = vpack.c.bf16 %v731_v7, %v727_v6 }
 0x111   :  { %v505_v26 = vmax.f32 %v253_v21, 0.0  ;;  %v256_v27 = vpop.f32.mrb[4].mxu0  ;;  %2965 = vmatpush1.bf16.msra.mxu0 %v2964_v9  ;;  %3093 = vmatpush1.bf16.msra.mxu1 %v3092_v10  ;;  %v728_v14 = vld [vmem:[#allocation3 + $0x520] sm:$0xff]  ;;  %v726_v21 = vld [vmem:[#allocation3 + $0x510] sm:$0xff] }
 0x112   :  { %v257_v34 = vadd.f32 %v256_v27, %v3925_v56  ;;  %v258_v35 = vpop.f32.mrb[5].mxu0  ;;  %2967 = vmatprep.subr.bf16.mxu0 %v2966_v16  ;;  %3095 = vmatprep.subr.bf16.mxu1 %v3094_v17  ;;  %v735_v27 = vld [vmem:[#allocation3 + $0x558] sm:$0xff] }
 0x113   :  { %v259_v41 = vadd.f32 %v258_v35, %v3929_v57  ;;  %912 = vmatprep.mubr.f32.mxu0 %v505_v26  ;;  %1234 = vmatprep.mubr.f32.mxu1 %v505_v26  ;;  %v3947_v8 = vpop.f32.mrb[4].mxu1  ;;  %v737_v26 = vld [vmem:[#allocation3 + $0x568] sm:$0xff]  ;;  %v732_v35 = vld [vmem:[#allocation3 + $0x540] sm:$0xff] }
 0x114   :  { %913 = vmatmul.mubr.f32.gmra.mrb[34].mxu0 %v504_v33  ;;  %1235 = vmatmul.mubr.f32.gmra.mrb[34].mxu1 %v504_v33  ;;  %v508_v59 = vmax.f32 %v257_v34, 0.0  ;;  %v3949_v15 = vpop.f32.mrb[5].mxu1  ;;  %v2980_v33 = vpack.c.bf16 %v728_v14, %v724_v13  ;;  %v3108_v34 = vpack.c.bf16 %v730_v22, %v726_v21  ;;  %v753_v13 = vld [vmem:[#allocation3 + $0x5e8] sm:$0xff]  ;;  %v751_v14 = vld [vmem:[#allocation3 + $0x5d8] sm:$0xff]  ;;  %v748_v22 = vld [vmem:[#allocation3 + $0x5c0] sm:$0xff] }
 0x115   :  { %v509_v46 = vmax.f32 %v259_v41, 0.0  ;;  %v262_v47 = vpop.f32.mrb[6].mxu0  ;;  %2969 = vmatpush1.bf16.msra.mxu0 %v2968_v28  ;;  %3097 = vmatpush1.bf16.msra.mxu1 %v3096_v29  ;;  %v739_v28 = vld [vmem:[#allocation3 + $0x578] sm:$0xff]  ;;  %v2982_v41 = vpack.c.bf16 %v737_v26, %v733_v23  ;;  %v752_v23 = vld [vmem:[#allocation3 + $0x5e0] sm:$0xff] }
 0x116   :  { %v263_v60 = vadd.f32 %v262_v47, %v3925_v56  ;;  %v264_v61 = vpop.f32.mrb[7].mxu0  ;;  %2971 = vmatprep.subr.bf16.mxu0 %v2970_v36  ;;  %3099 = vmatprep.subr.bf16.mxu1 %v3098_v37  ;;  %v736_v36 = vld [vmem:[#allocation3 + $0x560] sm:$0xff]  ;;  %v3110_v42 = vpack.c.bf16 %v739_v28, %v735_v27 }
 0x117   :  { %v265_v4 = vadd.f32 %v264_v61, %v3929_v57  ;;  %918 = vmatprep.mubr.f32.mxu0 %v509_v46  ;;  %1240 = vmatprep.mubr.f32.mxu1 %v509_v46  ;;  %v3953_v29 = vpop.f32.mrb[6].mxu1  ;;  %v741_v46 = vld [vmem:[#allocation3 + $0x588] sm:$0xff]  ;;  %v2984_v61 = vpack.c.bf16 %v736_v36, %v732_v35 }
 0x118   :  { %919 = vmatmul.mubr.f32.gmra.mrb[36].mxu0 %v508_v59  ;;  %1241 = vmatmul.mubr.f32.gmra.mrb[36].mxu1 %v508_v59  ;;  %v512_v16 = vmax.f32 %v263_v60, 0.0  ;;  %v3955_v37 = vpop.f32.mrb[7].mxu1  ;;  %v757_v35 = vld [vmem:[#allocation3 + $0x608] sm:$0xff] }
 0x119   :  { %v513_v9 = vmax.f32 %v265_v4, 0.0  ;;  %v268_v10 = vpop.f32.mrb[8].mxu0  ;;  %2973 = vmatpush1.bf16.msra.mxu0 %v2972_v48  ;;  %3101 = vmatpush1.bf16.msra.mxu1 %v3100_v49  ;;  %v745_v48 = vld [vmem:[#allocation3 + $0x5a8] sm:$0xff]  ;;  %v743_v49 = vld [vmem:[#allocation3 + $0x598] sm:$0xff] }
 0x11a   :  { %v269_v17 = vadd.f32 %v268_v10, %v3925_v56  ;;  %v270_v18 = vpop.f32.mrb[9].mxu0  ;;  %2975 = vmatprep.subr.bf16.mxu0 %v2974_v62  ;;  %3103 = vmatprep.subr.bf16.mxu1 %v3102_v63  ;;  %v3112_v62 = vpack.c.bf16 %v738_v44, %v734_v43  ;;  %v740_v63 = vld [vmem:[#allocation3 + $0x580] sm:$0xff]  ;;  %v2986_v6 = vpack.c.bf16 %v745_v48, %v741_v46  ;;  %v746_v10 = vld [vmem:[#allocation3 + $0x5b0] sm:$0xff] }
 0x11b   :  { %v271_v24 = vadd.f32 %v270_v18, %v3929_v57  ;;  %924 = vmatprep.mubr.f32.mxu0 %v513_v9  ;;  %1246 = vmatprep.mubr.f32.mxu1 %v513_v9  ;;  %v3959_v51 = vpop.f32.mrb[8].mxu1  ;;  %v3114_v7 = vpack.c.bf16 %v747_v50, %v743_v49  ;;  %v742_v9 = vld [vmem:[#allocation3 + $0x590] sm:$0xff]  ;;  %v2992_v44 = vpack.c.bf16 %v752_v23, %v748_v22  ;;  %v760_v48 = vld [vmem:[#allocation3 + $0x620] sm:$0xff] }
 0x11c   :  { %925 = vmatmul.mubr.f32.gmra.mrb[38].mxu0 %v512_v16  ;;  %1247 = vmatmul.mubr.f32.gmra.mrb[38].mxu1 %v512_v16  ;;  %v516_v38 = vmax.f32 %v269_v17, 0.0  ;;  %v3961_v2 = vpop.f32.mrb[9].mxu1  ;;  %v755_v16 = vld [vmem:[#allocation3 + $0x5f8] sm:$0xff]  ;;  %v3116_v21 = vpack.c.bf16 %v746_v10, %v742_v9 }
 0x11d   :  { %v517_v30 = vmax.f32 %v271_v24, 0.0  ;;  %v274_v31 = vpop.f32.mrb[10].mxu0  ;;  %2977 = vmatpush1.bf16.msra.mxu0 %v2976_v11  ;;  %3105 = vmatpush1.bf16.msra.mxu1 %v3104_v12  ;;  %v749_v11 = vld [vmem:[#allocation3 + $0x5c8] sm:$0xff] }
 0x11e   :  { %v275_v39 = vadd.f32 %v274_v31, %v3925_v56  ;;  %v276_v40 = vpop.f32.mrb[11].mxu0  ;;  %2979 = vmatprep.subr.bf16.mxu0 %v2978_v19  ;;  %3107 = vmatprep.subr.bf16.mxu1 %v3106_v20  ;;  %v2988_v20 = vpack.c.bf16 %v744_v0, %v740_v63  ;;  %v3118_v31 = vpack.c.bf16 %v755_v16, %v751_v14  ;;  %v758_v63 = vld [vmem:[#allocation3 + $0x610] sm:$0xff]  ;;  %v764_v14 = vld [vmem:[#allocation3 + $0x640] sm:$0xff] }
 0x11f   :  { %v277_v47 = vadd.f32 %v276_v40, %v3929_v57  ;;  %930 = vmatprep.mubr.f32.mxu0 %v517_v30  ;;  %1252 = vmatprep.mubr.f32.mxu1 %v517_v30  ;;  %v3965_v17 = vpop.f32.mrb[10].mxu1  ;;  %v2990_v30 = vpack.c.bf16 %v753_v13, %v749_v11  ;;  %v763_v40 = vld [vmem:[#allocation3 + $0x638] sm:$0xff]  ;;  %v762_v0 = vld [vmem:[#allocation3 + $0x630] sm:$0xff]  ;;  %v768_v16 = vld [vmem:[#allocation3 + $0x660] sm:$0xff] }
 0x120   :  { %931 = vmatmul.mubr.f32.gmra.mrb[40].mxu0 %v516_v38  ;;  %1253 = vmatmul.mubr.f32.gmra.mrb[40].mxu1 %v516_v38  ;;  %v520_v3 = vmax.f32 %v275_v39, 0.0  ;;  %v3967_v24 = vpop.f32.mrb[11].mxu1  ;;  %v761_v38 = vld [vmem:[#allocation3 + $0x628] sm:$0xff]  ;;  %v759_v39 = vld [vmem:[#allocation3 + $0x618] sm:$0xff]  ;;  %v3124_v13 = vpack.c.bf16 %v762_v0, %v758_v63 }
 0x121   :  { %v521_v59 = vmax.f32 %v277_v47, 0.0  ;;  %v280_v60 = vpop.f32.mrb[12].mxu0  ;;  %2981 = vmatpush1.bf16.msra.mxu0 %v2980_v33  ;;  %3109 = vmatpush1.bf16.msra.mxu1 %v3108_v34  ;;  %v750_v33 = vld [vmem:[#allocation3 + $0x5d0] sm:$0xff]  ;;  %v756_v47 = vld [vmem:[#allocation3 + $0x600] sm:$0xff]  ;;  %v785_v0 = vld [vmem:[#allocation3 + $0x6e8] sm:$0xff] }
 0x122   :  { %v281_v4 = vadd.f32 %v280_v60, %v3925_v56  ;;  %v282_v5 = vpop.f32.mrb[13].mxu0  ;;  %2983 = vmatprep.subr.bf16.mxu0 %v2982_v41  ;;  %3111 = vmatprep.subr.bf16.mxu1 %v3110_v42  ;;  %v754_v34 = vld [vmem:[#allocation3 + $0x5f0] sm:$0xff] }
 0x123   :  { %v283_v12 = vadd.f32 %v282_v5, %v3929_v57  ;;  %936 = vmatprep.mubr.f32.mxu0 %v521_v59  ;;  %1258 = vmatprep.mubr.f32.mxu1 %v521_v59  ;;  %v3971_v41 = vpop.f32.mrb[12].mxu1  ;;  %v3120_v46 = vpack.c.bf16 %v754_v34, %v750_v33  ;;  %v769_v5 = vld [vmem:[#allocation3 + $0x668] sm:$0xff]  ;;  %v775_v33 = vld [vmem:[#allocation3 + $0x698] sm:$0xff] }
 0x124   :  { %937 = vmatmul.mubr.f32.gmra.mrb[42].mxu0 %v520_v3  ;;  %1259 = vmatmul.mubr.f32.gmra.mrb[42].mxu1 %v520_v3  ;;  %v524_v26 = vmax.f32 %v281_v4, 0.0  ;;  %v3973_v49 = vpop.f32.mrb[13].mxu1  ;;  %v765_v3 = vld [vmem:[#allocation3 + $0x648] sm:$0xff]  ;;  %v779_v34 = vld [vmem:[#allocation3 + $0x6b8] sm:$0xff] }
 0x125   :  { %v525_v18 = vmax.f32 %v283_v12, 0.0  ;;  %v286_v19 = vpop.f32.mrb[14].mxu0  ;;  %2985 = vmatpush1.bf16.msra.mxu0 %v2984_v61  ;;  %3113 = vmatpush1.bf16.msra.mxu1 %v3112_v62  ;;  %v2994_v61 = vpack.c.bf16 %v761_v38, %v757_v35  ;;  %v3122_v62 = vpack.c.bf16 %v763_v40, %v759_v39  ;;  %v2996_v12 = vpack.c.bf16 %v760_v48, %v756_v47 }
 0x126   :  { %v287_v27 = vadd.f32 %v286_v19, %v3925_v56  ;;  %v288_v28 = vpop.f32.mrb[15].mxu0  ;;  %2987 = vmatprep.subr.bf16.mxu0 %v2986_v6  ;;  %3115 = vmatprep.subr.bf16.mxu1 %v3114_v7  ;;  %v767_v6 = vld [vmem:[#allocation3 + $0x658] sm:$0xff]  ;;  %v2998_v22 = vpack.c.bf16 %v769_v5, %v765_v3  ;;  %v3000_v39 = vpack.c.bf16 %v768_v16, %v764_v14 }
 0x127   :  { %v289_v36 = vadd.f32 %v288_v28, %v3929_v57  ;;  %942 = vmatprep.mubr.f32.mxu0 %v525_v18  ;;  %1264 = vmatprep.mubr.f32.mxu1 %v525_v18  ;;  %v771_v7 = vld [vmem:[#allocation3 + $0x678] sm:$0xff]  ;;  %v3977_v9 = vpop.f32.mrb[14].mxu1  ;;  %v773_v28 = vld [vmem:[#allocation3 + $0x688] sm:$0xff] }
 0x128   :  { %943 = vmatmul.mubr.f32.gmra.mrb[44].mxu0 %v524_v26  ;;  %1265 = vmatmul.mubr.f32.gmra.mrb[44].mxu1 %v524_v26  ;;  %v528_v50 = vmax.f32 %v287_v27, 0.0  ;;  %v3979_v18 = vpop.f32.mrb[15].mxu1  ;;  %v3126_v23 = vpack.c.bf16 %v771_v7, %v767_v6  ;;  %v766_v26 = vld [vmem:[#allocation3 + $0x650] sm:$0xff]  ;;  %v783_v3 = vld [vmem:[#allocation3 + $0x6d8] sm:$0xff] }
 0x129   :  { %v529_v42 = vmax.f32 %v289_v36, 0.0  ;;  %v292_v43 = vpop.f32.mrb[16].mxu0  ;;  %2989 = vmatpush1.bf16.msra.mxu0 %v2988_v20  ;;  %3117 = vmatpush1.bf16.msra.mxu1 %v3116_v21  ;;  %v770_v27 = vld [vmem:[#allocation3 + $0x670] sm:$0xff] }
 0x12a   :  { %v293_v59 = vadd.f32 %v292_v43, %v3925_v56  ;;  %v294_v60 = vpop.f32.mrb[17].mxu0  ;;  %2991 = vmatprep.subr.bf16.mxu0 %v2990_v30  ;;  %3119 = vmatprep.subr.bf16.mxu1 %v3118_v31  ;;  %v777_v31 = vld [vmem:[#allocation3 + $0x6a8] sm:$0xff]  ;;  %v3128_v40 = vpack.c.bf16 %v770_v27, %v766_v26  ;;  %v776_v43 = vld [vmem:[#allocation3 + $0x6a0] sm:$0xff]  ;;  %v786_v26 = vld [vmem:[#allocation3 + $0x6f0] sm:$0xff] }
 0x12b   :  { %v295_v4 = vadd.f32 %v294_v60, %v3929_v57  ;;  %948 = vmatprep.mubr.f32.mxu0 %v529_v42  ;;  %1270 = vmatprep.mubr.f32.mxu1 %v529_v42  ;;  %v3983_v35 = vpop.f32.mrb[16].mxu1  ;;  %v772_v42 = vld [vmem:[#allocation3 + $0x680] sm:$0xff]  ;;  %v774_v60 = vld [vmem:[#allocation3 + $0x690] sm:$0xff]  ;;  %v789_v27 = vld [vmem:[#allocation3 + $0x708] sm:$0xff] }
 0x12c   :  { %949 = vmatmul.mubr.f32.gmra.mrb[46].mxu0 %v528_v50  ;;  %1271 = vmatmul.mubr.f32.gmra.mrb[46].mxu1 %v528_v50  ;;  %v532_v19 = vmax.f32 %v293_v59, 0.0  ;;  %v3002_v50 = vpack.c.bf16 %v777_v31, %v773_v28  ;;  %v3130_v59 = vpack.c.bf16 %v779_v34, %v775_v33  ;;  %v791_v31 = vld [vmem:[#allocation3 + $0x718] sm:$0xff] }
 0x12d   :  { %v533_v10 = vmax.f32 %v295_v4, 0.0  ;;  %v298_v11 = vpop.f32.mrb[18].mxu0  ;;  %2993 = vmatpush1.bf16.msra.mxu0 %v2992_v44  ;;  %3121 = vmatpush1.bf16.msra.mxu1 %v3120_v46  ;;  %v3985_v44 = vpop.f32.mrb[17].mxu1  ;;  %v787_v4 = vld [vmem:[#allocation3 + $0x6f8] sm:$0xff] }
 0x12e   :  { %v299_v20 = vadd.f32 %v298_v11, %v3925_v56  ;;  %v300_v21 = vpop.f32.mrb[19].mxu0  ;;  %2995 = vmatprep.subr.bf16.mxu0 %v2994_v61  ;;  %3123 = vmatprep.subr.bf16.mxu1 %v3122_v62  ;;  %v778_v61 = vld [vmem:[#allocation3 + $0x6b0] sm:$0xff]  ;;  %v781_v62 = vld [vmem:[#allocation3 + $0x6c8] sm:$0xff]  ;;  %v795_v33 = vld [vmem:[#allocation3 + $0x738] sm:$0xff] }
 0x12f   :  { %v301_v30 = vadd.f32 %v300_v21, %v3929_v57  ;;  %954 = vmatprep.mubr.f32.mxu0 %v533_v10  ;;  %1276 = vmatprep.mubr.f32.mxu1 %v533_v10  ;;  %v3989_v5 = vpop.f32.mrb[18].mxu1  ;;  %v3004_v10 = vpack.c.bf16 %v776_v43, %v772_v42  ;;  %v3132_v11 = vpack.c.bf16 %v778_v61, %v774_v60  ;;  %v788_v42 = vld [vmem:[#allocation3 + $0x700] sm:$0xff] }
 0x130   :  { %955 = vmatmul.mubr.f32.gmra.mrb[48].mxu0 %v532_v19  ;;  %1277 = vmatmul.mubr.f32.gmra.mrb[48].mxu1 %v532_v19  ;;  %v536_v46 = vmax.f32 %v299_v20, 0.0  ;;  %v3991_v14 = vpop.f32.mrb[19].mxu1  ;;  %v3006_v21 = vpack.c.bf16 %v785_v0, %v781_v62  ;;  %v792_v43 = vld [vmem:[#allocation3 + $0x720] sm:$0xff]  ;;  %v3138_v61 = vpack.c.bf16 %v795_v33, %v791_v31  ;;  %v794_v62 = vld [vmem:[#allocation3 + $0x730] sm:$0xff]  ;;  %v801_v0 = vld [vmem:[#allocation3 + $0x768] sm:$0xff] }
 0x131   :  { %v537_v36 = vmax.f32 %v301_v30, 0.0  ;;  %v304_v38 = vpop.f32.mrb[20].mxu0  ;;  %2997 = vmatpush1.bf16.msra.mxu0 %v2996_v12  ;;  %3125 = vmatpush1.bf16.msra.mxu1 %v3124_v13  ;;  %v780_v12 = vld [vmem:[#allocation3 + $0x6c0] sm:$0xff]  ;;  %v793_v30 = vld [vmem:[#allocation3 + $0x728] sm:$0xff] }
 0x132   :  { %v305_v47 = vadd.f32 %v304_v38, %v3925_v56  ;;  %v306_v48 = vpop.f32.mrb[21].mxu0  ;;  %2999 = vmatprep.subr.bf16.mxu0 %v2998_v22  ;;  %3127 = vmatprep.subr.bf16.mxu1 %v3126_v23  ;;  %v784_v13 = vld [vmem:[#allocation3 + $0x6e0] sm:$0xff]  ;;  %v3134_v22 = vpack.c.bf16 %v787_v4, %v783_v3  ;;  %v782_v23 = vld [vmem:[#allocation3 + $0x6d0] sm:$0xff]  ;;  %v3010_v60 = vpack.c.bf16 %v793_v30, %v789_v27  ;;  %v799_v4 = vld [vmem:[#allocation3 + $0x758] sm:$0xff] }
 0x133   :  { %v307_v63 = vadd.f32 %v306_v48, %v3929_v57  ;;  %960 = vmatprep.mubr.f32.mxu0 %v537_v36  ;;  %1282 = vmatprep.mubr.f32.mxu1 %v537_v36  ;;  %v3995_v34 = vpop.f32.mrb[20].mxu1  ;;  %v802_v30 = vld [vmem:[#allocation3 + $0x770] sm:$0xff]  ;;  %v805_v31 = vld [vmem:[#allocation3 + $0x788] sm:$0xff] }
 0x134   :  { %961 = vmatmul.mubr.f32.gmra.mrb[50].mxu0 %v536_v46  ;;  %1283 = vmatmul.mubr.f32.gmra.mrb[50].mxu1 %v536_v46  ;;  %v540_v16 = vmax.f32 %v305_v47, 0.0  ;;  %v790_v46 = vld [vmem:[#allocation3 + $0x710] sm:$0xff]  ;;  %v3997_v47 = vpop.f32.mrb[21].mxu1  ;;  %v809_v33 = vld [vmem:[#allocation3 + $0x7a8] sm:$0xff] }
 0x135   :  { %v541_v6 = vmax.f32 %v307_v63, 0.0  ;;  %v310_v7 = vpop.f32.mrb[22].mxu0  ;;  %3001 = vmatpush1.bf16.msra.mxu0 %v3000_v39  ;;  %3129 = vmatpush1.bf16.msra.mxu1 %v3128_v40  ;;  %v3008_v39 = vpack.c.bf16 %v784_v13, %v780_v12  ;;  %v3136_v40 = vpack.c.bf16 %v786_v26, %v782_v23  ;;  %v797_v63 = vld [vmem:[#allocation3 + $0x748] sm:$0xff]  ;;  %v3012_v12 = vpack.c.bf16 %v792_v43, %v788_v42 }
 0x136   :  { %v311_v19 = vadd.f32 %v310_v7, %v3925_v56  ;;  %v312_v20 = vpop.f32.mrb[23].mxu0  ;;  %3003 = vmatprep.subr.bf16.mxu0 %v3002_v50  ;;  %3131 = vmatprep.subr.bf16.mxu1 %v3130_v59  ;;  %v3140_v13 = vpack.c.bf16 %v794_v62, %v790_v46  ;;  %v119_v42 = vsub.s32 2, %v3910_v52  ;;  %v808_v62 = vld [vmem:[#allocation3 + $0x7a0] sm:$0xff] }
 0x137   :  { %v313_v28 = vadd.f32 %v312_v20, %v3929_v57  ;;  %966 = vmatprep.mubr.f32.mxu0 %v541_v6  ;;  %1288 = vmatprep.mubr.f32.mxu1 %v541_v6  ;;  %v803_v6 = vld [vmem:[#allocation3 + $0x778] sm:$0xff]  ;;  %v4001_v7 = vpop.f32.mrb[22].mxu1  ;;  %v800_v20 = vld [vmem:[#allocation3 + $0x760] sm:$0xff] }
 0x138   :  { %967 = vmatmul.mubr.f32.gmra.mrb[52].mxu0 %v540_v16  ;;  %1289 = vmatmul.mubr.f32.gmra.mrb[52].mxu1 %v540_v16  ;;  %v544_v48 = vmax.f32 %v311_v19, 0.0  ;;  %v3014_v16 = vpack.c.bf16 %v801_v0, %v797_v63  ;;  %v796_v19 = vld [vmem:[#allocation3 + $0x740] sm:$0xff]  ;;  %v806_v63 = vld [vmem:[#allocation3 + $0x790] sm:$0xff] }
 0x139   :  { %v545_v36 = vmax.f32 %v313_v28, 0.0  ;;  %v316_v38 = vpop.f32.mrb[24].mxu0  ;;  %3005 = vmatpush1.bf16.msra.mxu0 %v3004_v10  ;;  %3133 = vmatpush1.bf16.msra.mxu1 %v3132_v11  ;;  %v3142_v28 = vpack.c.bf16 %v803_v6, %v799_v4 }
 0x13a   :  { %v317_v50 = vadd.f32 %v316_v38, %v3925_v56  ;;  %v318_v59 = vpop.f32.mrb[25].mxu0  ;;  %3007 = vmatprep.subr.bf16.mxu0 %v3006_v21  ;;  %3135 = vmatprep.subr.bf16.mxu1 %v3134_v22  ;;  %v798_v21 = vld [vmem:[#allocation3 + $0x750] sm:$0xff]  ;;  %v4003_v22 = vpop.f32.mrb[23].mxu1 }
 0x13b   :  { %v319_v3 = vadd.f32 %v318_v59, %v3929_v57  ;;  %972 = vmatprep.mubr.f32.mxu0 %v545_v36  ;;  %1294 = vmatprep.mubr.f32.mxu1 %v545_v36  ;;  %v123_v36 = vsub.s32 3, %v3910_v52  ;;  %v4009_v43 = vpop.f32.mrb[24].mxu1  ;;  %v3144_v59 = vpack.c.bf16 %v802_v30, %v798_v21  ;;  %v815_v21 = vld [vmem:[#allocation3 + $0x7d8] sm:$0xff]  ;;  %v4025_v30 = vrot.slane %v3918_v54, %v119_v42 }
 0x13c   :  { %973 = vmatmul.mubr.f32.gmra.mrb[54].mxu0 %v544_v48  ;;  %1295 = vmatmul.mubr.f32.gmra.mrb[54].mxu1 %v544_v48  ;;  %v548_v23 = vmax.f32 %v317_v50, 0.0  ;;  %v3016_v50 = vpack.c.bf16 %v800_v20, %v796_v19  ;;  %v4011_v0 = vpop.f32.mrb[25].mxu1  ;;  %v817_v19 = vld [vmem:[#allocation3 + $0x7e8] sm:$0xff] }
 0x13d   :  { %v549_v10 = vmax.f32 %v319_v3, 0.0  ;;  %v322_v11 = vpop.f32.mrb[26].mxu0  ;;  %3009 = vmatpush1.bf16.msra.mxu0 %v3008_v39  ;;  %3137 = vmatpush1.bf16.msra.mxu1 %v3136_v40  ;;  %v807_v39 = vld [vmem:[#allocation3 + $0x798] sm:$0xff] }
 0x13e   :  { %v323_v26 = vadd.f32 %v322_v11, %v3925_v56  ;;  %v324_v27 = vpop.f32.mrb[27].mxu0  ;;  %3011 = vmatprep.subr.bf16.mxu0 %v3010_v60  ;;  %3139 = vmatprep.subr.bf16.mxu1 %v3138_v61  ;;  %v811_v40 = vld [vmem:[#allocation3 + $0x7b8] sm:$0xff]  ;;  %v3018_v60 = vpack.c.bf16 %v809_v33, %v805_v31  ;;  %v804_v61 = vld [vmem:[#allocation3 + $0x780] sm:$0xff]  ;;  %v4017_v11 = vrot.slane %v3918_v54, %v123_v36 }
 0x13f   :  { %v325_v38 = vadd.f32 %v324_v27, %v3929_v57  ;;  %978 = vmatprep.mubr.f32.mxu0 %v549_v10  ;;  %1300 = vmatprep.mubr.f32.mxu1 %v549_v10  ;;  %v3146_v10 = vpack.c.bf16 %v811_v40, %v807_v39 }
 0x140   :  { %979 = vmatmul.mubr.f32.gmra.mrb[56].mxu0 %v548_v23  ;;  %1301 = vmatmul.mubr.f32.gmra.mrb[56].mxu1 %v548_v23  ;;  %v552_v3 = vmax.f32 %v323_v26, 0.0  ;;  %v819_v23 = vld [vmem:[#allocation3 + $0x7f8] sm:$0xff]  ;;  %v3020_v26 = vpack.c.bf16 %v808_v62, %v804_v61  ;;  %v816_v61 = vld [vmem:[#allocation3 + $0x7e0] sm:$0xff]  ;;  %v814_v62 = vld [vmem:[#allocation3 + $0x7d0] sm:$0xff] }
 0x141   :  { %v553_v46 = vmax.f32 %v325_v38, 0.0  ;;  %v328_v48 = vpop.f32.mrb[28].mxu0  ;;  %3013 = vmatpush1.bf16.msra.mxu0 %v3012_v12  ;;  %3141 = vmatpush1.bf16.msra.mxu1 %v3140_v13  ;;  %v810_v12 = vld [vmem:[#allocation3 + $0x7b0] sm:$0xff]  ;;  %v813_v13 = vld [vmem:[#allocation3 + $0x7c8] sm:$0xff]  ;;  %v812_v38 = vld [vmem:[#allocation3 + $0x7c0] sm:$0xff] }
 0x142   :  { %v329_v4 = vadd.f32 %v328_v48, %v3925_v56  ;;  %v330_v6 = vpop.f32.mrb[29].mxu0  ;;  %3015 = vmatprep.subr.bf16.mxu0 %v3014_v16  ;;  %3143 = vmatprep.subr.bf16.mxu1 %v3142_v28  ;;  %v4020_v16 = vpop.f32.mrb[26].mxu1  ;;  %v3148_v31 = vpack.c.bf16 %v810_v12, %v806_v63  ;;  %v3022_v33 = vpack.c.bf16 %v817_v19, %v813_v13 }
 0x143   :  { %v331_v20 = vadd.f32 %v330_v6, %v3929_v57  ;;  %984 = vmatprep.mubr.f32.mxu0 %v553_v46  ;;  %1306 = vmatprep.mubr.f32.mxu1 %v553_v46  ;;  %v4027_v39 = vpop.f32.mrb[27].mxu1 }
 0x144   :  { %985 = vmatmul.mubr.f32.gmra.mrb[58].mxu0 %v552_v3  ;;  %1307 = vmatmul.mubr.f32.gmra.mrb[58].mxu1 %v552_v3  ;;  %v556_v40 = vmax.f32 %v329_v4, 0.0  ;;  %v818_v3 = vld [vmem:[#allocation3 + $0x7f0] sm:$0xff]  ;;  %v4033_v63 = vpop.f32.mrb[28].mxu1  ;;  %v1551_v4 = vld [vmem:[#allocation6 + $0x8] sm:$0xff] }
 0x145   :  { %v557_v27 = vmax.f32 %v331_v20, 0.0  ;;  %v334_v28 = vpop.f32.mrb[30].mxu0  ;;  %3017 = vmatpush1.bf16.msra.mxu0 %v3016_v50  ;;  %3145 = vmatpush1.bf16.msra.mxu1 %v3144_v59  ;;  %v408_v50 = vadd.f32 %v3937_v32, %v4017_v11  ;;  %v3150_v59 = vpack.c.bf16 %v819_v23, %v815_v21  ;;  %v414_v32 = vadd.f32 %v3943_v58, %v4017_v11  ;;  %v4037_v12 = vpop.f32.mrb[29].mxu1  ;;  %v1550_v21 = vld [vmem:[#allocation6] sm:$0xff]  ;;  %v1552_v23 = vld [vmem:[#allocation6 + $0x10] sm:$0xff]  ;;  %v1555_v58 = vld [vmem:[#allocation6 + $0x28] sm:$0xff] }
 0x146   :  { %v335_v46 = vadd.f32 %v334_v28, %v3925_v56  ;;  %v336_v48 = vpop.f32.mrb[31].mxu0  ;;  %3019 = vmatprep.subr.bf16.mxu0 %v3018_v60  ;;  %3147 = vmatprep.subr.bf16.mxu1 %v3146_v10  ;;  %v1553_v56 = vld [vmem:[#allocation6 + $0x18] sm:$0xff]  ;;  %v3024_v60 = vpack.c.bf16 %v816_v61, %v812_v38  ;;  %v3152_v10 = vpack.c.bf16 %v818_v3, %v814_v62 }
 0x147   :  { %v337_v54 = vadd.f32 %v336_v48, %v3929_v57  ;;  %990 = vmatprep.mubr.f32.mxu0 %v557_v27  ;;  %1312 = vmatprep.mubr.f32.mxu1 %v557_v27  ;;  %v406_v57 = vadd.f32 %v3935_v25, %v4025_v30  ;;  %v503_v19 = vmax.f32 %v408_v50, 0.0  ;;  %v3154_v20 = vpack.c.bf16 %v1553_v56, %v1551_v4  ;;  %v1557_v27 = vld [vmem:[#allocation6 + $0x38] sm:$0xff]  ;;  %v1554_v48 = vld [vmem:[#allocation6 + $0x20] sm:$0xff]  ;;  %v1556_v50 = vld [vmem:[#allocation6 + $0x30] sm:$0xff] }
 0x148   :  { %991 = vmatmul.mubr.f32.gmra.mrb[60].mxu0 %v556_v40  ;;  %1313 = vmatmul.mubr.f32.gmra.mrb[60].mxu1 %v556_v40  ;;  %v560_v13 = vmax.f32 %v335_v46, 0.0  ;;  %v507_v28 = vmax.f32 %v414_v32, 0.0  ;;  %v420_v25 = vadd.f32 %v3949_v15, %v4017_v11  ;;  %v412_v38 = vadd.f32 %v3941_v45, %v4025_v30  ;;  %v1561_v61 = vld [vmem:[#allocation6 + $0x58] sm:$0xff]  ;;  %v1558_v56 = vld [vmem:[#allocation6 + $0x40] sm:$0xff]  ;;  %v1563_v32 = vld [vmem:[#allocation6 + $0x68] sm:$0xff] }
 0x149   :  { %v561_v6 = vmax.f32 %v337_v54, 0.0  ;;  %3021 = vmatpush1.bf16.msra.mxu0 %v3020_v26  ;;  %3149 = vmatpush1.bf16.msra.mxu1 %v3148_v31  ;;  %v4041_v26 = vpop.f32.mrb[30].mxu1  ;;  %v3156_v40 = vpack.c.bf16 %v1552_v23, %v1550_v21  ;;  %v3158_v46 = vpack.c.bf16 %v1557_v27, %v1555_v58  ;;  %v426_v15 = vadd.f32 %v3955_v37, %v4017_v11  ;;  %v1564_v21 = vld [vmem:[#allocation6 + $0x70] sm:$0xff]  ;;  %v1567_v23 = vld [vmem:[#allocation6 + $0x88] sm:$0xff]  ;;  %v1569_v58 = vld [vmem:[#allocation6 + $0x98] sm:$0xff] }
 0x14a   :  { %3023 = vmatprep.subr.bf16.mxu0 %v3022_v33  ;;  %3151 = vmatprep.subr.bf16.mxu1 %v3150_v59  ;;  %v4045_v31 = vpop.f32.mrb[31].mxu1  ;;  %v502_v33 = vmax.f32 %v406_v57, 0.0  ;;  %v1559_v59 = vld [vmem:[#allocation6 + $0x48] sm:$0xff]  ;;  %v511_v62 = vmax.f32 %v420_v25, 0.0  ;;  %v506_v3 = vmax.f32 %v412_v38, 0.0  ;;  %v418_v45 = vadd.f32 %v3947_v8, %v4025_v30  ;;  %v1566_v38 = vld [vmem:[#allocation6 + $0x80] sm:$0xff] }
 0x14b   :  { %996 = vmatprep.mubr.f32.mxu0 %v561_v6  ;;  %1318 = vmatprep.mubr.f32.mxu1 %v561_v6  ;;  %v3160_v54 = vpack.c.bf16 %v1556_v50, %v1554_v48  ;;  %v3162_v4 = vpack.c.bf16 %v1561_v61, %v1559_v59  ;;  %v1560_v6 = vld [vmem:[#allocation6 + $0x50] sm:$0xff]  ;;  %v432_v37 = vadd.f32 %v3961_v2, %v4017_v11  ;;  %v1573_v48 = vld [vmem:[#allocation6 + $0xb8] sm:$0xff] }
 0x14c   :  { %997 = vmatmul.mubr.f32.gmra.mrb[62].mxu0 %v560_v13  ;;  %1319 = vmatmul.mubr.f32.gmra.mrb[62].mxu1 %v560_v13  ;;  %v510_v13 = vmax.f32 %v418_v45, 0.0  ;;  %v424_v8 = vadd.f32 %v3953_v29, %v4025_v30  ;;  %v3164_v57 = vpack.c.bf16 %v1560_v6, %v1558_v56  ;;  %v438_v2 = vadd.f32 %v3967_v24, %v4017_v11  ;;  %v1575_v45 = vld [vmem:[#allocation6 + $0xc8] sm:$0xff] }
 0x14d   :  { %3025 = vmatpush1.bf16.msra.mxu0 %v3024_v60  ;;  %3153 = vmatpush1.bf16.msra.mxu1 %v3152_v10  ;;  %v1565_v60 = vld [vmem:[#allocation6 + $0x78] sm:$0xff]  ;;  %v515_v10 = vmax.f32 %v426_v15, 0.0  ;;  %v519_v27 = vmax.f32 %v432_v37, 0.0  ;;  %v430_v29 = vadd.f32 %v3959_v51, %v4025_v30  ;;  %v444_v24 = vadd.f32 %v3973_v49, %v4017_v11  ;;  %v1570_v15 = vld [vmem:[#allocation6 + $0xa0] sm:$0xff]  ;;  %v1579_v37 = vld [vmem:[#allocation6 + $0xe8] sm:$0xff] }
 0x14e   :  { %1067 = vmatprep.mubr.f32.mxu0 %v503_v19  ;;  %1389 = vmatprep.mubr.f32.mxu1 %v503_v19  ;;  %v3166_v19 = vpack.c.bf16 %v1565_v60, %v1563_v32  ;;  %v523_v50 = vmax.f32 %v438_v2, 0.0  ;;  %v436_v51 = vadd.f32 %v3965_v17, %v4025_v30  ;;  %v450_v49 = vadd.f32 %v3979_v18, %v4017_v11  ;;  %v1574_v60 = vld [vmem:[#allocation6 + $0xc0] sm:$0xff] }
 0x14f   :  { %3155 = vmatprep.subr.bf16.mxu0 %v3154_v20  ;;  %v1562_v20 = vld [vmem:[#allocation6 + $0x60] sm:$0xff]  ;;  %v518_v59 = vmax.f32 %v430_v29, 0.0  ;;  %v442_v17 = vadd.f32 %v3971_v41, %v4025_v30  ;;  %v456_v18 = vadd.f32 %v3985_v44, %v4017_v11  ;;  %v448_v41 = vadd.f32 %v3977_v9, %v4025_v30 }
 0x150   :  { %1068 = vmatmul.mubr.f32.vlgmr.msra.gmra.mrb[32].mxu0 %v502_v33  ;;  %1390 = vmatmul.mubr.f32.vlgmr.msra.gmra.mrb[32].mxu1 %v502_v33  ;;  %v3168_v25 = vpack.c.bf16 %v1564_v21, %v1562_v20  ;;  %v3170_v33 = vpack.c.bf16 %v1569_v58, %v1567_v23  ;;  %v522_v56 = vmax.f32 %v436_v51, 0.0  ;;  %v1578_v21 = vld [vmem:[#allocation6 + $0xe0] sm:$0xff]  ;;  %v1580_v23 = vld [vmem:[#allocation6 + $0xf0] sm:$0xff]  ;;  %v1583_v58 = vld [vmem:[#allocation6 + $0x108] sm:$0xff]  ;;  %v462_v44 = vadd.f32 %v3991_v14, %v4017_v11 }
 0x151   :  { %1073 = vmatprep.mubr.f32.mxu0 %v507_v28  ;;  %1395 = vmatprep.mubr.f32.mxu1 %v507_v28  ;;  %v514_v28 = vmax.f32 %v424_v8, 0.0  ;;  %v531_v8 = vmax.f32 %v450_v49, 0.0  ;;  %v535_v2 = vmax.f32 %v456_v18, 0.0  ;;  %v454_v9 = vadd.f32 %v3983_v35, %v4025_v30  ;;  %v1586_v51 = vld [vmem:[#allocation6 + $0x120] sm:$0xff]  ;;  %v1599_v18 = vld [vmem:[#allocation6 + $0x188] sm:$0xff] }
 0x152   :  { %3157 = vmatpush1.bf16.msra.mxu0 %v3156_v40  ;;  %v1568_v40 = vld [vmem:[#allocation6 + $0x90] sm:$0xff]  ;;  %v3184_v29 = vpack.c.bf16 %v1580_v23, %v1578_v21  ;;  %v468_v14 = vadd.f32 %v3997_v47, %v4017_v11  ;;  %v460_v35 = vadd.f32 %v3989_v5, %v4025_v30  ;;  %v474_v47 = vadd.f32 %v4003_v22, %v4017_v11  ;;  %v1590_v49 = vld [vmem:[#allocation6 + $0x140] sm:$0xff] }
 0x153   :  { %3159 = vmatprep.subr.bf16.mxu0 %v3158_v46  ;;  %v1571_v46 = vld [vmem:[#allocation6 + $0xa8] sm:$0xff]  ;;  %v3172_v61 = vpack.c.bf16 %v1568_v40, %v1566_v38  ;;  %v1584_v38 = vld [vmem:[#allocation6 + $0x110] sm:$0xff]  ;;  %v466_v5 = vadd.f32 %v3995_v34, %v4025_v30  ;;  %v480_v22 = vadd.f32 %v4011_v0, %v4017_v11  ;;  %v472_v34 = vadd.f32 %v4001_v7, %v4025_v30  ;;  %v1598_v23 = vld [vmem:[#allocation6 + $0x180] sm:$0xff] }
 0x154   :  { %1074 = vmatmul.mubr.f32.gmra.mrb[34].mxu0 %v506_v3  ;;  %1396 = vmatmul.mubr.f32.gmra.mrb[34].mxu1 %v506_v3  ;;  %v1572_v3 = vld [vmem:[#allocation6 + $0xb0] sm:$0xff]  ;;  %v1587_v40 = vld [vmem:[#allocation6 + $0x128] sm:$0xff]  ;;  %v486_v0 = vadd.f32 %v4027_v39, %v4017_v11  ;;  %v478_v7 = vadd.f32 %v4009_v43, %v4025_v30  ;;  %v492_v39 = vadd.f32 %v4037_v12, %v4017_v11 }
 0x155   :  { %1079 = vmatprep.mubr.f32.mxu0 %v511_v62  ;;  %1401 = vmatprep.mubr.f32.mxu1 %v511_v62  ;;  %v3174_v62 = vpack.c.bf16 %v1573_v48, %v1571_v46  ;;  %v3176_v6 = vpack.c.bf16 %v1572_v3, %v1570_v15  ;;  %v1589_v46 = vld [vmem:[#allocation6 + $0x138] sm:$0xff]  ;;  %v539_v48 = vmax.f32 %v462_v44, 0.0  ;;  %v543_v3 = vmax.f32 %v468_v14, 0.0 }
 0x156   :  { %3161 = vmatpush1.bf16.msra.mxu0 %v3160_v54  ;;  %v1577_v54 = vld [vmem:[#allocation6 + $0xd8] sm:$0xff]  ;;  %v555_v44 = vmax.f32 %v486_v0, 0.0  ;;  %v484_v43 = vadd.f32 %v4020_v16, %v4025_v30  ;;  %v498_v12 = vadd.f32 %v4045_v31, %v4017_v11  ;;  %v490_v16 = vadd.f32 %v4033_v63, %v4025_v30  ;;  %v1606_v63 = vld [vmem:[#allocation6 + $0x1c0] sm:$0xff]  ;;  %v1608_v31 = vld [vmem:[#allocation6 + $0x1d0] sm:$0xff] }
 0x157   :  { %3163 = vmatprep.subr.bf16.mxu0 %v3162_v4  ;;  %v527_v4 = vmax.f32 %v444_v24, 0.0  ;;  %v3178_v32 = vpack.c.bf16 %v1577_v54, %v1575_v45  ;;  %v1593_v15 = vld [vmem:[#allocation6 + $0x158] sm:$0xff]  ;;  %v538_v45 = vmax.f32 %v460_v35, 0.0 }
 0x158   :  { %1080 = vmatmul.mubr.f32.gmra.mrb[36].mxu0 %v510_v13  ;;  %1402 = vmatmul.mubr.f32.gmra.mrb[36].mxu1 %v510_v13  ;;  %v1581_v13 = vld [vmem:[#allocation6 + $0xf8] sm:$0xff]  ;;  %v563_v35 = vmax.f32 %v498_v12, 0.0 }
 0x159   :  { %1085 = vmatprep.mubr.f32.mxu0 %v515_v10  ;;  %1407 = vmatprep.mubr.f32.mxu1 %v515_v10  ;;  %v1576_v10 = vld [vmem:[#allocation6 + $0xd0] sm:$0xff]  ;;  %v3182_v20 = vpack.c.bf16 %v1581_v13, %v1579_v37  ;;  %v1594_v13 = vld [vmem:[#allocation6 + $0x160] sm:$0xff] }
 0x15a   :  { %3165 = vmatpush1.bf16.msra.mxu0 %v3164_v57  ;;  %v526_v57 = vmax.f32 %v442_v17, 0.0  ;;  %v1595_v17 = vld [vmem:[#allocation6 + $0x168] sm:$0xff]  ;;  %v2044_v0 = vld [vmem:[%s4563_s7] sm:$0xff] }
 0x15b   :  { %3167 = vmatprep.subr.bf16.mxu0 %v3166_v19  ;;  %v3180_v19 = vpack.c.bf16 %v1576_v10, %v1574_v60  ;;  %v542_v60 = vmax.f32 %v466_v5, 0.0 }
 0x15c   :  { %1086 = vmatmul.mubr.f32.gmra.mrb[38].mxu0 %v514_v28  ;;  %1408 = vmatmul.mubr.f32.gmra.mrb[38].mxu1 %v514_v28  ;;  %v530_v28 = vmax.f32 %v448_v41, 0.0  ;;  %v551_v41 = vmax.f32 %v480_v22, 0.0 }
 0x15d   :  { %1091 = vmatprep.mubr.f32.mxu0 %v519_v27  ;;  %1413 = vmatprep.mubr.f32.mxu1 %v519_v27  ;;  %v1585_v27 = vld [vmem:[#allocation6 + $0x118] sm:$0xff] }
 0x15e   :  { %3169 = vmatpush1.bf16.msra.mxu0 %v3168_v25  ;;  %v3186_v25 = vpack.c.bf16 %v1585_v27, %v1583_v58  ;;  %v1600_v58 = vld [vmem:[#allocation6 + $0x190] sm:$0xff]  ;;  %v1603_v27 = vld [vmem:[#allocation6 + $0x1a8] sm:$0xff] }
 0x15f   :  { %3171 = vmatprep.subr.bf16.mxu0 %v3170_v33  ;;  %v1582_v33 = vld [vmem:[#allocation6 + $0x100] sm:$0xff] }
 0x160   :  { %1092 = vmatmul.mubr.f32.gmra.mrb[40].mxu0 %v518_v59  ;;  %1414 = vmatmul.mubr.f32.gmra.mrb[40].mxu1 %v518_v59  ;;  %v3188_v24 = vpack.c.bf16 %v1584_v38, %v1582_v33  ;;  %v3190_v59 = vpack.c.bf16 %v1589_v46, %v1587_v40  ;;  %v1604_v33 = vld [vmem:[#allocation6 + $0x1b0] sm:$0xff]  ;;  %v1607_v38 = vld [vmem:[#allocation6 + $0x1c8] sm:$0xff]  ;;  %v1609_v40 = vld [vmem:[#allocation6 + $0x1d8] sm:$0xff]  ;;  %v559_v46 = vmax.f32 %v492_v39, 0.0 }
 0x161   :  { %1097 = vmatprep.mubr.f32.mxu0 %v523_v50  ;;  %1419 = vmatprep.mubr.f32.mxu1 %v523_v50  ;;  %v534_v50 = vmax.f32 %v454_v9, 0.0  ;;  %v3204_v9 = vpack.c.bf16 %v1600_v58, %v1598_v23  ;;  %v4133_v23 = vld [vmem:[#allocation6 + $0x248] sm:$0xff] }
 0x162   :  { %3173 = vmatpush1.bf16.msra.mxu0 %v3172_v61  ;;  %v1588_v61 = vld [vmem:[#allocation6 + $0x130] sm:$0xff] }
 0x163   :  { %3175 = vmatprep.subr.bf16.mxu0 %v3174_v62  ;;  %v1591_v62 = vld [vmem:[#allocation6 + $0x148] sm:$0xff]  ;;  %v3192_v54 = vpack.c.bf16 %v1588_v61, %v1586_v51  ;;  %v3212_v51 = vpack.c.bf16 %v1608_v31, %v1606_v63  ;;  %v2048_v31 = vld [vmem:[%s4563_s7 + $0x20] sm:$0xff] }
 0x164   :  { %1098 = vmatmul.mubr.f32.gmra.mrb[42].mxu0 %v522_v56  ;;  %1420 = vmatmul.mubr.f32.gmra.mrb[42].mxu1 %v522_v56  ;;  %v1592_v56 = vld [vmem:[#allocation6 + $0x150] sm:$0xff]  ;;  %v1611_v61 = vld [vmem:[#allocation6 + $0x1e8] sm:$0xff] }
 0x165   :  { %1103 = vmatprep.mubr.f32.mxu0 %v527_v4  ;;  %1425 = vmatprep.mubr.f32.mxu1 %v527_v4  ;;  %v3194_v4 = vpack.c.bf16 %v1593_v15, %v1591_v62  ;;  %v3196_v10 = vpack.c.bf16 %v1592_v56, %v1590_v49  ;;  %v1613_v62 = vld [vmem:[#allocation6 + $0x1f8] sm:$0xff] }
 0x166   :  { %3177 = vmatpush1.bf16.msra.mxu0 %v3176_v6  ;;  %v1597_v6 = vld [vmem:[#allocation6 + $0x178] sm:$0xff]  ;;  %v3214_v15 = vpack.c.bf16 %v1613_v62, %v1611_v61 }
 0x167   :  { %3179 = vmatprep.subr.bf16.mxu0 %v3178_v32  ;;  %v547_v32 = vmax.f32 %v474_v47, 0.0  ;;  %v3198_v37 = vpack.c.bf16 %v1597_v6, %v1595_v17  ;;  %v1612_v47 = vld [vmem:[#allocation6 + $0x1f0] sm:$0xff] }
 0x168   :  { %1104 = vmatmul.mubr.f32.gmra.mrb[44].mxu0 %v526_v57  ;;  %1426 = vmatmul.mubr.f32.gmra.mrb[44].mxu1 %v526_v57  ;;  %v1601_v57 = vld [vmem:[#allocation6 + $0x198] sm:$0xff] }
 0x169   :  { %1109 = vmatprep.mubr.f32.mxu0 %v531_v8  ;;  %1431 = vmatprep.mubr.f32.mxu1 %v531_v8  ;;  %v1596_v8 = vld [vmem:[#allocation6 + $0x170] sm:$0xff]  ;;  %v3202_v21 = vpack.c.bf16 %v1601_v57, %v1599_v18  ;;  %v2060_v57 = vld [vmem:[%s4563_s7 + $0x80] sm:$0xff] }
 0x16a   :  { %3181 = vmatpush1.bf16.msra.mxu0 %v3180_v19  ;;  %v546_v19 = vmax.f32 %v472_v34, 0.0  ;;  %v1616_v34 = vld [vmem:[#allocation6 + $0x210] sm:$0xff] }
 0x16b   :  { %3183 = vmatprep.subr.bf16.mxu0 %v3182_v20  ;;  %v3200_v20 = vpack.c.bf16 %v1596_v8, %v1594_v13  ;;  %v1621_v13 = vld [vmem:[#allocation6 + $0x238] sm:$0xff]  ;;  %v1618_v8 = vld [vmem:[#allocation6 + $0x220] sm:$0xff]  ;;  %v1620_v18 = vld [vmem:[#allocation6 + $0x230] sm:$0xff] }
 0x16c   :  { %1110 = vmatmul.mubr.f32.gmra.mrb[46].mxu0 %v530_v28  ;;  %1432 = vmatmul.mubr.f32.gmra.mrb[46].mxu1 %v530_v28  ;;  %v550_v28 = vmax.f32 %v478_v7, 0.0 }
 0x16d   :  { %1115 = vmatprep.mubr.f32.mxu0 %v535_v2  ;;  %1437 = vmatprep.mubr.f32.mxu1 %v535_v2  ;;  %v1605_v2 = vld [vmem:[#allocation6 + $0x1b8] sm:$0xff] }
 0x16e   :  { %3185 = vmatpush1.bf16.msra.mxu0 %v3184_v29  ;;  %v3206_v29 = vpack.c.bf16 %v1605_v2, %v1603_v27  ;;  %v2045_v27 = vld [vmem:[%s4563_s7 + $0x8] sm:$0xff]  ;;  %v2062_v2 = vld [vmem:[%s4563_s7 + $0x90] sm:$0xff] }
 0x16f   :  { %3187 = vmatprep.subr.bf16.mxu0 %v3186_v25  ;;  %v1602_v25 = vld [vmem:[#allocation6 + $0x1a0] sm:$0xff] }
 0x170   :  { %1116 = vmatmul.mubr.f32.gmra.mrb[48].mxu0 %v534_v50  ;;  %1438 = vmatmul.mubr.f32.gmra.mrb[48].mxu1 %v534_v50  ;;  %v3208_v14 = vpack.c.bf16 %v1604_v33, %v1602_v25  ;;  %v3210_v50 = vpack.c.bf16 %v1609_v40, %v1607_v38  ;;  %v2063_v25 = vld [vmem:[%s4563_s7 + $0x98] sm:$0xff]  ;;  %v2046_v33 = vld [vmem:[%s4563_s7 + $0x10] sm:$0xff] }
 0x171   :  { %1121 = vmatprep.mubr.f32.mxu0 %v539_v48  ;;  %1443 = vmatprep.mubr.f32.mxu1 %v539_v48  ;;  %v554_v48 = vmax.f32 %v484_v43, 0.0  ;;  %v2047_v38 = vld [vmem:[%s4563_s7 + $0x18] sm:$0xff]  ;;  %v3286_v12 = vpack.c.bf16 %v2063_v25, %v2062_v2 }
 0x172   :  { %3189 = vmatpush1.bf16.msra.mxu0 %v3188_v24  ;;  %v558_v24 = vmax.f32 %v490_v16, 0.0  ;;  %v2065_v16 = vld [vmem:[%s4563_s7 + $0xa8] sm:$0xff] }
 0x173   :  { %3191 = vmatprep.subr.bf16.mxu0 %v3190_v59  ;;  %v496_v59 = vadd.f32 %v4041_v26, %v4025_v30  ;;  %v1615_v30 = vld [vmem:[#allocation6 + $0x208] sm:$0xff]  ;;  %v1617_v26 = vld [vmem:[#allocation6 + $0x218] sm:$0xff] }
 0x174   :  { %1122 = vmatmul.mubr.f32.gmra.mrb[50].mxu0 %v538_v45  ;;  %1444 = vmatmul.mubr.f32.gmra.mrb[50].mxu1 %v538_v45  ;;  %v3218_v5 = vpack.c.bf16 %v1617_v26, %v1615_v30  ;;  %v2066_v30 = vld [vmem:[%s4563_s7 + $0xb0] sm:$0xff]  ;;  %v2067_v26 = vld [vmem:[%s4563_s7 + $0xb8] sm:$0xff] }
 0x175   :  { %1127 = vmatprep.mubr.f32.mxu0 %v543_v3  ;;  %1449 = vmatprep.mubr.f32.mxu1 %v543_v3  ;;  %v562_v11 = vmax.f32 %v496_v59, 0.0  ;;  %v1610_v3 = vld [vmem:[#allocation6 + $0x1e0] sm:$0xff]  ;;  %v3224_v59 = vpack.c.bf16 %v1620_v18, %v1618_v8  ;;  %v3294_v8 = vpack.c.bf16 %v2067_v26, %v2066_v30  ;;  %v2050_v18 = vld [vmem:[%s4563_s7 + $0x30] sm:$0xff] }
 0x176   :  { %3193 = vmatpush1.bf16.msra.mxu0 %v3192_v54  ;;  %v3216_v45 = vpack.c.bf16 %v1612_v47, %v1610_v3  ;;  %v4106_v54 = vld [vmem:[%s4560_s4] sm:$0xf] }
 0x177   :  { %3195 = vmatprep.subr.bf16.mxu0 %v3194_v4  ;;  %v4110_v4 = vrot.slane %v4106_v54, %v3913_v53  ;;  %v4114_v49 = vrot.slane %v4106_v54, %v3921_v55  ;;  %v1634_v26 = vld [vmem:[#allocation6 + $0x2a0] sm:$0xff] }
 0x178   :  { %1128 = vmatmul.mubr.f32.gmra.mrb[52].mxu0 %v542_v60  ;;  %1450 = vmatmul.mubr.f32.gmra.mrb[52].mxu1 %v542_v60  ;;  %v1614_v60 = vld [vmem:[#allocation6 + $0x200] sm:$0xff] }
 0x179   :  { %1133 = vmatprep.mubr.f32.mxu0 %v547_v32  ;;  %1455 = vmatprep.mubr.f32.mxu1 %v547_v32 }
 0x17a   :  { %3197 = vmatpush1.bf16.msra.mxu0 %v3196_v10 }
 0x17b   :  { %3199 = vmatprep.subr.bf16.mxu0 %v3198_v37  ;;  %v1619_v37 = vld [vmem:[#allocation6 + $0x228] sm:$0xff] }
 0x17c   :  { %1134 = vmatmul.mubr.f32.gmra.mrb[54].mxu0 %v546_v19  ;;  %1456 = vmatmul.mubr.f32.gmra.mrb[54].mxu1 %v546_v19 }
 0x17d   :  { %1139 = vmatprep.mubr.f32.mxu0 %v551_v41  ;;  %1461 = vmatprep.mubr.f32.mxu1 %v551_v41  ;;  %v2061_v41 = vld [vmem:[%s4563_s7 + $0x88] sm:$0xff] }
 0x17e   :  { %3201 = vmatpush1.bf16.msra.mxu0 %v3200_v20  ;;  %v3282_v58 = vpack.c.bf16 %v2061_v41, %v2060_v57  ;;  %v2051_v57 = vld [vmem:[%s4563_s7 + $0x38] sm:$0xff] }
 0x17f   :  { %3203 = vmatprep.subr.bf16.mxu0 %v3202_v21  ;;  %v3220_v21 = vpack.c.bf16 %v1616_v34, %v1614_v60 }
 0x180   :  { %1140 = vmatmul.mubr.f32.gmra.mrb[56].mxu0 %v550_v28  ;;  %1462 = vmatmul.mubr.f32.gmra.mrb[56].mxu1 %v550_v28 }
 0x181   :  { %1145 = vmatprep.mubr.f32.mxu0 %v555_v44  ;;  %1467 = vmatprep.mubr.f32.mxu1 %v555_v44 }
 0x182   :  { %3205 = vmatpush1.bf16.msra.mxu0 %v3204_v9  ;;  %v3222_v9 = vpack.c.bf16 %v1621_v13, %v1619_v37  ;;  %3283 = vmatprep.subr.bf16.mxu1 %v3282_v58  ;;  %v1626_v13 = vld [vmem:[#allocation6 + $0x260] sm:$0xff] }
 0x183   :  { %3207 = vmatprep.subr.bf16.mxu0 %v3206_v29  ;;  %v3284_v29 = vpack.c.bf16 %v2045_v27, %v2044_v0  ;;  %v2068_v58 = vld [vmem:[%s4563_s7 + $0xc0] sm:$0xff]  ;;  %v2069_v27 = vld [vmem:[%s4563_s7 + $0xc8] sm:$0xff] }
 0x184   :  { %1146 = vmatmul.mubr.f32.gmra.mrb[58].mxu0 %v554_v48  ;;  %1468 = vmatmul.mubr.f32.gmra.mrb[58].mxu1 %v554_v48  ;;  %v2064_v48 = vld [vmem:[%s4563_s7 + $0xa0] sm:$0xff] }
 0x185   :  { %1151 = vmatprep.mubr.f32.mxu0 %v559_v46  ;;  %1473 = vmatprep.mubr.f32.mxu1 %v559_v46  ;;  %v1625_v46 = vld [vmem:[#allocation6 + $0x258] sm:$0xff]  ;;  %v3290_v63 = vpack.c.bf16 %v2065_v16, %v2064_v48 }
 0x186   :  { %3209 = vmatpush1.bf16.msra.mxu0 %v3208_v14  ;;  %3285 = vmatpush3.bf16.msra.mxu1 %v3284_v29  ;;  %v3288_v14 = vpack.c.bf16 %v2047_v38, %v2046_v33  ;;  %v3226_v47 = vpack.c.bf16 %v1625_v46, %v4133_v23  ;;  %v1628_v23 = vld [vmem:[#allocation6 + $0x270] sm:$0xff]  ;;  %v1630_v38 = vld [vmem:[#allocation6 + $0x280] sm:$0xff] }
 0x187   :  { %3211 = vmatprep.subr.bf16.mxu0 %v3210_v50  ;;  %3287 = vmatprep.subr.bf16.mxu1 %v3286_v12  ;;  %v3232_v33 = vpack.c.bf16 %v1628_v23, %v1626_v13  ;;  %v2052_v46 = vld [vmem:[%s4563_s7 + $0x40] sm:$0xff]  ;;  %v2053_v12 = vld [vmem:[%s4563_s7 + $0x48] sm:$0xff] }
 0x188   :  { %1152 = vmatmul.mubr.f32.gmra.mrb[60].mxu0 %v558_v24  ;;  %1474 = vmatmul.mubr.f32.gmra.mrb[60].mxu1 %v558_v24 }
 0x189   :  { %1157 = vmatprep.mubr.f32.mxu0 %v563_v35  ;;  %1479 = vmatprep.mubr.f32.mxu1 %v563_v35 }
 0x18a   :  { %3213 = vmatpush1.bf16.msra.mxu0 %v3212_v51  ;;  %v2049_v51 = vld [vmem:[%s4563_s7 + $0x28] sm:$0xff]  ;;  %3289 = vmatpush3.bf16.msra.mxu1 %v3288_v14 }
 0x18b   :  { %3215 = vmatprep.subr.bf16.mxu0 %v3214_v15  ;;  %3291 = vmatprep.subr.bf16.mxu1 %v3290_v63  ;;  %v2071_v63 = vld [vmem:[%s4563_s7 + $0xd8] sm:$0xff] }
 0x18c   :  { %1158 = vmatmul.mubr.f32.gmra.mrb[62].mxu0 %v562_v11  ;;  %1480 = vmatmul.mubr.f32.gmra.mrb[62].mxu1 %v562_v11  ;;  %v1622_v11 = vld [vmem:[#allocation6 + $0x240] sm:$0xff] }
 0x18e   :  { %3217 = vmatpush1.bf16.msra.mxu0 %v3216_v45  ;;  %v1624_v45 = vld [vmem:[#allocation6 + $0x250] sm:$0xff] }
 0x18f   :  { %3219 = vmatprep.subr.bf16.mxu0 %v3218_v5  ;;  %v3228_v37 = vpack.c.bf16 %v1624_v45, %v1622_v11  ;;  %v2070_v11 = vld [vmem:[%s4563_s7 + $0xd0] sm:$0xff] }
 0x223   :  { %v1069_v56 = vpop.f32.mrb[32].mxu0  ;;  %v4116_v17 = vpop.f32.mrb[32].mxu1 }
 0x224   :  { %v3362_v6 = vadd.f32 %v1069_v56, %v4110_v4  ;;  %v1071_v32 = vpop.f32.mrb[33].mxu0  ;;  %v4119_v22 = vpop.f32.mrb[33].mxu1  ;;  %v1627_v56 = vld [vmem:[#allocation6 + $0x268] sm:$0xff] }
 0x225   :  { %v3363_v10 = vadd.f32 %v1071_v32, %v4114_v49  ;;  %v3292_v32 = vpack.c.bf16 %v2049_v51, %v2048_v31  ;;  %v1635_v51 = vld [vmem:[#allocation6 + $0x2a8] sm:$0xff] }
 0x226   :  { %v1486_v44 = vmax.f32 %v3362_v6, 0.0  ;;  %v1629_v6 = vld [vmem:[#allocation6 + $0x278] sm:$0xff] }
 0x227   :  { %v1487_v19 = vmax.f32 %v3363_v10, 0.0  ;;  %v1075_v7 = vpop.f32.mrb[34].mxu0  ;;  %v4131_v20 = vpop.f32.mrb[34].mxu1  ;;  %3293 = vmatpush3.bf16.msra.mxu1 %v3292_v32 }
 0x228   :  { %v3364_v39 = vadd.f32 %v1075_v7, %v4110_v4  ;;  %v1077_v28 = vpop.f32.mrb[35].mxu0  ;;  %v4142_v43 = vpop.f32.mrb[35].mxu1  ;;  %3295 = vmatprep.subr.bf16.mxu1 %v3294_v8  ;;  %v1636_v8 = vld [vmem:[#allocation6 + $0x2b0] sm:$0xff] }
 0x229   :  { %v3365_v40 = vadd.f32 %v1077_v28, %v4114_v49  ;;  %1754 = vmatprep.mubr.f32.mxu0 %v1487_v19  ;;  %v3296_v28 = vpack.c.bf16 %v2051_v57, %v2050_v18  ;;  %v2072_v18 = vld [vmem:[%s4563_s7 + $0xe0] sm:$0xff]  ;;  %v2073_v57 = vld [vmem:[%s4563_s7 + $0xe8] sm:$0xff] }
 0x22a   :  { %1755 = vmatmul.mubr.f32.vlgmr.msra.gmra.mrb[64].mxu0 %v1486_v44  ;;  %v1490_v61 = vmax.f32 %v3364_v39, 0.0  ;;  %v1631_v44 = vld [vmem:[#allocation6 + $0x288] sm:$0xff]  ;;  %v1633_v39 = vld [vmem:[#allocation6 + $0x298] sm:$0xff] }
 0x22b   :  { %v1491_v50 = vmax.f32 %v3365_v40, 0.0  ;;  %v1081_v35 = vpop.f32.mrb[36].mxu0  ;;  %v4160_v24 = vpop.f32.mrb[36].mxu1  ;;  %3221 = vmatpush1.bf16.msra.mxu0 %v3220_v21  ;;  %v3230_v21 = vpack.c.bf16 %v1629_v6, %v1627_v56  ;;  %v3298_v40 = vpack.c.bf16 %v2069_v27, %v2068_v58  ;;  %3297 = vmatpush3.bf16.msra.mxu1 %v3296_v28  ;;  %v2054_v56 = vld [vmem:[%s4563_s7 + $0x50] sm:$0xff]  ;;  %v2055_v6 = vld [vmem:[%s4563_s7 + $0x58] sm:$0xff]  ;;  %v2056_v28 = vld [vmem:[%s4563_s7 + $0x60] sm:$0xff] }
 0x22c   :  { %v3366_v62 = vadd.f32 %v1081_v35, %v4110_v4  ;;  %v1083_v15 = vpop.f32.mrb[37].mxu0  ;;  %v4169_v3 = vpop.f32.mrb[37].mxu1  ;;  %3223 = vmatprep.subr.bf16.mxu0 %v3222_v9  ;;  %v3234_v35 = vpack.c.bf16 %v1633_v39, %v1631_v44  ;;  %v1638_v44 = vld [vmem:[#allocation6 + $0x2c0] sm:$0xff]  ;;  %v3306_v39 = vpack.c.bf16 %v2073_v57, %v2072_v18 }
 0x22d   :  { %v3367_v5 = vadd.f32 %v1083_v15, %v4114_v49  ;;  %1760 = vmatprep.mubr.f32.mxu0 %v1491_v50  ;;  %3299 = vmatprep.subr.bf16.mxu1 %v3298_v40 }
 0x22e   :  { %1761 = vmatmul.mubr.f32.gmra.mrb[66].mxu0 %v1490_v61  ;;  %v1494_v41 = vmax.f32 %v3366_v62, 0.0  ;;  %v1637_v61 = vld [vmem:[#allocation6 + $0x2b8] sm:$0xff]  ;;  %v3300_v62 = vpack.c.bf16 %v2053_v12, %v2052_v46  ;;  %v1640_v12 = vld [vmem:[#allocation6 + $0x2d0] sm:$0xff] }
 0x22f   :  { %v1495_v60 = vmax.f32 %v3367_v5, 0.0  ;;  %v1087_v34 = vpop.f32.mrb[38].mxu0  ;;  %v4179_v10 = vpop.f32.mrb[38].mxu1  ;;  %3225 = vmatpush1.bf16.msra.mxu0 %v3224_v59  ;;  %v1632_v59 = vld [vmem:[#allocation6 + $0x290] sm:$0xff]  ;;  %v3302_v5 = vpack.c.bf16 %v2071_v63, %v2070_v11  ;;  %v3238_v13 = vpack.c.bf16 %v1637_v61, %v1635_v51  ;;  %v3244_v61 = vpack.c.bf16 %v1640_v12, %v1638_v44 }
 0x230   :  { %v3368_v0 = vadd.f32 %v1087_v34, %v4110_v4  ;;  %v1089_v19 = vpop.f32.mrb[39].mxu0  ;;  %v4188_v7 = vpop.f32.mrb[39].mxu1  ;;  %3227 = vmatprep.subr.bf16.mxu0 %v3226_v47  ;;  %v3236_v30 = vpack.c.bf16 %v1632_v59, %v1630_v38  ;;  %3301 = vmatpush3.bf16.msra.mxu1 %v3300_v62  ;;  %v1645_v59 = vld [vmem:[#allocation6 + $0x2f8] sm:$0xff] }
 0x231   :  { %v3369_v2 = vadd.f32 %v1089_v19, %v4114_v49  ;;  %1766 = vmatprep.mubr.f32.mxu0 %v1495_v60  ;;  %v1641_v19 = vld [vmem:[#allocation6 + $0x2d8] sm:$0xff]  ;;  %3303 = vmatprep.subr.bf16.mxu1 %v3302_v5 }
 0x232   :  { %1767 = vmatmul.mubr.f32.gmra.mrb[68].mxu0 %v1494_v41  ;;  %v1498_v48 = vmax.f32 %v3368_v0, 0.0  ;;  %v1639_v0 = vld [vmem:[#allocation6 + $0x2c8] sm:$0xff] }
 0x233   :  { %v1499_v9 = vmax.f32 %v3369_v2, 0.0  ;;  %v1093_v29 = vpop.f32.mrb[40].mxu0  ;;  %v4197_v25 = vpop.f32.mrb[40].mxu1  ;;  %3229 = vmatpush1.bf16.msra.mxu0 %v3228_v37  ;;  %v3240_v2 = vpack.c.bf16 %v1636_v8, %v1634_v26  ;;  %v3242_v46 = vpack.c.bf16 %v1641_v19, %v1639_v0 }
 0x234   :  { %v3370_v16 = vadd.f32 %v1093_v29, %v4110_v4  ;;  %v1095_v14 = vpop.f32.mrb[41].mxu0  ;;  %v4206_v50 = vpop.f32.mrb[41].mxu1  ;;  %3231 = vmatprep.subr.bf16.mxu0 %v3230_v21  ;;  %v3304_v21 = vpack.c.bf16 %v2055_v6, %v2054_v56  ;;  %v1642_v56 = vld [vmem:[#allocation6 + $0x2e0] sm:$0xff]  ;;  %v1644_v6 = vld [vmem:[#allocation6 + $0x2f0] sm:$0xff] }
 0x235   :  { %v3371_v31 = vadd.f32 %v1095_v14, %v4114_v49  ;;  %1772 = vmatprep.mubr.f32.mxu0 %v1499_v9  ;;  %v2057_v9 = vld [vmem:[%s4563_s7 + $0x68] sm:$0xff]  ;;  %v3248_v57 = vpack.c.bf16 %v1644_v6, %v1642_v56 }
 0x236   :  { %1773 = vmatmul.mubr.f32.gmra.mrb[70].mxu0 %v1498_v48  ;;  %v1502_v32 = vmax.f32 %v3370_v16, 0.0  ;;  %v2074_v48 = vld [vmem:[%s4563_s7 + $0xf0] sm:$0xff]  ;;  %v2075_v16 = vld [vmem:[%s4563_s7 + $0xf8] sm:$0xff]  ;;  %3305 = vmatpush3.bf16.msra.mxu1 %v3304_v21  ;;  %v3308_v11 = vpack.c.bf16 %v2057_v9, %v2056_v28 }
 0x237   :  { %v1503_v15 = vmax.f32 %v3371_v31, 0.0  ;;  %v1099_v47 = vpop.f32.mrb[42].mxu0  ;;  %v4215_v45 = vpop.f32.mrb[42].mxu1  ;;  %3233 = vmatpush1.bf16.msra.mxu0 %v3232_v33  ;;  %3307 = vmatprep.subr.bf16.mxu1 %v3306_v39  ;;  %v3310_v62 = vpack.c.bf16 %v2075_v16, %v2074_v48  ;;  %v1651_v39 = vld [vmem:[#allocation6 + $0x328] sm:$0xff]  ;;  %v1653_v28 = vld [vmem:[#allocation6 + $0x338] sm:$0xff] }
 0x238   :  { %v3372_v60 = vadd.f32 %v1099_v47, %v4110_v4  ;;  %v1101_v34 = vpop.f32.mrb[43].mxu0  ;;  %v4224_v37 = vpop.f32.mrb[43].mxu1  ;;  %3235 = vmatprep.subr.bf16.mxu0 %v3234_v35  ;;  %v1643_v35 = vld [vmem:[#allocation6 + $0x2e8] sm:$0xff] }
 0x239   :  { %v3373_v41 = vadd.f32 %v1101_v34, %v4114_v49  ;;  %1778 = vmatprep.mubr.f32.mxu0 %v1503_v15  ;;  %v3246_v5 = vpack.c.bf16 %v1645_v59, %v1643_v35  ;;  %v1649_v34 = vld [vmem:[#allocation6 + $0x318] sm:$0xff]  ;;  %v1650_v35 = vld [vmem:[#allocation6 + $0x320] sm:$0xff]  ;;  %v1652_v59 = vld [vmem:[#allocation6 + $0x330] sm:$0xff] }
 0x23a   :  { %1779 = vmatmul.mubr.f32.gmra.mrb[72].mxu0 %v1502_v32  ;;  %v1506_v29 = vmax.f32 %v3372_v60, 0.0  ;;  %v1647_v60 = vld [vmem:[#allocation6 + $0x308] sm:$0xff]  ;;  %3309 = vmatpush3.bf16.msra.mxu1 %v3308_v11 }
 0x23b   :  { %v1507_v23 = vmax.f32 %v3373_v41, 0.0  ;;  %v1105_v58 = vpop.f32.mrb[44].mxu0  ;;  %v4233_v27 = vpop.f32.mrb[44].mxu1  ;;  %3237 = vmatpush1.bf16.msra.mxu0 %v3236_v30  ;;  %3311 = vmatprep.subr.bf16.mxu1 %v3310_v62 }
 0x23c   :  { %v3374_v33 = vadd.f32 %v1105_v58, %v4110_v4  ;;  %v1107_v38 = vpop.f32.mrb[45].mxu0  ;;  %v4242_v40 = vpop.f32.mrb[45].mxu1  ;;  %3239 = vmatprep.subr.bf16.mxu0 %v3238_v13  ;;  %v1646_v58 = vld [vmem:[#allocation6 + $0x300] sm:$0xff] }
 0x23d   :  { %v3375_v14 = vadd.f32 %v1107_v38, %v4114_v49  ;;  %1784 = vmatprep.mubr.f32.mxu0 %v1507_v23  ;;  %v3250_v23 = vpack.c.bf16 %v1649_v34, %v1647_v60  ;;  %v1654_v60 = vld [vmem:[#allocation6 + $0x340] sm:$0xff]  ;;  %v1656_v34 = vld [vmem:[#allocation6 + $0x350] sm:$0xff] }
 0x23e   :  { %1785 = vmatmul.mubr.f32.gmra.mrb[74].mxu0 %v1506_v29  ;;  %v1510_v15 = vmax.f32 %v3374_v33, 0.0 }
 0x23f   :  { %v1511_v63 = vmax.f32 %v3375_v14, 0.0  ;;  %v1111_v31 = vpop.f32.mrb[46].mxu0  ;;  %v4251_v51 = vpop.f32.mrb[46].mxu1  ;;  %3241 = vmatpush1.bf16.msra.mxu0 %v3240_v2  ;;  %v1648_v2 = vld [vmem:[#allocation6 + $0x310] sm:$0xff]  ;;  %v3254_v14 = vpack.c.bf16 %v1653_v28, %v1651_v39 }
 0x240   :  { %v3376_v47 = vadd.f32 %v1111_v31, %v4110_v4  ;;  %v1113_v30 = vpop.f32.mrb[47].mxu0  ;;  %v4254_v26 = vpop.f32.mrb[47].mxu1  ;;  %3243 = vmatprep.subr.bf16.mxu0 %v3242_v46  ;;  %v3252_v38 = vpack.c.bf16 %v1648_v2, %v1646_v58  ;;  %v1657_v31 = vld [vmem:[#allocation6 + $0x358] sm:$0xff] }
 0x241   :  { %v3377_v32 = vadd.f32 %v1113_v30, %v4114_v49  ;;  %1790 = vmatprep.mubr.f32.mxu0 %v1511_v63  ;;  %v1655_v63 = vld [vmem:[#allocation6 + $0x348] sm:$0xff] }
 0x242   :  { %1791 = vmatmul.mubr.f32.gmra.mrb[76].mxu0 %v1510_v15  ;;  %v1514_v41 = vmax.f32 %v3376_v47, 0.0  ;;  %v3256_v47 = vpack.c.bf16 %v1652_v59, %v1650_v35 }
 0x243   :  { %v1515_v13 = vmax.f32 %v3377_v32, 0.0  ;;  %v1117_v8 = vpop.f32.mrb[48].mxu0  ;;  %v4257_v18 = vpop.f32.mrb[48].mxu1  ;;  %3245 = vmatpush1.bf16.msra.mxu0 %v3244_v61  ;;  %v3258_v32 = vpack.c.bf16 %v1657_v31, %v1655_v63 }
 0x244   :  { %v3378_v0 = vadd.f32 %v1117_v8, %v4110_v4  ;;  %v1119_v19 = vpop.f32.mrb[49].mxu0  ;;  %v4260_v21 = vpop.f32.mrb[49].mxu1  ;;  %3247 = vmatprep.subr.bf16.mxu0 %v3246_v5  ;;  %v1659_v8 = vld [vmem:[#allocation6 + $0x368] sm:$0xff] }
 0x245   :  { %v3379_v44 = vadd.f32 %v1119_v19, %v4114_v49  ;;  %1796 = vmatprep.mubr.f32.mxu0 %v1515_v13 }
 0x246   :  { %1797 = vmatmul.mubr.f32.gmra.mrb[78].mxu0 %v1514_v41  ;;  %v1518_v46 = vmax.f32 %v3378_v0, 0.0 }
 0x247   :  { %v1519_v9 = vmax.f32 %v3379_v44, 0.0  ;;  %v1123_v29 = vpop.f32.mrb[50].mxu0  ;;  %v4263_v33 = vpop.f32.mrb[50].mxu1  ;;  %3249 = vmatpush1.bf16.msra.mxu0 %v3248_v57  ;;  %v1661_v57 = vld [vmem:[#allocation6 + $0x378] sm:$0xff] }
 0x248   :  { %v3380_v12 = vadd.f32 %v1123_v29, %v4110_v4  ;;  %v1125_v48 = vpop.f32.mrb[51].mxu0  ;;  %v4266_v16 = vpop.f32.mrb[51].mxu1  ;;  %3251 = vmatprep.subr.bf16.mxu0 %v3250_v23  ;;  %v3260_v23 = vpack.c.bf16 %v1656_v34, %v1654_v60  ;;  %v3262_v28 = vpack.c.bf16 %v1661_v57, %v1659_v8  ;;  %v1660_v29 = vld [vmem:[#allocation6 + $0x370] sm:$0xff] }
 0x249   :  { %v3381_v11 = vadd.f32 %v1125_v48, %v4114_v49  ;;  %1802 = vmatprep.mubr.f32.mxu0 %v1519_v9  ;;  %v1658_v9 = vld [vmem:[#allocation6 + $0x360] sm:$0xff] }
 0x24a   :  { %1803 = vmatmul.mubr.f32.gmra.mrb[80].mxu0 %v1518_v46  ;;  %v1522_v30 = vmax.f32 %v3380_v12, 0.0  ;;  %v1663_v46 = vld [vmem:[#allocation6 + $0x388] sm:$0xff]  ;;  %v1665_v12 = vld [vmem:[#allocation6 + $0x398] sm:$0xff]  ;;  %v3264_v59 = vpack.c.bf16 %v1660_v29, %v1658_v9 }
 0x24b   :  { %v1523_v61 = vmax.f32 %v3381_v11, 0.0  ;;  %v1129_v62 = vpop.f32.mrb[52].mxu0  ;;  %v4269_v15 = vpop.f32.mrb[52].mxu1  ;;  %3253 = vmatpush1.bf16.msra.mxu0 %v3252_v38  ;;  %v1671_v9 = vld [vmem:[#allocation6 + $0x3c8] sm:$0xff]  ;;  %v1673_v29 = vld [vmem:[#allocation6 + $0x3d8] sm:$0xff] }
 0x24c   :  { %v3382_v5 = vadd.f32 %v1129_v62, %v4110_v4  ;;  %v1131_v56 = vpop.f32.mrb[53].mxu0  ;;  %v4272_v6 = vpop.f32.mrb[53].mxu1  ;;  %3255 = vmatprep.subr.bf16.mxu0 %v3254_v14  ;;  %v3266_v62 = vpack.c.bf16 %v1665_v12, %v1663_v46 }
 0x24d   :  { %v3383_v13 = vadd.f32 %v1131_v56, %v4114_v49  ;;  %1808 = vmatprep.mubr.f32.mxu0 %v1523_v61  ;;  %v1667_v56 = vld [vmem:[#allocation6 + $0x3a8] sm:$0xff] }
 0x24e   :  { %1809 = vmatmul.mubr.f32.gmra.mrb[82].mxu0 %v1522_v30  ;;  %v1526_v58 = vmax.f32 %v3382_v5, 0.0  ;;  %v1664_v30 = vld [vmem:[#allocation6 + $0x390] sm:$0xff] }
 0x24f   :  { %v1527_v41 = vmax.f32 %v3383_v13, 0.0  ;;  %v1135_v0 = vpop.f32.mrb[54].mxu0  ;;  %v4275_v19 = vpop.f32.mrb[54].mxu1  ;;  %3257 = vmatpush1.bf16.msra.mxu0 %v3256_v47  ;;  %v1662_v47 = vld [vmem:[#allocation6 + $0x380] sm:$0xff] }
 0x250   :  { %v3384_v2 = vadd.f32 %v1135_v0, %v4110_v4  ;;  %v1137_v44 = vpop.f32.mrb[55].mxu0  ;;  %v4278_v39 = vpop.f32.mrb[55].mxu1  ;;  %3259 = vmatprep.subr.bf16.mxu0 %v3258_v32  ;;  %v1669_v32 = vld [vmem:[#allocation6 + $0x3b8] sm:$0xff]  ;;  %v3268_v8 = vpack.c.bf16 %v1664_v30, %v1662_v47  ;;  %v1672_v47 = vld [vmem:[#allocation6 + $0x3d0] sm:$0xff]  ;;  %v4301_v30 = vrot.slane %v4106_v54, %v123_v36 }
 0x251   :  { %v3385_v38 = vadd.f32 %v1137_v44, %v4114_v49  ;;  %1814 = vmatprep.mubr.f32.mxu0 %v1527_v41  ;;  %v1668_v44 = vld [vmem:[#allocation6 + $0x3b0] sm:$0xff] }
 0x252   :  { %1815 = vmatmul.mubr.f32.gmra.mrb[84].mxu0 %v1526_v58  ;;  %v1530_v11 = vmax.f32 %v3384_v2, 0.0  ;;  %v3270_v58 = vpack.c.bf16 %v1669_v32, %v1667_v56  ;;  %v1666_v2 = vld [vmem:[#allocation6 + $0x3a0] sm:$0xff]  ;;  %v1675_v56 = vld [vmem:[#allocation6 + $0x3e8] sm:$0xff]  ;;  %v1677_v32 = vld [vmem:[#allocation6 + $0x3f8] sm:$0xff] }
 0x253   :  { %v1531_v48 = vmax.f32 %v3385_v38, 0.0  ;;  %v1141_v14 = vpop.f32.mrb[56].mxu0  ;;  %v4281_v35 = vpop.f32.mrb[56].mxu1  ;;  %3261 = vmatpush1.bf16.msra.mxu0 %v3260_v23 }
 0x254   :  { %v3386_v63 = vadd.f32 %v1141_v14, %v4110_v4  ;;  %v1143_v31 = vpop.f32.mrb[57].mxu0  ;;  %v4284_v61 = vpop.f32.mrb[57].mxu1  ;;  %3263 = vmatprep.subr.bf16.mxu0 %v3262_v28 }
 0x255   :  { %v3387_v5 = vadd.f32 %v1143_v31, %v4114_v49  ;;  %1820 = vmatprep.mubr.f32.mxu0 %v1531_v48  ;;  %v3272_v48 = vpack.c.bf16 %v1668_v44, %v1666_v2  ;;  %v3274_v31 = vpack.c.bf16 %v1673_v29, %v1671_v9  ;;  %v3278_v44 = vpack.c.bf16 %v1677_v32, %v1675_v56  ;;  %v1676_v9 = vld [vmem:[#allocation6 + $0x3f0] sm:$0xff] }
 0x256   :  { %1821 = vmatmul.mubr.f32.gmra.mrb[86].mxu0 %v1530_v11  ;;  %v1534_v57 = vmax.f32 %v3386_v63, 0.0  ;;  %v3395_v29 = vadd.f32 %v4119_v22, %v4301_v30 }
 0x257   :  { %v1535_v60 = vmax.f32 %v3387_v5, 0.0  ;;  %v1147_v34 = vpop.f32.mrb[58].mxu0  ;;  %v4287_v13 = vpop.f32.mrb[58].mxu1  ;;  %3265 = vmatpush1.bf16.msra.mxu0 %v3264_v59 }
 0x258   :  { %v3388_v41 = vadd.f32 %v1147_v34, %v4110_v4  ;;  %v1149_v0 = vpop.f32.mrb[59].mxu0  ;;  %v4290_v23 = vpop.f32.mrb[59].mxu1  ;;  %3267 = vmatprep.subr.bf16.mxu0 %v3266_v62  ;;  %v1670_v62 = vld [vmem:[#allocation6 + $0x3c0] sm:$0xff] }
 0x259   :  { %v3389_v28 = vadd.f32 %v1149_v0, %v4114_v49  ;;  %1826 = vmatprep.mubr.f32.mxu0 %v1535_v60 }
 0x25a   :  { %1827 = vmatmul.mubr.f32.gmra.mrb[88].mxu0 %v1534_v57  ;;  %v1538_v14 = vmax.f32 %v3388_v41, 0.0  ;;  %v3276_v57 = vpack.c.bf16 %v1672_v47, %v1670_v62  ;;  %v4309_v41 = vrot.slane %v4106_v54, %v119_v42 }
 0x25b   :  { %v1539_v38 = vmax.f32 %v3389_v28, 0.0  ;;  %v1153_v46 = vpop.f32.mrb[60].mxu0  ;;  %v4293_v12 = vpop.f32.mrb[60].mxu1  ;;  %3269 = vmatpush1.bf16.msra.mxu0 %v3268_v8  ;;  %v1674_v28 = vld [vmem:[#allocation6 + $0x3e0] sm:$0xff] }
 0x25c   :  { %v3390_v59 = vadd.f32 %v1153_v46, %v4110_v4  ;;  %v1155_v11 = vpop.f32.mrb[61].mxu0  ;;  %v4296_v63 = vpop.f32.mrb[61].mxu1  ;;  %3271 = vmatprep.subr.bf16.mxu0 %v3270_v58  ;;  %v3280_v42 = vpack.c.bf16 %v1676_v9, %v1674_v28  ;;  %v3394_v54 = vadd.f32 %v4116_v17, %v4309_v41  ;;  %v1489_v46 = vmax.f32 %v3395_v29, 0.0 }
 0x25d   :  { %v3391_v5 = vadd.f32 %v1155_v11, %v4114_v49  ;;  %1832 = vmatprep.mubr.f32.mxu0 %v1539_v38  ;;  %v3398_v11 = vadd.f32 %v4160_v24, %v4309_v41  ;;  %v3402_v24 = vadd.f32 %v4197_v25, %v4309_v41  ;;  %v3406_v25 = vadd.f32 %v4233_v27, %v4309_v41 }
 0x25e   :  { %1833 = vmatmul.mubr.f32.gmra.mrb[90].mxu0 %v1538_v14  ;;  %v1542_v0 = vmax.f32 %v3390_v59, 0.0  ;;  %v1488_v22 = vmax.f32 %v3394_v54, 0.0  ;;  %v3399_v59 = vadd.f32 %v4169_v3, %v4301_v30  ;;  %v3403_v3 = vadd.f32 %v4206_v50, %v4301_v30 }
 0x25f   :  { %v1543_v60 = vmax.f32 %v3391_v5, 0.0  ;;  %v1159_v34 = vpop.f32.mrb[62].mxu0  ;;  %v4304_v8 = vpop.f32.mrb[62].mxu1  ;;  %3273 = vmatpush1.bf16.msra.mxu0 %v3272_v48  ;;  %v3397_v48 = vadd.f32 %v4142_v43, %v4301_v30  ;;  %v3401_v43 = vadd.f32 %v4188_v7, %v4301_v30  ;;  %v1496_v62 = vmax.f32 %v3398_v11, 0.0  ;;  %v1678_v11 = vld [vmem:[%s4562_s6] sm:$0x3] }
 0x260   :  { %v3392_v36 = vadd.f32 %v1159_v34, %v4110_v4  ;;  %v1161_v58 = vpop.f32.mrb[63].mxu0  ;;  %v4312_v2 = vpop.f32.mrb[63].mxu1  ;;  %3275 = vmatprep.subr.bf16.mxu0 %v3274_v31  ;;  %v1497_v31 = vmax.f32 %v3399_v59, 0.0  ;;  %v1505_v56 = vmax.f32 %v3403_v3, 0.0  ;;  %v3405_v7 = vadd.f32 %v4224_v37, %v4301_v30 }
 0x261   :  { %v3393_v38 = vadd.f32 %v1161_v58, %v4114_v49  ;;  %1838 = vmatprep.mubr.f32.mxu0 %v1543_v60  ;;  %v3396_v49 = vadd.f32 %v4131_v20, %v4309_v41  ;;  %v1493_v14 = vmax.f32 %v3397_v48, 0.0  ;;  %v3400_v20 = vadd.f32 %v4179_v10, %v4309_v41 }
 0x262   :  { %1839 = vmatmul.mubr.f32.gmra.mrb[92].mxu0 %v1542_v0  ;;  %v1546_v4 = vmax.f32 %v3392_v36, 0.0  ;;  %v1501_v47 = vmax.f32 %v3401_v43, 0.0  ;;  %v1504_v32 = vmax.f32 %v3402_v24, 0.0  ;;  %v3404_v10 = vadd.f32 %v4215_v45, %v4309_v41  ;;  %v2247_v24 = vld [vmem:[%s4565_s9 + $0x18] sm:$0xff] }
 0x263   :  { %v1547_v52 = vmax.f32 %v3393_v38, 0.0  ;;  %3277 = vmatpush1.bf16.msra.mxu0 %v3276_v57  ;;  %v1492_v17 = vmax.f32 %v3396_v49, 0.0  ;;  %v1500_v5 = vmax.f32 %v3400_v20, 0.0  ;;  %v1509_v60 = vmax.f32 %v3405_v7, 0.0 }
 0x264   :  { %3279 = vmatprep.subr.bf16.mxu0 %v3278_v44  ;;  %v3407_v50 = vadd.f32 %v4242_v40, %v4301_v30  ;;  %v1508_v34 = vmax.f32 %v3404_v10, 0.0  ;;  %v3409_v37 = vadd.f32 %v4254_v26, %v4301_v30  ;;  %v1512_v0 = vmax.f32 %v3406_v25, 0.0  ;;  %v2249_v25 = vld [vmem:[%s4565_s9 + $0x28] sm:$0xff] }
 0x265   :  { %1844 = vmatprep.mubr.f32.mxu0 %v1547_v52  ;;  %v3408_v45 = vadd.f32 %v4251_v51, %v4309_v41  ;;  %v3411_v40 = vadd.f32 %v4260_v21, %v4301_v30  ;;  %v3410_v27 = vadd.f32 %v4257_v18, %v4309_v41  ;;  %v3413_v26 = vadd.f32 %v4266_v16, %v4301_v30 }
 0x266   :  { %1845 = vmatmul.mubr.f32.gmra.mrb[94].mxu0 %v1546_v4  ;;  %v1513_v57 = vmax.f32 %v3407_v50, 0.0  ;;  %v1517_v36 = vmax.f32 %v3409_v37, 0.0  ;;  %v3412_v51 = vadd.f32 %v4263_v33, %v4309_v41  ;;  %v3415_v21 = vadd.f32 %v4272_v6, %v4301_v30 }
 0x267   :  { %3281 = vmatpush1.bf16.msra.mxu0 %v3280_v42  ;;  %1915 = vmatprep.mubr.f32.mxu0 %v1489_v46  ;;  %v1516_v58 = vmax.f32 %v3408_v45, 0.0  ;;  %v1521_v44 = vmax.f32 %v3411_v40, 0.0  ;;  %v1520_v28 = vmax.f32 %v3410_v27, 0.0  ;;  %v1525_v9 = vmax.f32 %v3413_v26, 0.0  ;;  %v2250_v27 = vld [vmem:[%s4565_s9 + $0x30] sm:$0xff] }
 0x268   :  { %v1524_v29 = vmax.f32 %v3412_v51, 0.0  ;;  %v3414_v18 = vadd.f32 %v4269_v15, %v4309_v41  ;;  %v1529_v38 = vmax.f32 %v3415_v21, 0.0  ;;  %v3417_v16 = vadd.f32 %v4278_v39, %v4301_v30 }
 0x269   :  { %v3416_v33 = vadd.f32 %v4275_v19, %v4309_v41  ;;  %v3419_v6 = vadd.f32 %v4284_v61, %v4301_v30  ;;  %v3418_v15 = vadd.f32 %v4281_v35, %v4309_v41  ;;  %v3421_v39 = vadd.f32 %v4290_v23, %v4301_v30 }
 0x26a   :  { %1916 = vmatmul.mubr.f32.vlgmr.msra.gmra.mrb[64].mxu0 %v1488_v22  ;;  %v1528_v52 = vmax.f32 %v3414_v18, 0.0  ;;  %v1533_v42 = vmax.f32 %v3417_v16, 0.0  ;;  %v3420_v19 = vadd.f32 %v4287_v13, %v4309_v41  ;;  %v3423_v61 = vadd.f32 %v4296_v63, %v4301_v30 }
 0x26b   :  { %1921 = vmatprep.mubr.f32.mxu0 %v1493_v14  ;;  %v1532_v54 = vmax.f32 %v3416_v33, 0.0  ;;  %v1537_v4 = vmax.f32 %v3419_v6, 0.0  ;;  %v1536_v46 = vmax.f32 %v3418_v15, 0.0  ;;  %v1541_v48 = vmax.f32 %v3421_v39, 0.0 }
 0x26c   :  { %v1540_v22 = vmax.f32 %v3420_v19, 0.0  ;;  %v3422_v35 = vadd.f32 %v4293_v12, %v4309_v41  ;;  %v1545_v49 = vmax.f32 %v3423_v61, 0.0  ;;  %v3425_v23 = vadd.f32 %v4312_v2, %v4301_v30  ;;  %v2059_v12 = vld [vmem:[%s4563_s7 + $0x78] sm:$0xff]  ;;  %v2244_v2 = vld [vmem:[%s4565_s9] sm:$0xff] }
 0x26d   :  { %v3424_v13 = vadd.f32 %v4304_v8, %v4309_v41  ;;  %v2245_v8 = vld [vmem:[%s4565_s9 + $0x8] sm:$0xff]  ;;  %v4398_v43 = vrot.slane %v1678_v11, %v3921_v55 }
 0x26e   :  { %1922 = vmatmul.mubr.f32.gmra.mrb[66].mxu0 %v1492_v17  ;;  %v1544_v14 = vmax.f32 %v3422_v35, 0.0  ;;  %v1549_v59 = vmax.f32 %v3425_v23, 0.0  ;;  %v2058_v17 = vld [vmem:[%s4563_s7 + $0x70] sm:$0xff]  ;;  %v3314_v41 = vpack.c.bf16 %v2245_v8, %v2244_v2 }
 0x26f   :  { %1927 = vmatprep.mubr.f32.mxu0 %v1497_v31  ;;  %v1548_v63 = vmax.f32 %v3424_v13, 0.0  ;;  %v3312_v30 = vpack.c.bf16 %v2059_v12, %v2058_v17  ;;  %v4395_v31 = vrot.slane %v1678_v11, %v3913_v53 }
 0x271   :  { %3313 = vmatpush3.bf16.msra.mxu1 %v3312_v30 }
 0x272   :  { %1928 = vmatmul.mubr.f32.gmra.mrb[68].mxu0 %v1496_v62  ;;  %3315 = vmatprep.subr.bf16.mxu1 %v3314_v41 }
 0x273   :  { %1933 = vmatprep.mubr.f32.mxu0 %v1501_v47 }
 0x276   :  { %1934 = vmatmul.mubr.f32.gmra.mrb[70].mxu0 %v1500_v5  ;;  %v2246_v5 = vld [vmem:[%s4565_s9 + $0x10] sm:$0xff] }
 0x277   :  { %1939 = vmatprep.mubr.f32.mxu0 %v1505_v56 }
 0x27a   :  { %1940 = vmatmul.mubr.f32.gmra.mrb[72].mxu0 %v1504_v32 }
 0x27b   :  { %1945 = vmatprep.mubr.f32.mxu0 %v1509_v60  ;;  %v3318_v60 = vpack.c.bf16 %v2247_v24, %v2246_v5 }
 0x27e   :  { %1946 = vmatmul.mubr.f32.gmra.mrb[74].mxu0 %v1508_v34  ;;  %v2248_v34 = vld [vmem:[%s4565_s9 + $0x20] sm:$0xff] }
 0x27f   :  { %1951 = vmatprep.mubr.f32.mxu0 %v1513_v57  ;;  %v3322_v40 = vpack.c.bf16 %v2249_v25, %v2248_v34 }
 0x282   :  { %1952 = vmatmul.mubr.f32.gmra.mrb[76].mxu0 %v1512_v0 }
 0x283   :  { %1957 = vmatprep.mubr.f32.mxu0 %v1517_v36 }
 0x286   :  { %1958 = vmatmul.mubr.f32.gmra.mrb[78].mxu0 %v1516_v58 }
 0x287   :  { %1963 = vmatprep.mubr.f32.mxu0 %v1521_v44  ;;  %v2251_v44 = vld [vmem:[%s4565_s9 + $0x38] sm:$0xff] }
 0x28a   :  { %1964 = vmatmul.mubr.f32.gmra.mrb[80].mxu0 %v1520_v28 }
 0x28b   :  { %1969 = vmatprep.mubr.f32.mxu0 %v1525_v9 }
 0x28e   :  { %1970 = vmatmul.mubr.f32.gmra.mrb[82].mxu0 %v1524_v29  ;;  %v3326_v29 = vpack.c.bf16 %v2251_v44, %v2250_v27 }
 0x28f   :  { %1975 = vmatprep.mubr.f32.mxu0 %v1529_v38 }
 0x292   :  { %1976 = vmatmul.mubr.f32.gmra.mrb[84].mxu0 %v1528_v52 }
 0x293   :  { %1981 = vmatprep.mubr.f32.mxu0 %v1533_v42 }
 0x296   :  { %1982 = vmatmul.mubr.f32.gmra.mrb[86].mxu0 %v1532_v54 }
 0x297   :  { %1987 = vmatprep.mubr.f32.mxu0 %v1537_v4 }
 0x29a   :  { %1988 = vmatmul.mubr.f32.gmra.mrb[88].mxu0 %v1536_v46 }
 0x29b   :  { %1993 = vmatprep.mubr.f32.mxu0 %v1541_v48 }
 0x29e   :  { %1994 = vmatmul.mubr.f32.gmra.mrb[90].mxu0 %v1540_v22 }
 0x29f   :  { %1999 = vmatprep.mubr.f32.mxu0 %v1545_v49 }
 0x2a2   :  { %2000 = vmatmul.mubr.f32.gmra.mrb[92].mxu0 %v1544_v14 }
 0x2a3   :  { %2005 = vmatprep.mubr.f32.mxu0 %v1549_v59 }
 0x2a6   :  { %2006 = vmatmul.mubr.f32.gmra.mrb[94].mxu0 %v1548_v63 }
 0x2a7   :  { %2879 = vmatprep.mubr.msk.f32.mxu0 %vm3646_vm2, %v3644_v1 }
 0x33d   :  { %v1917_v62 = vpop.f32.mrb[64].mxu0 }
 0x33e   :  { %v3426_v20 = vadd.f32 %v1917_v62, %v4395_v31  ;;  %v1919_v47 = vpop.f32.mrb[65].mxu0 }
 0x33f   :  { %v3427_v3 = vadd.f32 %v1919_v47, %v4398_v43 }
 0x340   :  { %v2012_v32 = vmax.f32 %v3426_v20, 0.0 }
 0x341   :  { %v2013_v56 = vmax.f32 %v3427_v3, 0.0  ;;  %v1923_v7 = vpop.f32.mrb[66].mxu0 }
 0x342   :  { %v3428_v55 = vadd.f32 %v1923_v7, %v4395_v31  ;;  %v1925_v10 = vpop.f32.mrb[67].mxu0 }
 0x343   :  { %v3429_v50 = vadd.f32 %v1925_v10, %v4398_v43  ;;  %2147 = vmatprep.mubr.f32.mxu1 %v2013_v56 }
 0x344   :  { %2148 = vmatmul.mubr.f32.vlgmr.msra.gmra.mrb[64].mxu1 %v2012_v32  ;;  %v2014_v0 = vmax.f32 %v3428_v55, 0.0 }
 0x345   :  { %v2015_v57 = vmax.f32 %v3429_v50, 0.0  ;;  %v1929_v37 = vpop.f32.mrb[68].mxu0  ;;  %3317 = vmatpush3.bf16.msra.mxu1 %v3314_v41 }
 0x346   :  { %v3430_v45 = vadd.f32 %v1929_v37, %v4395_v31  ;;  %v1931_v36 = vpop.f32.mrb[69].mxu0  ;;  %3319 = vmatprep.subr.bf16.mxu1 %v3318_v60 }
 0x347   :  { %v3431_v58 = vadd.f32 %v1931_v36, %v4398_v43  ;;  %2152 = vmatprep.mubr.f32.mxu1 %v2015_v57 }
 0x348   :  { %2153 = vmatmul.mubr.f32.gmra.mrb[66].mxu1 %v2014_v0  ;;  %v2016_v51 = vmax.f32 %v3430_v45, 0.0 }
 0x349   :  { %v2017_v26 = vmax.f32 %v3431_v58, 0.0  ;;  %v1935_v28 = vpop.f32.mrb[70].mxu0  ;;  %3321 = vmatpush3.bf16.msra.mxu1 %v3318_v60 }
 0x34a   :  { %v3432_v9 = vadd.f32 %v1935_v28, %v4395_v31  ;;  %v1937_v21 = vpop.f32.mrb[71].mxu0  ;;  %3323 = vmatprep.subr.bf16.mxu1 %v3322_v40 }
 0x34b   :  { %v3433_v18 = vadd.f32 %v1937_v21, %v4398_v43  ;;  %2157 = vmatprep.mubr.f32.mxu1 %v2017_v26 }
 0x34c   :  { %2158 = vmatmul.mubr.f32.gmra.mrb[68].mxu1 %v2016_v51  ;;  %v2018_v52 = vmax.f32 %v3432_v9, 0.0 }
 0x34d   :  { %v2019_v38 = vmax.f32 %v3433_v18, 0.0  ;;  %v1941_v16 = vpop.f32.mrb[72].mxu0  ;;  %3325 = vmatpush3.bf16.msra.mxu1 %v3322_v40 }
 0x34e   :  { %v3434_v33 = vadd.f32 %v1941_v16, %v4395_v31  ;;  %v1943_v42 = vpop.f32.mrb[73].mxu0  ;;  %3327 = vmatprep.subr.bf16.mxu1 %v3326_v29 }
 0x34f   :  { %v3435_v6 = vadd.f32 %v1943_v42, %v4398_v43  ;;  %2162 = vmatprep.mubr.f32.mxu1 %v2019_v38 }
 0x350   :  { %2163 = vmatmul.mubr.f32.gmra.mrb[70].mxu1 %v2018_v52  ;;  %v2020_v4 = vmax.f32 %v3434_v33, 0.0 }
 0x351   :  { %v2021_v54 = vmax.f32 %v3435_v6, 0.0  ;;  %v1947_v15 = vpop.f32.mrb[74].mxu0  ;;  %3329 = vmatpush3.bf16.msra.mxu1 %v3326_v29 }
 0x352   :  { %v3436_v39 = vadd.f32 %v1947_v15, %v4395_v31  ;;  %v1949_v46 = vpop.f32.mrb[75].mxu0 }
 0x353   :  { %v3437_v19 = vadd.f32 %v1949_v46, %v4398_v43  ;;  %2167 = vmatprep.mubr.f32.mxu1 %v2021_v54 }
 0x354   :  { %2168 = vmatmul.mubr.f32.gmra.mrb[72].mxu1 %v2020_v4  ;;  %v2022_v22 = vmax.f32 %v3436_v39, 0.0 }
 0x355   :  { %v2023_v48 = vmax.f32 %v3437_v19, 0.0  ;;  %v1953_v61 = vpop.f32.mrb[76].mxu0 }
 0x356   :  { %v3438_v35 = vadd.f32 %v1953_v61, %v4395_v31  ;;  %v1955_v49 = vpop.f32.mrb[77].mxu0 }
 0x357   :  { %v3439_v23 = vadd.f32 %v1955_v49, %v4398_v43  ;;  %2172 = vmatprep.mubr.f32.mxu1 %v2023_v48 }
 0x358   :  { %2173 = vmatmul.mubr.f32.gmra.mrb[74].mxu1 %v2022_v22  ;;  %v2024_v59 = vmax.f32 %v3438_v35, 0.0  ;;  %v4453_v35 = vld [vmem:[%s4564_s8] ss:$0 sm:$0xff] }
 0x359   :  { %v2025_v14 = vmax.f32 %v3439_v23, 0.0  ;;  %v1959_v13 = vpop.f32.mrb[78].mxu0 }
 0x35a   :  { %v3440_v63 = vadd.f32 %v1959_v13, %v4395_v31  ;;  %v1961_v17 = vpop.f32.mrb[79].mxu0 }
 0x35b   :  { %v3441_v12 = vadd.f32 %v1961_v17, %v4398_v43  ;;  %2177 = vmatprep.mubr.f32.mxu1 %v2025_v14 }
 0x35c   :  { %2178 = vmatmul.mubr.f32.gmra.mrb[76].mxu1 %v2024_v59  ;;  %v2026_v8 = vmax.f32 %v3440_v63, 0.0 }
 0x35d   :  { %v2027_v30 = vmax.f32 %v3441_v12, 0.0  ;;  %v1965_v2 = vpop.f32.mrb[80].mxu0 }
 0x35e   :  { %v3442_v41 = vadd.f32 %v1965_v2, %v4395_v31  ;;  %v1967_v11 = vpop.f32.mrb[81].mxu0 }
 0x35f   :  { %v3443_v62 = vadd.f32 %v1967_v11, %v4398_v43  ;;  %2182 = vmatprep.mubr.f32.mxu1 %v2027_v30 }
 0x360   :  { %2183 = vmatmul.mubr.f32.gmra.mrb[78].mxu1 %v2026_v8  ;;  %v2028_v3 = vmax.f32 %v3442_v41, 0.0 }
 0x361   :  { %v2029_v20 = vmax.f32 %v3443_v62, 0.0  ;;  %v1971_v47 = vpop.f32.mrb[82].mxu0 }
 0x362   :  { %v3444_v5 = vadd.f32 %v1971_v47, %v4395_v31  ;;  %v1973_v24 = vpop.f32.mrb[83].mxu0 }
 0x363   :  { %v3445_v56 = vadd.f32 %v1973_v24, %v4398_v43  ;;  %2187 = vmatprep.mubr.f32.mxu1 %v2029_v20 }
 0x364   :  { %2188 = vmatmul.mubr.f32.gmra.mrb[80].mxu1 %v2028_v3  ;;  %v2030_v55 = vmax.f32 %v3444_v5, 0.0 }
 0x365   :  { %v2031_v7 = vmax.f32 %v3445_v56, 0.0  ;;  %v1977_v32 = vpop.f32.mrb[84].mxu0 }
 0x366   :  { %v3446_v10 = vadd.f32 %v1977_v32, %v4395_v31  ;;  %v1979_v60 = vpop.f32.mrb[85].mxu0 }
 0x367   :  { %v3447_v50 = vadd.f32 %v1979_v60, %v4398_v43  ;;  %2192 = vmatprep.mubr.f32.mxu1 %v2031_v7 }
 0x368   :  { %2193 = vmatmul.mubr.f32.gmra.mrb[82].mxu1 %v2030_v55  ;;  %v2032_v57 = vmax.f32 %v3446_v10, 0.0 }
 0x369   :  { %v2033_v34 = vmax.f32 %v3447_v50, 0.0  ;;  %v1983_v25 = vpop.f32.mrb[86].mxu0 }
 0x36a   :  { %v3448_v37 = vadd.f32 %v1983_v25, %v4395_v31  ;;  %v1985_v0 = vpop.f32.mrb[87].mxu0 }
 0x36b   :  { %v3449_v45 = vadd.f32 %v1985_v0, %v4398_v43  ;;  %2197 = vmatprep.mubr.f32.mxu1 %v2033_v34 }
 0x36c   :  { %2198 = vmatmul.mubr.f32.gmra.mrb[84].mxu1 %v2032_v57  ;;  %v2034_v58 = vmax.f32 %v3448_v37, 0.0 }
 0x36d   :  { %v2035_v36 = vmax.f32 %v3449_v45, 0.0  ;;  %v1989_v40 = vpop.f32.mrb[88].mxu0 }
 0x36e   :  { %v3450_v27 = vadd.f32 %v1989_v40, %v4395_v31  ;;  %v1991_v44 = vpop.f32.mrb[89].mxu0 }
 0x36f   :  { %v3451_v26 = vadd.f32 %v1991_v44, %v4398_v43  ;;  %2202 = vmatprep.mubr.f32.mxu1 %v2035_v36 }
 0x370   :  { %2203 = vmatmul.mubr.f32.gmra.mrb[86].mxu1 %v2034_v58  ;;  %v2036_v9 = vmax.f32 %v3450_v27, 0.0 }
 0x371   :  { %v2037_v28 = vmax.f32 %v3451_v26, 0.0  ;;  %v1995_v51 = vpop.f32.mrb[90].mxu0 }
 0x372   :  { %v3452_v21 = vadd.f32 %v1995_v51, %v4395_v31  ;;  %v1997_v29 = vpop.f32.mrb[91].mxu0 }
 0x373   :  { %v3453_v18 = vadd.f32 %v1997_v29, %v4398_v43  ;;  %2207 = vmatprep.mubr.f32.mxu1 %v2037_v28 }
 0x374   :  { %2208 = vmatmul.mubr.f32.gmra.mrb[88].mxu1 %v2036_v9  ;;  %v2038_v52 = vmax.f32 %v3452_v21, 0.0 }
 0x375   :  { %v2039_v38 = vmax.f32 %v3453_v18, 0.0  ;;  %v2001_v16 = vpop.f32.mrb[92].mxu0 }
 0x376   :  { %v3454_v33 = vadd.f32 %v2001_v16, %v4395_v31  ;;  %v2003_v42 = vpop.f32.mrb[93].mxu0 }
 0x377   :  { %v3455_v6 = vadd.f32 %v2003_v42, %v4398_v43  ;;  %2212 = vmatprep.mubr.f32.mxu1 %v2039_v38 }
 0x378   :  { %2213 = vmatmul.mubr.f32.gmra.mrb[90].mxu1 %v2038_v52  ;;  %v2040_v4 = vmax.f32 %v3454_v33, 0.0 }
 0x379   :  { %v2041_v54 = vmax.f32 %v3455_v6, 0.0  ;;  %v2007_v15 = vpop.f32.mrb[94].mxu0 }
 0x37a   :  { %v3456_v39 = vadd.f32 %v2007_v15, %v4395_v31  ;;  %v2009_v46 = vpop.f32.mrb[95].mxu0 }
 0x37b   :  { %v3457_v19 = vadd.f32 %v2009_v46, %v4398_v43  ;;  %2217 = vmatprep.mubr.f32.mxu1 %v2041_v54 }
 0x37c   :  { %2218 = vmatmul.mubr.f32.gmra.mrb[92].mxu1 %v2040_v4  ;;  %v2042_v61 = vmax.f32 %v3456_v39, 0.0 }
 0x37d   :  { %v2043_v48 = vmax.f32 %v3457_v19, 0.0 }
 0x37f   :  { %2222 = vmatprep.mubr.f32.mxu1 %v2043_v48 }
 0x380   :  { %2223 = vmatmul.mubr.f32.gmra.mrb[94].mxu1 %v2042_v61 }
 0x417   :  { %v2718_v22 = vpop.f32.mrb[64].mxu1 }
 0x418   :  { %v2719_v49 = vpop.f32.mrb[65].mxu1 }
 0x419   :  { %v2720_v23 = vadd.f32 %v2719_v49, %v2718_v22 }
 0x41b   :  { %v2150_v14 = vadd.f32 %v2720_v23, %v4453_v35  ;;  %v2721_v31 = vpop.f32.mrb[66].mxu1 }
 0x41c   :  { %v2722_v13 = vpop.f32.mrb[67].mxu1 }
 0x41d   :  { %v2228_v43 = vmax.f32 %v2150_v14, 0.0  ;;  %v2723_v59 = vadd.f32 %v2722_v13, %v2721_v31 }
 0x41f   :  { %v2155_v63 = vadd.f32 %v2723_v59, %v4453_v35  ;;  %v2724_v17 = vpop.f32.mrb[68].mxu1  ;;  %2823 = vmatprep.mubr.msk.f32.mxu1 %vm2259_vm1, %v2228_v43 }
 0x420   :  { %v2725_v12 = vpop.f32.mrb[69].mxu1 }
 0x421   :  { %v2229_v30 = vmax.f32 %v2155_v63, 0.0  ;;  %v2726_v2 = vadd.f32 %v2725_v12, %v2724_v17 }
 0x423   :  { %v2160_v8 = vadd.f32 %v2726_v2, %v4453_v35  ;;  %v2727_v41 = vpop.f32.mrb[70].mxu1  ;;  %2824 = vmatmul.mubr.msk.f32.vlgmr.msra.gmra.mrb[96].mxu1 %vm2259_vm1, %v2229_v30 }
 0x424   :  { %v2728_v11 = vpop.f32.mrb[71].mxu1 }
 0x425   :  { %v2230_v62 = vmax.f32 %v2160_v8, 0.0  ;;  %v2729_v20 = vadd.f32 %v2728_v11, %v2727_v41 }
 0x427   :  { %v2165_v47 = vadd.f32 %v2729_v20, %v4453_v35  ;;  %v2730_v3 = vpop.f32.mrb[72].mxu1  ;;  %2826 = vmatprep.mubr.msk.f32.mxu1 %vm2259_vm1, %v2230_v62 }
 0x428   :  { %v2731_v5 = vpop.f32.mrb[73].mxu1 }
 0x429   :  { %v2231_v24 = vmax.f32 %v2165_v47, 0.0  ;;  %v2732_v56 = vadd.f32 %v2731_v5, %v2730_v3  ;;  %v3645_v3 = vmov 0.0|0.0   ;;  %v2470_v5 = vld [vmem:[#allocation2] sm:$0x1] }
 0x42a   :  { %3330 = vmatprep.subr.bf16.mxu0 %v3645_v3 }
 0x42b   :  { %v2170_v7 = vadd.f32 %v2732_v56, %v4453_v35  ;;  %v2733_v32 = vpop.f32.mrb[74].mxu1  ;;  %2827 = vmatmul.mubr.msk.f32.gmra.mrb[98].mxu1 %vm2259_vm1, %v2231_v24  ;;  %v3647_v24 = vmov 0   ;;  %v4492_v56 = vld [vmem:[%s4566_s10] ss:$0 sm:$0xff] }
 0x42c   :  { %v2734_v55 = vpop.f32.mrb[75].mxu1  ;;  %3565 = vset.pattern.permute.xlu0 %v3647_v24 }
 0x42d   :  { %v2232_v10 = vmax.f32 %v2170_v7, 0.0  ;;  %v2735_v60 = vadd.f32 %v2734_v55, %v2733_v32  ;;  %2473 = vperm.xlu0 %3565, %v2470_v5  }
 0x42f   :  { %v2175_v50 = vadd.f32 %v2735_v60, %v4453_v35  ;;  %v2736_v34 = vpop.f32.mrb[76].mxu1  ;;  %2829 = vmatprep.mubr.msk.f32.mxu1 %vm2259_vm1, %v2232_v10 }
 0x430   :  { %v2737_v25 = vpop.f32.mrb[77].mxu1 }
 0x431   :  { %v2233_v57 = vmax.f32 %v2175_v50, 0.0  ;;  %v2738_v37 = vadd.f32 %v2737_v25, %v2736_v34 }
 0x433   :  { %v2180_v0 = vadd.f32 %v2738_v37, %v4453_v35  ;;  %v2739_v45 = vpop.f32.mrb[78].mxu1  ;;  %2830 = vmatmul.mubr.msk.f32.gmra.mrb[100].mxu1 %vm2259_vm1, %v2233_v57 }
 0x434   :  { %v2740_v36 = vpop.f32.mrb[79].mxu1 }
 0x435   :  { %v2234_v40 = vmax.f32 %v2180_v0, 0.0  ;;  %v2741_v58 = vadd.f32 %v2740_v36, %v2739_v45 }
 0x437   :  { %v2185_v27 = vadd.f32 %v2741_v58, %v4453_v35  ;;  %v2742_v44 = vpop.f32.mrb[80].mxu1  ;;  %2832 = vmatprep.mubr.msk.f32.mxu1 %vm2259_vm1, %v2234_v40 }
 0x438   :  { %v2743_v26 = vpop.f32.mrb[81].mxu1 }
 0x439   :  { %v2235_v28 = vmax.f32 %v2185_v27, 0.0  ;;  %v2744_v51 = vadd.f32 %v2743_v26, %v2742_v44 }
 0x43b   :  { %v2190_v9 = vadd.f32 %v2744_v51, %v4453_v35  ;;  %v2745_v21 = vpop.f32.mrb[82].mxu1  ;;  %2833 = vmatmul.mubr.msk.f32.gmra.mrb[102].mxu1 %vm2259_vm1, %v2235_v28 }
 0x43c   :  { %v2746_v29 = vpop.f32.mrb[83].mxu1 }
 0x43d   :  { %v2236_v18 = vmax.f32 %v2190_v9, 0.0  ;;  %v2747_v38 = vadd.f32 %v2746_v29, %v2745_v21 }
 0x43f   :  { %v2195_v16 = vadd.f32 %v2747_v38, %v4453_v35  ;;  %v2748_v52 = vpop.f32.mrb[84].mxu1  ;;  %2835 = vmatprep.mubr.msk.f32.mxu1 %vm2259_vm1, %v2236_v18 }
 0x440   :  { %v2749_v33 = vpop.f32.mrb[85].mxu1 }
 0x441   :  { %v2237_v42 = vmax.f32 %v2195_v16, 0.0  ;;  %v2750_v6 = vadd.f32 %v2749_v33, %v2748_v52 }
 0x443   :  { %v2200_v54 = vadd.f32 %v2750_v6, %v4453_v35  ;;  %v2751_v15 = vpop.f32.mrb[86].mxu1  ;;  %2836 = vmatmul.mubr.msk.f32.gmra.mrb[104].mxu1 %vm2259_vm1, %v2237_v42 }
 0x444   :  { %v2752_v4 = vpop.f32.mrb[87].mxu1 }
 0x445   :  { %v2238_v39 = vmax.f32 %v2200_v54, 0.0  ;;  %v2753_v46 = vadd.f32 %v2752_v4, %v2751_v15 }
 0x447   :  { %v2205_v19 = vadd.f32 %v2753_v46, %v4453_v35  ;;  %v2754_v48 = vpop.f32.mrb[88].mxu1  ;;  %2838 = vmatprep.mubr.msk.f32.mxu1 %vm2259_vm1, %v2238_v39 }
 0x448   :  { %v2755_v61 = vpop.f32.mrb[89].mxu1 }
 0x449   :  { %v2239_v22 = vmax.f32 %v2205_v19, 0.0  ;;  %v2756_v49 = vadd.f32 %v2755_v61, %v2754_v48 }
 0x44b   :  { %v2210_v23 = vadd.f32 %v2756_v49, %v4453_v35  ;;  %v2757_v14 = vpop.f32.mrb[90].mxu1  ;;  %2839 = vmatmul.mubr.msk.f32.gmra.mrb[106].mxu1 %vm2259_vm1, %v2239_v22 }
 0x44c   :  { %v2758_v31 = vpop.f32.mrb[91].mxu1 }
 0x44d   :  { %v2240_v13 = vmax.f32 %v2210_v23, 0.0  ;;  %v2759_v43 = vadd.f32 %v2758_v31, %v2757_v14 }
 0x44f   :  { %v2215_v59 = vadd.f32 %v2759_v43, %v4453_v35  ;;  %v2760_v63 = vpop.f32.mrb[92].mxu1  ;;  %2841 = vmatprep.mubr.msk.f32.mxu1 %vm2259_vm1, %v2240_v13 }
 0x450   :  { %v2761_v17 = vpop.f32.mrb[93].mxu1 }
 0x451   :  { %v2241_v12 = vmax.f32 %v2215_v59, 0.0  ;;  %v2762_v30 = vadd.f32 %v2761_v17, %v2760_v63 }
 0x453   :  { %v2220_v2 = vadd.f32 %v2762_v30, %v4453_v35  ;;  %v2763_v8 = vpop.f32.mrb[94].mxu1  ;;  %2842 = vmatmul.mubr.msk.f32.gmra.mrb[108].mxu1 %vm2259_vm1, %v2241_v12 }
 0x454   :  { %v2764_v41 = vpop.f32.mrb[95].mxu1 }
 0x455   :  { %v2242_v11 = vmax.f32 %v2220_v2, 0.0  ;;  %v2765_v62 = vadd.f32 %v2764_v41, %v2763_v8 }
 0x457   :  { %v2225_v20 = vadd.f32 %v2765_v62, %v4453_v35  ;;  %2844 = vmatprep.mubr.msk.f32.mxu1 %vm2259_vm1, %v2242_v11 }
 0x459   :  { %v2243_v47 = vmax.f32 %v2225_v20, 0.0  ;;  %v2469_v20 = vld [vmem:[%s4567_s11] sm:$0x1] }
 0x45b   :  { %2845 = vmatmul.mubr.msk.f32.gmra.mrb[110].mxu1 %vm2259_vm1, %v2243_v47 }
 0x4ac   :  { %v2474_v47 = vpop.permute.xlu0 %2473 }
 0x4ad   :  { %v2479_v5 = vrot.slane %v2474_v47, %v3913_v53 }
 0x4f6   :  { %v2825_v35 = vpop.f32.mrb[96].mxu1 }
 0x4f7   :  { %v2380_v7 = vadd.f32 %v2825_v35, %v4492_v56  ;;  %v2374_v32 = vpop.f32.mrb[97].mxu1 }
 0x4f8   :  { %v2375_v55 = vadd.f32 %v4492_v56, %v2374_v32 }
 0x4f9   :  { %v2454_v10 = vmax.f32 %v2380_v7, 0.0 }
 0x4fa   :  { %v2453_v60 = vmax.f32 %v2375_v55, 0.0 }
 0x4fc   :  { %v3331_v50 = vpack.c.bf16 %v2454_v10, %v2453_v60 }
 0x4fe   :  { %v2828_v34 = vpop.f32.mrb[98].mxu1  ;;  %3333 = vmatpush3.bf16.xpose.msk.msra.mxu0 %vm4498_vm4, %v3331_v50 }
 0x4ff   :  { %v2390_v25 = vadd.f32 %v2828_v34, %v4492_v56  ;;  %v2384_v57 = vpop.f32.mrb[99].mxu1  ;;  %3334 = vmatprep.subr.bf16.mxu0 %v3645_v3 }
 0x500   :  { %v2385_v37 = vadd.f32 %v4492_v56, %v2384_v57 }
 0x501   :  { %v2456_v0 = vmax.f32 %v2390_v25, 0.0 }
 0x502   :  { %v2455_v45 = vmax.f32 %v2385_v37, 0.0 }
 0x504   :  { %v3335_v36 = vpack.c.bf16 %v2456_v0, %v2455_v45 }
 0x506   :  { %v2831_v40 = vpop.f32.mrb[100].mxu1  ;;  %3337 = vmatpush3.bf16.xpose.msk.msra.mxu0 %vm4498_vm4, %v3335_v36 }
 0x507   :  { %v2400_v58 = vadd.f32 %v2831_v40, %v4492_v56  ;;  %v2394_v27 = vpop.f32.mrb[101].mxu1  ;;  %3338 = vmatprep.subr.bf16.mxu0 %v3645_v3 }
 0x508   :  { %v2395_v44 = vadd.f32 %v4492_v56, %v2394_v27 }
 0x509   :  { %v2458_v26 = vmax.f32 %v2400_v58, 0.0 }
 0x50a   :  { %v2457_v28 = vmax.f32 %v2395_v44, 0.0 }
 0x50c   :  { %v3339_v51 = vpack.c.bf16 %v2458_v26, %v2457_v28 }
 0x50e   :  { %v2834_v9 = vpop.f32.mrb[102].mxu1  ;;  %3341 = vmatpush3.bf16.xpose.msk.msra.mxu0 %vm4498_vm4, %v3339_v51 }
 0x50f   :  { %v2410_v21 = vadd.f32 %v2834_v9, %v4492_v56  ;;  %v2404_v29 = vpop.f32.mrb[103].mxu1  ;;  %3342 = vmatprep.subr.bf16.mxu0 %v3645_v3 }
 0x510   :  { %v2405_v18 = vadd.f32 %v4492_v56, %v2404_v29 }
 0x511   :  { %v2460_v38 = vmax.f32 %v2410_v21, 0.0 }
 0x512   :  { %v2459_v16 = vmax.f32 %v2405_v18, 0.0 }
 0x514   :  { %v3343_v52 = vpack.c.bf16 %v2460_v38, %v2459_v16 }
 0x516   :  { %v2837_v33 = vpop.f32.mrb[104].mxu1  ;;  %3345 = vmatpush3.bf16.xpose.msk.msra.mxu0 %vm4498_vm4, %v3343_v52 }
 0x517   :  { %v2420_v42 = vadd.f32 %v2837_v33, %v4492_v56  ;;  %v2414_v6 = vpop.f32.mrb[105].mxu1  ;;  %3346 = vmatprep.subr.bf16.mxu0 %v3645_v3 }
 0x518   :  { %v2415_v54 = vadd.f32 %v4492_v56, %v2414_v6 }
 0x519   :  { %v2462_v15 = vmax.f32 %v2420_v42, 0.0 }
 0x51a   :  { %v2461_v4 = vmax.f32 %v2415_v54, 0.0 }
 0x51c   :  { %v3347_v39 = vpack.c.bf16 %v2462_v15, %v2461_v4 }
 0x51e   :  { %v2840_v46 = vpop.f32.mrb[106].mxu1  ;;  %3349 = vmatpush3.bf16.xpose.msk.msra.mxu0 %vm4498_vm4, %v3347_v39 }
 0x51f   :  { %v2430_v19 = vadd.f32 %v2840_v46, %v4492_v56  ;;  %v2424_v48 = vpop.f32.mrb[107].mxu1  ;;  %3350 = vmatprep.subr.bf16.mxu0 %v3645_v3 }
 0x520   :  { %v2425_v61 = vadd.f32 %v4492_v56, %v2424_v48 }
 0x521   :  { %v2464_v22 = vmax.f32 %v2430_v19, 0.0 }
 0x522   :  { %v2463_v49 = vmax.f32 %v2425_v61, 0.0 }
 0x524   :  { %v3351_v23 = vpack.c.bf16 %v2464_v22, %v2463_v49 }
 0x526   :  { %v2843_v14 = vpop.f32.mrb[108].mxu1  ;;  %3353 = vmatpush3.bf16.xpose.msk.msra.mxu0 %vm4498_vm4, %v3351_v23 }
 0x527   :  { %v2440_v31 = vadd.f32 %v2843_v14, %v4492_v56  ;;  %v2434_v13 = vpop.f32.mrb[109].mxu1  ;;  %3354 = vmatprep.subr.bf16.mxu0 %v3645_v3 }
 0x528   :  { %v2435_v43 = vadd.f32 %v4492_v56, %v2434_v13 }
 0x529   :  { %v2466_v59 = vmax.f32 %v2440_v31, 0.0 }
 0x52a   :  { %v2465_v63 = vmax.f32 %v2435_v43, 0.0 }
 0x52c   :  { %v3355_v17 = vpack.c.bf16 %v2466_v59, %v2465_v63 }
 0x52e   :  { %v2846_v12 = vpop.f32.mrb[110].mxu1  ;;  %3357 = vmatpush3.bf16.xpose.msk.msra.mxu0 %vm4498_vm4, %v3355_v17 }
 0x52f   :  { %v2450_v30 = vadd.f32 %v2846_v12, %v4492_v56  ;;  %v2444_v2 = vpop.f32.mrb[111].mxu1  ;;  %3358 = vmatprep.subr.bf16.mxu0 %v3645_v3 }
 0x530   :  { %v2445_v8 = vadd.f32 %v4492_v56, %v2444_v2 }
 0x531   :  { %v2468_v41 = vmax.f32 %v2450_v30, 0.0 }
 0x532   :  { %v2467_v11 = vmax.f32 %v2445_v8, 0.0 }
 0x534   :  { %v3359_v62 = vpack.c.bf16 %v2468_v41, %v2467_v11 }
 0x536   :  { %3361 = vmatpush3.bf16.xpose.msk.msra.mxu0 %vm4498_vm4, %v3359_v62 }
 0x53d   :  { %2880 = vmatmul.mubr.msk.f32.vlgmr.msra.gmra.mrb[96].mxu0 %vm2480_vm3, %v2469_v20 }
 0x610   :  { %v2598_v3 = vpop.f32.mrb[96].mxu0 }
 0x611   :  { %v2599_v24 = vadd.f32 %v2598_v3, %v2479_v5  ;;  %v2881_v56 = vpop.f32.mrb[97].mxu0 }
 0x613   :  { %2602 = vst [vmem:[#allocation8] sm:$0x1] %v2599_v24 }
 0x614   :  { %3621 = shalt.err (!%p3618_p6)
}
 0x615   :  { %s3622_s17 = scalar_lea.hbm %s4569_s13, 16 }
 0x616   :  { %p3623_p7 = scmp.ne.s32.totalorder %s4569_s13, %s3622_s17  ;;  %p3626_p8 = scmp.lt.u32.totalorder %s3622_s17, %s4569_s13 }
 0x618   :  { %p3628_p9 = pnand %p3626_p8, %p3623_p7 }
 0x61a   :  { %3631 = shalt.err (!%p3628_p9)
}
 0x61b   :  { %2612 = dma.vmem_to_hbm [thread:$0]  %s2610_s16, 16, %s4569_s13, [#allocation5]  }
 0x61c   :  { %3636 = dma.done.wait [#allocation5], 16  }
 0x61d   :  { %3637 = vsyncadd [#allocation5], 4294967280 }
 0x61e   :  { %2616 = vsyncpa [#allocation4], 1 }
 0x61f   :  { %2617 = vsyncpa [#allocation7], 1 }
 0x620   :  { %2618 = vsyncpa [#allocation5], 1 }

</bundles_post_ra>
